<compile_context>
chip_gen: v5e
topology: v5e:2x2
jax: 0.10.0
libtpu: 0.0.40
codegen_flags: <defaults>
</compile_context>

<pallas_src>
import functools
import math

import jax
import jax.numpy as jnp
from jax.experimental import pallas as pl
from jax.experimental.pallas import tpu as pltpu

VMEM = pl.BlockSpec(memory_space=pltpu.MemorySpace.VMEM)

# Fixed flattening order of the per-layer parameters passed to the kernel.
LAYER_KEYS = ('wqkv', 'bqkv', 'wo', 'bo', 'g1', 'be1',
              'w1', 'b1', 'w2', 'b2', 'g2', 'be2')


# ----------------------------------------------------------------------------
# In-kernel helpers
# ----------------------------------------------------------------------------
def _layernorm(x, g, b, eps=1e-5):
    mu = jnp.mean(x, axis=-1, keepdims=True)
    var = jnp.mean(jnp.square(x - mu), axis=-1, keepdims=True)
    return (x - mu) * jax.lax.rsqrt(var + eps) * g + b


# ----------------------------------------------------------------------------
# Single fused forward kernel.
#   refs = [ x, pete, conv1_w, conv1_b,
#            (12 refs per encoder layer) * L,
#            proj_w, proj_b, conv2_w, conv2_b,
#            out_ref, ctx_scratch ]
# Row ordering of all [S*B, D] slabs is batch-major: row = b*S + s.
# ----------------------------------------------------------------------------
def _fused_forward_kernel(*refs, S, B, D, H, Tout, F, L, chunk):
    n_in = 4 + 12 * L + 4
    out_ref = refs[n_in]
    ctx_ref = refs[n_in + 1]

    x_ref, pete_ref, c1w_ref, c1b_ref = refs[0:4]

    rows = S * B
    Dh = D // H
    scale = 1.0 / math.sqrt(Dh)

    # Conv1d(N->D, k=1) expressed as a channel matmul, fused with the
    # positional-encoding + time-embedding add.
    x = (jnp.dot(x_ref[...], c1w_ref[...], preferred_element_type=jnp.float32)
         + c1b_ref[...] + pete_ref[...])                          # [rows, D] f32

    for l in range(L):                                            # static unroll
        base = 4 + 12 * l
        (wqkv, bqkv, wo, bo, g1, be1,
         w1, b1, w2, b2, g2, be2) = refs[base:base + 12]

        # ---- fused QKV projection (bf16 MXU inputs, f32 accumulation) ----
        xb = x.astype(jnp.bfloat16)
        qkv = (jnp.dot(xb, wqkv[...], preferred_element_type=jnp.float32)
               + bqkv[...])                                       # [rows, >=3D]
        q = qkv[:, 0:D]
        k = qkv[:, D:2 * D]
        v = qkv[:, 2 * D:3 * D]

        # ---- per-(batch, head) attention; contiguous static slices only ----
        for b in range(B):
            r0 = b * S
            qb = q[r0:r0 + S, :]
            kb = k[r0:r0 + S, :]
            vb = v[r0:r0 + S, :]
            for h in range(H):
                c0 = h * Dh
                qh = qb[:, c0:c0 + Dh]                            # [S, Dh]
                kh = kb[:, c0:c0 + Dh]
                vh = vb[:, c0:c0 + Dh]
                s = jnp.dot(qh, kh.T,
                            preferred_element_type=jnp.float32) * scale
                s = s - jnp.max(s, axis=-1, keepdims=True)
                p = jnp.exp(s)
                p = p * pl.reciprocal(jnp.sum(p, axis=-1, keepdims=True),
                                      approx=True)
                ctx_ref[r0:r0 + S, c0:c0 + Dh] = jnp.dot(
                    p, vh, preferred_element_type=jnp.float32)

        # ---- output projection + residual + LayerNorm (post-norm) ----
        ctxb = ctx_ref[...].astype(jnp.bfloat16)
        attn = (jnp.dot(ctxb, wo[...], preferred_element_type=jnp.float32)
                + bo[...])
        h1 = _layernorm(x + attn, g1[...], be1[...])

        # ---- relu FFN, chunked over F to bound live intermediates ----
        h1b = h1.astype(jnp.bfloat16)
        acc = jnp.zeros((rows, D), jnp.float32)
        for c in range(F // chunk):                               # static unroll
            cs = c * chunk
            hc = (jnp.dot(h1b, w1[:, cs:cs + chunk],
                          preferred_element_type=jnp.float32)
                  + b1[:, cs:cs + chunk])
            hc = jnp.maximum(hc, 0.0).astype(jnp.bfloat16)
            acc = acc + jnp.dot(hc, w2[cs:cs + chunk, :],
                                preferred_element_type=jnp.float32)
        x = _layernorm(h1 + acc + b2[...], g2[...], be2[...])

    # ---- Linear(Tin -> Tout) over the time axis, then Conv1d(D -> N) ----
    pw, pb, c2w, c2b = refs[4 + 12 * L: 4 + 12 * L + 4]
    c2wT = c2w[...].T                                             # [N, D]
    for b in range(B):                                            # static unroll
        enc_b = x[b * S:(b + 1) * S, :]                           # [S, D]
        pr = (jnp.dot(enc_b.T, pw[...],
                      preferred_element_type=jnp.float32) + pb[...])  # [D, Tout]
        out_ref[b] = (jnp.dot(c2wT, pr,
                              preferred_element_type=jnp.float32)
                      + c2b[...])                                 # [N, Tout]


# ----------------------------------------------------------------------------
# Host-side wrapper
# ----------------------------------------------------------------------------
def transformer_forward(params, X, Y, tx, ty, teacher_forcing_ratio,
                        *, nhead, ffn_chunk=512):
    # Y, ty, teacher_forcing_ratio and the decoder are unused by the reference
    # forward pass.
    del Y, ty, teacher_forcing_ratio
    batch, N, Tin = X.shape
    D = params['conv1_w'].shape[1]
    Tout = params['proj_w'].shape[1]
    F = params['layers'][0]['w1'].shape[1]
    L = len(params['layers'])
    chunk = min(ffn_chunk, F)
    assert F % chunk == 0

    # Batch-major row layout: row = b*Tin + s.
    x_btn = jnp.transpose(X, (0, 2, 1)).reshape(batch * Tin, N)

    # Positional encoding (precomputed constant) + time-embedding lookup,
    # folded into a single additive slab passed to the fused kernel.
    te = jnp.take(params['time_emb'], tx, axis=0)                 # [batch,Tin,D]
    pete = (params['pe'][None, :, :] + te).reshape(batch * Tin, D)

    flat = [x_btn, pete, params['conv1_w'], params['conv1_b']]
    for lp in params['layers']:
        flat += [lp[k] for k in LAYER_KEYS]
    flat += [params['proj_w'], params['proj_b'],
             params['conv2_w'], params['conv2_b']]

    kern = functools.partial(_fused_forward_kernel,
                             S=Tin, B=batch, D=D, H=nhead,
                             Tout=Tout, F=F, L=L, chunk=chunk)

    # TODO(synk): once batch*Tin grows to a few hundred rows, add a grid over
    # the row dimension with dimension_semantics=("parallel",) to use both
    # TensorCores on v7x; at these sizes a grid is pure overhead.
    return pl.pallas_call(
        kern,
        out_shape=jax.ShapeDtypeStruct((batch, N, Tout), jnp.float32),
        in_specs=[VMEM] * len(flat),
        out_specs=VMEM,
        scratch_shapes=[pltpu.VMEM((batch * Tin, D), jnp.float32)],
        compiler_params=pltpu.CompilerParams(
            vmem_limit_bytes=32 * 1024 * 1024),
    )(*flat)


# ----------------------------------------------------------------------------
# Parameter setup (deterministic, synthetic)
# ----------------------------------------------------------------------------
def positional_encoding(seq_len, d_model):
    pos = jnp.arange(seq_len, dtype=jnp.float32)[:, None]
    i = jnp.arange(0, d_model, 2, dtype=jnp.float32)[None, :]
    angle = pos / jnp.power(10000.0, i / d_model)
    pe = jnp.zeros((seq_len, d_model), jnp.float32)
    pe = pe.at[:, 0::2].set(jnp.sin(angle))
    pe = pe.at[:, 1::2].set(jnp.cos(angle))
    return pe


def init_params(key, N, D, num_layers, F, Tin, Tout, num_embedding):
    def nrm(k, shape, scale=0.02):
        return scale * jax.random.normal(k, shape, jnp.float32)

    qkv_pad = ((3 * D + 127) // 128) * 128        # pad fused QKV to 128 lanes
    keys = jax.random.split(key, 8 + num_layers)
    params = {
        'pe': positional_encoding(Tin, D),                  # constant table
        'conv1_w': nrm(keys[0], (N, D)),                    # Conv1d(N->D, k=1)
        'conv1_b': jnp.zeros((1, D), jnp.float32),
        'conv2_w': nrm(keys[1], (D, N)),                    # Conv1d(D->N, k=1)
        'conv2_b': jnp.zeros((N, 1), jnp.float32),
        'proj_w': nrm(keys[2], (Tin, Tout)),                # Linear(Tin, Tout)
        'proj_b': jnp.zeros((1, Tout), jnp.float32),
        'time_emb': nrm(keys[3], (num_embedding, D), scale=1.0),
        'layers': [],
    }
    for l in range(num_layers):
        ks = jax.random.split(keys[8 + l], 4)
        wqkv = jnp.zeros((D, qkv_pad), jnp.float32)
        wqkv = wqkv.at[:, :3 * D].set(nrm(ks[0], (D, 3 * D)))
        lp = {
            # large matmul weights stored bf16 (MXU inputs); f32 accumulation
            # and f32 layernorm/softmax preserve reference-level numerics.
            'wqkv': wqkv.astype(jnp.bfloat16),
            'bqkv': jnp.zeros((1, qkv_pad), jnp.float32),
            'wo': nrm(ks[1], (D, D)).astype(jnp.bfloat16),
            'bo': jnp.zeros((1, D), jnp.float32),
            'g1': jnp.ones((1, D), jnp.float32),
            'be1': jnp.zeros((1, D), jnp.float32),
            'w1': nrm(ks[2], (D, F)).astype(jnp.bfloat16),
            'b1': jnp.zeros((1, F), jnp.float32),
            'w2': nrm(ks[3], (F, D)).astype(jnp.bfloat16),
            'b2': jnp.zeros((1, D), jnp.float32),
            'g2': jnp.ones((1, D), jnp.float32),
            'be2': jnp.zeros((1, D), jnp.float32),
        }
        params['layers'].append(lp)
    return params


if __name__ == "__main__":
    # Small shapes consistent with the module's forward:
    batch, N, Tin, Tout = 2, 4, 8, 4            # N == cnn_in_channels
    dmodel, nhead, num_layers = 32, 4, 2        # dmodel == cnn_out_channels
    dim_ff = 2048                               # TransformerEncoderLayer default
    num_embedding = 64

    key = jax.random.PRNGKey(0)
    kx, ky, ktx, kty = jax.random.split(key, 4)
    X = jax.random.normal(kx, (batch, N, Tin), jnp.float32)
    Y = jax.random.normal(ky, (batch, N, Tout), jnp.float32)
    tx = jax.random.randint(ktx, (batch, Tin), 0, num_embedding, jnp.int32)
    ty = jax.random.randint(kty, (batch, Tout), 0, num_embedding, jnp.int32)

    params = init_params(jax.random.PRNGKey(42), N, dmodel, num_layers,
                         dim_ff, Tin, Tout, num_embedding)

    fwd = jax.jit(functools.partial(transformer_forward, nhead=nhead))
    out = fwd(params, X, Y, tx, ty, 0.5)
    out = jax.block_until_ready(out)
    assert out.shape == (batch, N, Tout), out.shape
    assert jnp.all(jnp.isfinite(out))
    print("KERNEL_OK")
</pallas_src>

<mosaic_0001>
module attributes {stable_mosaic.version = 11 : i64} {
  func.func @_fused_forward_kernel(%arg0: memref<16x4xf32, #tpu.memory_space<vmem>>, %arg1: memref<16x32xf32, #tpu.memory_space<vmem>>, %arg2: memref<4x32xf32, #tpu.memory_space<vmem>>, %arg3: memref<1x32xf32, #tpu.memory_space<vmem>>, %arg4: memref<32x128xbf16, #tpu.memory_space<vmem>>, %arg5: memref<1x128xf32, #tpu.memory_space<vmem>>, %arg6: memref<32x32xbf16, #tpu.memory_space<vmem>>, %arg7: memref<1x32xf32, #tpu.memory_space<vmem>>, %arg8: memref<1x32xf32, #tpu.memory_space<vmem>>, %arg9: memref<1x32xf32, #tpu.memory_space<vmem>>, %arg10: memref<32x2048xbf16, #tpu.memory_space<vmem>>, %arg11: memref<1x2048xf32, #tpu.memory_space<vmem>>, %arg12: memref<2048x32xbf16, #tpu.memory_space<vmem>>, %arg13: memref<1x32xf32, #tpu.memory_space<vmem>>, %arg14: memref<1x32xf32, #tpu.memory_space<vmem>>, %arg15: memref<1x32xf32, #tpu.memory_space<vmem>>, %arg16: memref<32x128xbf16, #tpu.memory_space<vmem>>, %arg17: memref<1x128xf32, #tpu.memory_space<vmem>>, %arg18: memref<32x32xbf16, #tpu.memory_space<vmem>>, %arg19: memref<1x32xf32, #tpu.memory_space<vmem>>, %arg20: memref<1x32xf32, #tpu.memory_space<vmem>>, %arg21: memref<1x32xf32, #tpu.memory_space<vmem>>, %arg22: memref<32x2048xbf16, #tpu.memory_space<vmem>>, %arg23: memref<1x2048xf32, #tpu.memory_space<vmem>>, %arg24: memref<2048x32xbf16, #tpu.memory_space<vmem>>, %arg25: memref<1x32xf32, #tpu.memory_space<vmem>>, %arg26: memref<1x32xf32, #tpu.memory_space<vmem>>, %arg27: memref<1x32xf32, #tpu.memory_space<vmem>>, %arg28: memref<8x4xf32, #tpu.memory_space<vmem>>, %arg29: memref<1x4xf32, #tpu.memory_space<vmem>>, %arg30: memref<32x4xf32, #tpu.memory_space<vmem>>, %arg31: memref<4x1xf32, #tpu.memory_space<vmem>>, %arg32: memref<2x4x4xf32, #tpu.memory_space<vmem>>, %arg33: memref<16x32xf32, #tpu.memory_space<vmem>>) attributes {dimension_semantics = [], scalar_prefetch = 0 : i64, scratch_operands = 1 : i64, tpu.core_type = #tpu.core_type<tc>} {
    %c0 = arith.constant 0 : index
    %c0_0 = arith.constant 0 : index
    %0 = vector.load %arg0[%c0, %c0_0] : memref<16x4xf32, #tpu.memory_space<vmem>>, vector<16x4xf32>
    %c0_1 = arith.constant 0 : index
    %c0_2 = arith.constant 0 : index
    %1 = vector.load %arg2[%c0_1, %c0_2] : memref<4x32xf32, #tpu.memory_space<vmem>>, vector<4x32xf32>
    %cst = arith.constant dense<0.000000e+00> : vector<16x32xf32>
    %2 = tpu.matmul %0, %1, %cst {dimension_numbers = #tpu.dot_dimension_numbers<[1], [0], [0], [1], [0, 0, 1, 1], [], []>} : vector<16x4xf32>, vector<4x32xf32>, vector<16x32xf32> -> vector<16x32xf32>
    %c0_3 = arith.constant 0 : index
    %c0_4 = arith.constant 0 : index
    %3 = vector.load %arg3[%c0_3, %c0_4] : memref<1x32xf32, #tpu.memory_space<vmem>>, vector<1x32xf32>
    %4 = vector.broadcast %3 : vector<1x32xf32> to vector<16x32xf32>
    %5 = arith.addf %2, %4 : vector<16x32xf32>
    %c0_5 = arith.constant 0 : index
    %c0_6 = arith.constant 0 : index
    %6 = vector.load %arg1[%c0_5, %c0_6] : memref<16x32xf32, #tpu.memory_space<vmem>>, vector<16x32xf32>
    %7 = arith.addf %5, %6 : vector<16x32xf32>
    %8 = arith.truncf %7 : vector<16x32xf32> to vector<16x32xbf16>
    %c0_7 = arith.constant 0 : index
    %c0_8 = arith.constant 0 : index
    %9 = vector.load %arg4[%c0_7, %c0_8] : memref<32x128xbf16, #tpu.memory_space<vmem>>, vector<32x128xbf16>
    %cst_9 = arith.constant dense<0.000000e+00> : vector<16x128xf32>
    %10 = tpu.matmul %8, %9, %cst_9 {dimension_numbers = #tpu.dot_dimension_numbers<[1], [0], [0], [1], [0, 0, 1, 1], [], []>} : vector<16x32xbf16>, vector<32x128xbf16>, vector<16x128xf32> -> vector<16x128xf32>
    %c0_10 = arith.constant 0 : index
    %c0_11 = arith.constant 0 : index
    %11 = vector.load %arg5[%c0_10, %c0_11] : memref<1x128xf32, #tpu.memory_space<vmem>>, vector<1x128xf32>
    %12 = vector.broadcast %11 : vector<1x128xf32> to vector<16x128xf32>
    %13 = arith.addf %10, %12 : vector<16x128xf32>
    %14 = vector.extract_strided_slice %13 {offsets = [0, 0], sizes = [16, 32], strides = [1, 1]} : vector<16x128xf32> to vector<16x32xf32>
    %15 = vector.extract_strided_slice %13 {offsets = [0, 32], sizes = [16, 32], strides = [1, 1]} : vector<16x128xf32> to vector<16x32xf32>
    %16 = vector.extract_strided_slice %13 {offsets = [0, 64], sizes = [16, 32], strides = [1, 1]} : vector<16x128xf32> to vector<16x32xf32>
    %17 = vector.extract_strided_slice %14 {offsets = [0, 0], sizes = [8, 32], strides = [1, 1]} : vector<16x32xf32> to vector<8x32xf32>
    %18 = vector.extract_strided_slice %15 {offsets = [0, 0], sizes = [8, 32], strides = [1, 1]} : vector<16x32xf32> to vector<8x32xf32>
    %19 = vector.extract_strided_slice %16 {offsets = [0, 0], sizes = [8, 32], strides = [1, 1]} : vector<16x32xf32> to vector<8x32xf32>
    %20 = vector.extract_strided_slice %17 {offsets = [0, 0], sizes = [8, 8], strides = [1, 1]} : vector<8x32xf32> to vector<8x8xf32>
    %21 = vector.extract_strided_slice %18 {offsets = [0, 0], sizes = [8, 8], strides = [1, 1]} : vector<8x32xf32> to vector<8x8xf32>
    %22 = vector.extract_strided_slice %19 {offsets = [0, 0], sizes = [8, 8], strides = [1, 1]} : vector<8x32xf32> to vector<8x8xf32>
    %23 = tpu.transpose %21, [1, 0] : vector<8x8xf32> -> vector<8x8xf32>
    %cst_12 = arith.constant dense<0.000000e+00> : vector<8x8xf32>
    %24 = tpu.matmul %20, %23, %cst_12 {dimension_numbers = #tpu.dot_dimension_numbers<[1], [0], [0], [1], [0, 0, 1, 1], [], []>} : vector<8x8xf32>, vector<8x8xf32>, vector<8x8xf32> -> vector<8x8xf32>
    %cst_13 = arith.constant 0.353553385 : f32
    %25 = vector.broadcast %cst_13 : f32 to vector<8x8xf32>
    %26 = arith.mulf %24, %25 : vector<8x8xf32>
    %cst_14 = arith.constant dense<0xFF800000> : vector<8xf32>
    %27 = vector.multi_reduction <maximumf>, %26, %cst_14 [1] : vector<8x8xf32> to vector<8xf32>
    %28 = vector.shape_cast %27 : vector<8xf32> to vector<8x1xf32>
    %29 = vector.broadcast %28 : vector<8x1xf32> to vector<8x8xf32>
    %30 = arith.subf %26, %29 : vector<8x8xf32>
    %31 = math.exp %30 : vector<8x8xf32>
    %cst_15 = arith.constant dense<0.000000e+00> : vector<8xf32>
    %32 = vector.multi_reduction <add>, %31, %cst_15 [1] : vector<8x8xf32> to vector<8xf32>
    %33 = vector.shape_cast %32 : vector<8xf32> to vector<8x1xf32>
    %34 = tpu.reciprocal %33 {approx = true} : vector<8x1xf32> -> vector<8x1xf32>
    %35 = vector.broadcast %34 : vector<8x1xf32> to vector<8x8xf32>
    %36 = arith.mulf %31, %35 : vector<8x8xf32>
    %cst_16 = arith.constant dense<0.000000e+00> : vector<8x8xf32>
    %37 = tpu.matmul %36, %22, %cst_16 {dimension_numbers = #tpu.dot_dimension_numbers<[1], [0], [0], [1], [0, 0, 1, 1], [], []>} : vector<8x8xf32>, vector<8x8xf32>, vector<8x8xf32> -> vector<8x8xf32>
    %c0_17 = arith.constant 0 : index
    %c0_18 = arith.constant 0 : index
    %38 = vector.load %arg33[%c0_17, %c0_18] : memref<16x32xf32, #tpu.memory_space<vmem>>, vector<8x8xf32>
    tpu.vector_store %arg33[%c0_17, %c0_18], %37 {strides = array<i32>} : memref<16x32xf32, #tpu.memory_space<vmem>>, vector<8x8xf32>,
    %39 = vector.extract_strided_slice %17 {offsets = [0, 8], sizes = [8, 8], strides = [1, 1]} : vector<8x32xf32> to vector<8x8xf32>
    %40 = vector.extract_strided_slice %18 {offsets = [0, 8], sizes = [8, 8], strides = [1, 1]} : vector<8x32xf32> to vector<8x8xf32>
    %41 = vector.extract_strided_slice %19 {offsets = [0, 8], sizes = [8, 8], strides = [1, 1]} : vector<8x32xf32> to vector<8x8xf32>
    %42 = tpu.transpose %40, [1, 0] : vector<8x8xf32> -> vector<8x8xf32>
    %cst_19 = arith.constant dense<0.000000e+00> : vector<8x8xf32>
    %43 = tpu.matmul %39, %42, %cst_19 {dimension_numbers = #tpu.dot_dimension_numbers<[1], [0], [0], [1], [0, 0, 1, 1], [], []>} : vector<8x8xf32>, vector<8x8xf32>, vector<8x8xf32> -> vector<8x8xf32>
    %cst_20 = arith.constant 0.353553385 : f32
    %44 = vector.broadcast %cst_20 : f32 to vector<8x8xf32>
    %45 = arith.mulf %43, %44 : vector<8x8xf32>
    %cst_21 = arith.constant dense<0xFF800000> : vector<8xf32>
    %46 = vector.multi_reduction <maximumf>, %45, %cst_21 [1] : vector<8x8xf32> to vector<8xf32>
    %47 = vector.shape_cast %46 : vector<8xf32> to vector<8x1xf32>
    %48 = vector.broadcast %47 : vector<8x1xf32> to vector<8x8xf32>
    %49 = arith.subf %45, %48 : vector<8x8xf32>
    %50 = math.exp %49 : vector<8x8xf32>
    %cst_22 = arith.constant dense<0.000000e+00> : vector<8xf32>
    %51 = vector.multi_reduction <add>, %50, %cst_22 [1] : vector<8x8xf32> to vector<8xf32>
    %52 = vector.shape_cast %51 : vector<8xf32> to vector<8x1xf32>
    %53 = tpu.reciprocal %52 {approx = true} : vector<8x1xf32> -> vector<8x1xf32>
    %54 = vector.broadcast %53 : vector<8x1xf32> to vector<8x8xf32>
    %55 = arith.mulf %50, %54 : vector<8x8xf32>
    %cst_23 = arith.constant dense<0.000000e+00> : vector<8x8xf32>
    %56 = tpu.matmul %55, %41, %cst_23 {dimension_numbers = #tpu.dot_dimension_numbers<[1], [0], [0], [1], [0, 0, 1, 1], [], []>} : vector<8x8xf32>, vector<8x8xf32>, vector<8x8xf32> -> vector<8x8xf32>
    %c0_24 = arith.constant 0 : index
    %c8 = arith.constant 8 : index
    %57 = vector.load %arg33[%c0_24, %c8] : memref<16x32xf32, #tpu.memory_space<vmem>>, vector<8x8xf32>
    tpu.vector_store %arg33[%c0_24, %c8], %56 {strides = array<i32>} : memref<16x32xf32, #tpu.memory_space<vmem>>, vector<8x8xf32>,
    %58 = vector.extract_strided_slice %17 {offsets = [0, 16], sizes = [8, 8], strides = [1, 1]} : vector<8x32xf32> to vector<8x8xf32>
    %59 = vector.extract_strided_slice %18 {offsets = [0, 16], sizes = [8, 8], strides = [1, 1]} : vector<8x32xf32> to vector<8x8xf32>
    %60 = vector.extract_strided_slice %19 {offsets = [0, 16], sizes = [8, 8], strides = [1, 1]} : vector<8x32xf32> to vector<8x8xf32>
    %61 = tpu.transpose %59, [1, 0] : vector<8x8xf32> -> vector<8x8xf32>
    %cst_25 = arith.constant dense<0.000000e+00> : vector<8x8xf32>
    %62 = tpu.matmul %58, %61, %cst_25 {dimension_numbers = #tpu.dot_dimension_numbers<[1], [0], [0], [1], [0, 0, 1, 1], [], []>} : vector<8x8xf32>, vector<8x8xf32>, vector<8x8xf32> -> vector<8x8xf32>
    %cst_26 = arith.constant 0.353553385 : f32
    %63 = vector.broadcast %cst_26 : f32 to vector<8x8xf32>
    %64 = arith.mulf %62, %63 : vector<8x8xf32>
    %cst_27 = arith.constant dense<0xFF800000> : vector<8xf32>
    %65 = vector.multi_reduction <maximumf>, %64, %cst_27 [1] : vector<8x8xf32> to vector<8xf32>
    %66 = vector.shape_cast %65 : vector<8xf32> to vector<8x1xf32>
    %67 = vector.broadcast %66 : vector<8x1xf32> to vector<8x8xf32>
    %68 = arith.subf %64, %67 : vector<8x8xf32>
    %69 = math.exp %68 : vector<8x8xf32>
    %cst_28 = arith.constant dense<0.000000e+00> : vector<8xf32>
    %70 = vector.multi_reduction <add>, %69, %cst_28 [1] : vector<8x8xf32> to vector<8xf32>
    %71 = vector.shape_cast %70 : vector<8xf32> to vector<8x1xf32>
    %72 = tpu.reciprocal %71 {approx = true} : vector<8x1xf32> -> vector<8x1xf32>
    %73 = vector.broadcast %72 : vector<8x1xf32> to vector<8x8xf32>
    %74 = arith.mulf %69, %73 : vector<8x8xf32>
    %cst_29 = arith.constant dense<0.000000e+00> : vector<8x8xf32>
    %75 = tpu.matmul %74, %60, %cst_29 {dimension_numbers = #tpu.dot_dimension_numbers<[1], [0], [0], [1], [0, 0, 1, 1], [], []>} : vector<8x8xf32>, vector<8x8xf32>, vector<8x8xf32> -> vector<8x8xf32>
    %c0_30 = arith.constant 0 : index
    %c16 = arith.constant 16 : index
    %76 = vector.load %arg33[%c0_30, %c16] : memref<16x32xf32, #tpu.memory_space<vmem>>, vector<8x8xf32>
    tpu.vector_store %arg33[%c0_30, %c16], %75 {strides = array<i32>} : memref<16x32xf32, #tpu.memory_space<vmem>>, vector<8x8xf32>,
    %77 = vector.extract_strided_slice %17 {offsets = [0, 24], sizes = [8, 8], strides = [1, 1]} : vector<8x32xf32> to vector<8x8xf32>
    %78 = vector.extract_strided_slice %18 {offsets = [0, 24], sizes = [8, 8], strides = [1, 1]} : vector<8x32xf32> to vector<8x8xf32>
    %79 = vector.extract_strided_slice %19 {offsets = [0, 24], sizes = [8, 8], strides = [1, 1]} : vector<8x32xf32> to vector<8x8xf32>
    %80 = tpu.transpose %78, [1, 0] : vector<8x8xf32> -> vector<8x8xf32>
    %cst_31 = arith.constant dense<0.000000e+00> : vector<8x8xf32>
    %81 = tpu.matmul %77, %80, %cst_31 {dimension_numbers = #tpu.dot_dimension_numbers<[1], [0], [0], [1], [0, 0, 1, 1], [], []>} : vector<8x8xf32>, vector<8x8xf32>, vector<8x8xf32> -> vector<8x8xf32>
    %cst_32 = arith.constant 0.353553385 : f32
    %82 = vector.broadcast %cst_32 : f32 to vector<8x8xf32>
    %83 = arith.mulf %81, %82 : vector<8x8xf32>
    %cst_33 = arith.constant dense<0xFF800000> : vector<8xf32>
    %84 = vector.multi_reduction <maximumf>, %83, %cst_33 [1] : vector<8x8xf32> to vector<8xf32>
    %85 = vector.shape_cast %84 : vector<8xf32> to vector<8x1xf32>
    %86 = vector.broadcast %85 : vector<8x1xf32> to vector<8x8xf32>
    %87 = arith.subf %83, %86 : vector<8x8xf32>
    %88 = math.exp %87 : vector<8x8xf32>
    %cst_34 = arith.constant dense<0.000000e+00> : vector<8xf32>
    %89 = vector.multi_reduction <add>, %88, %cst_34 [1] : vector<8x8xf32> to vector<8xf32>
    %90 = vector.shape_cast %89 : vector<8xf32> to vector<8x1xf32>
    %91 = tpu.reciprocal %90 {approx = true} : vector<8x1xf32> -> vector<8x1xf32>
    %92 = vector.broadcast %91 : vector<8x1xf32> to vector<8x8xf32>
    %93 = arith.mulf %88, %92 : vector<8x8xf32>
    %cst_35 = arith.constant dense<0.000000e+00> : vector<8x8xf32>
    %94 = tpu.matmul %93, %79, %cst_35 {dimension_numbers = #tpu.dot_dimension_numbers<[1], [0], [0], [1], [0, 0, 1, 1], [], []>} : vector<8x8xf32>, vector<8x8xf32>, vector<8x8xf32> -> vector<8x8xf32>
    %c0_36 = arith.constant 0 : index
    %c24 = arith.constant 24 : index
    %95 = vector.load %arg33[%c0_36, %c24] : memref<16x32xf32, #tpu.memory_space<vmem>>, vector<8x8xf32>
    tpu.vector_store %arg33[%c0_36, %c24], %94 {strides = array<i32>} : memref<16x32xf32, #tpu.memory_space<vmem>>, vector<8x8xf32>,
    %96 = vector.extract_strided_slice %14 {offsets = [8, 0], sizes = [8, 32], strides = [1, 1]} : vector<16x32xf32> to vector<8x32xf32>
    %97 = vector.extract_strided_slice %15 {offsets = [8, 0], sizes = [8, 32], strides = [1, 1]} : vector<16x32xf32> to vector<8x32xf32>
    %98 = vector.extract_strided_slice %16 {offsets = [8, 0], sizes = [8, 32], strides = [1, 1]} : vector<16x32xf32> to vector<8x32xf32>
    %99 = vector.extract_strided_slice %96 {offsets = [0, 0], sizes = [8, 8], strides = [1, 1]} : vector<8x32xf32> to vector<8x8xf32>
    %100 = vector.extract_strided_slice %97 {offsets = [0, 0], sizes = [8, 8], strides = [1, 1]} : vector<8x32xf32> to vector<8x8xf32>
    %101 = vector.extract_strided_slice %98 {offsets = [0, 0], sizes = [8, 8], strides = [1, 1]} : vector<8x32xf32> to vector<8x8xf32>
    %102 = tpu.transpose %100, [1, 0] : vector<8x8xf32> -> vector<8x8xf32>
    %cst_37 = arith.constant dense<0.000000e+00> : vector<8x8xf32>
    %103 = tpu.matmul %99, %102, %cst_37 {dimension_numbers = #tpu.dot_dimension_numbers<[1], [0], [0], [1], [0, 0, 1, 1], [], []>} : vector<8x8xf32>, vector<8x8xf32>, vector<8x8xf32> -> vector<8x8xf32>
    %cst_38 = arith.constant 0.353553385 : f32
    %104 = vector.broadcast %cst_38 : f32 to vector<8x8xf32>
    %105 = arith.mulf %103, %104 : vector<8x8xf32>
    %cst_39 = arith.constant dense<0xFF800000> : vector<8xf32>
    %106 = vector.multi_reduction <maximumf>, %105, %cst_39 [1] : vector<8x8xf32> to vector<8xf32>
    %107 = vector.shape_cast %106 : vector<8xf32> to vector<8x1xf32>
    %108 = vector.broadcast %107 : vector<8x1xf32> to vector<8x8xf32>
    %109 = arith.subf %105, %108 : vector<8x8xf32>
    %110 = math.exp %109 : vector<8x8xf32>
    %cst_40 = arith.constant dense<0.000000e+00> : vector<8xf32>
    %111 = vector.multi_reduction <add>, %110, %cst_40 [1] : vector<8x8xf32> to vector<8xf32>
    %112 = vector.shape_cast %111 : vector<8xf32> to vector<8x1xf32>
    %113 = tpu.reciprocal %112 {approx = true} : vector<8x1xf32> -> vector<8x1xf32>
    %114 = vector.broadcast %113 : vector<8x1xf32> to vector<8x8xf32>
    %115 = arith.mulf %110, %114 : vector<8x8xf32>
    %cst_41 = arith.constant dense<0.000000e+00> : vector<8x8xf32>
    %116 = tpu.matmul %115, %101, %cst_41 {dimension_numbers = #tpu.dot_dimension_numbers<[1], [0], [0], [1], [0, 0, 1, 1], [], []>} : vector<8x8xf32>, vector<8x8xf32>, vector<8x8xf32> -> vector<8x8xf32>
    %c8_42 = arith.constant 8 : index
    %c0_43 = arith.constant 0 : index
    %117 = vector.load %arg33[%c8_42, %c0_43] : memref<16x32xf32, #tpu.memory_space<vmem>>, vector<8x8xf32>
    tpu.vector_store %arg33[%c8_42, %c0_43], %116 {strides = array<i32>} : memref<16x32xf32, #tpu.memory_space<vmem>>, vector<8x8xf32>,
    %118 = vector.extract_strided_slice %96 {offsets = [0, 8], sizes = [8, 8], strides = [1, 1]} : vector<8x32xf32> to vector<8x8xf32>
    %119 = vector.extract_strided_slice %97 {offsets = [0, 8], sizes = [8, 8], strides = [1, 1]} : vector<8x32xf32> to vector<8x8xf32>
    %120 = vector.extract_strided_slice %98 {offsets = [0, 8], sizes = [8, 8], strides = [1, 1]} : vector<8x32xf32> to vector<8x8xf32>
    %121 = tpu.transpose %119, [1, 0] : vector<8x8xf32> -> vector<8x8xf32>
    %cst_44 = arith.constant dense<0.000000e+00> : vector<8x8xf32>
    %122 = tpu.matmul %118, %121, %cst_44 {dimension_numbers = #tpu.dot_dimension_numbers<[1], [0], [0], [1], [0, 0, 1, 1], [], []>} : vector<8x8xf32>, vector<8x8xf32>, vector<8x8xf32> -> vector<8x8xf32>
    %cst_45 = arith.constant 0.353553385 : f32
    %123 = vector.broadcast %cst_45 : f32 to vector<8x8xf32>
    %124 = arith.mulf %122, %123 : vector<8x8xf32>
    %cst_46 = arith.constant dense<0xFF800000> : vector<8xf32>
    %125 = vector.multi_reduction <maximumf>, %124, %cst_46 [1] : vector<8x8xf32> to vector<8xf32>
    %126 = vector.shape_cast %125 : vector<8xf32> to vector<8x1xf32>
    %127 = vector.broadcast %126 : vector<8x1xf32> to vector<8x8xf32>
    %128 = arith.subf %124, %127 : vector<8x8xf32>
    %129 = math.exp %128 : vector<8x8xf32>
    %cst_47 = arith.constant dense<0.000000e+00> : vector<8xf32>
    %130 = vector.multi_reduction <add>, %129, %cst_47 [1] : vector<8x8xf32> to vector<8xf32>
    %131 = vector.shape_cast %130 : vector<8xf32> to vector<8x1xf32>
    %132 = tpu.reciprocal %131 {approx = true} : vector<8x1xf32> -> vector<8x1xf32>
    %133 = vector.broadcast %132 : vector<8x1xf32> to vector<8x8xf32>
    %134 = arith.mulf %129, %133 : vector<8x8xf32>
    %cst_48 = arith.constant dense<0.000000e+00> : vector<8x8xf32>
    %135 = tpu.matmul %134, %120, %cst_48 {dimension_numbers = #tpu.dot_dimension_numbers<[1], [0], [0], [1], [0, 0, 1, 1], [], []>} : vector<8x8xf32>, vector<8x8xf32>, vector<8x8xf32> -> vector<8x8xf32>
    %c8_49 = arith.constant 8 : index
    %c8_50 = arith.constant 8 : index
    %136 = vector.load %arg33[%c8_49, %c8_50] : memref<16x32xf32, #tpu.memory_space<vmem>>, vector<8x8xf32>
    tpu.vector_store %arg33[%c8_49, %c8_50], %135 {strides = array<i32>} : memref<16x32xf32, #tpu.memory_space<vmem>>, vector<8x8xf32>,
    %137 = vector.extract_strided_slice %96 {offsets = [0, 16], sizes = [8, 8], strides = [1, 1]} : vector<8x32xf32> to vector<8x8xf32>
    %138 = vector.extract_strided_slice %97 {offsets = [0, 16], sizes = [8, 8], strides = [1, 1]} : vector<8x32xf32> to vector<8x8xf32>
    %139 = vector.extract_strided_slice %98 {offsets = [0, 16], sizes = [8, 8], strides = [1, 1]} : vector<8x32xf32> to vector<8x8xf32>
    %140 = tpu.transpose %138, [1, 0] : vector<8x8xf32> -> vector<8x8xf32>
    %cst_51 = arith.constant dense<0.000000e+00> : vector<8x8xf32>
    %141 = tpu.matmul %137, %140, %cst_51 {dimension_numbers = #tpu.dot_dimension_numbers<[1], [0], [0], [1], [0, 0, 1, 1], [], []>} : vector<8x8xf32>, vector<8x8xf32>, vector<8x8xf32> -> vector<8x8xf32>
    %cst_52 = arith.constant 0.353553385 : f32
    %142 = vector.broadcast %cst_52 : f32 to vector<8x8xf32>
    %143 = arith.mulf %141, %142 : vector<8x8xf32>
    %cst_53 = arith.constant dense<0xFF800000> : vector<8xf32>
    %144 = vector.multi_reduction <maximumf>, %143, %cst_53 [1] : vector<8x8xf32> to vector<8xf32>
    %145 = vector.shape_cast %144 : vector<8xf32> to vector<8x1xf32>
    %146 = vector.broadcast %145 : vector<8x1xf32> to vector<8x8xf32>
    %147 = arith.subf %143, %146 : vector<8x8xf32>
    %148 = math.exp %147 : vector<8x8xf32>
    %cst_54 = arith.constant dense<0.000000e+00> : vector<8xf32>
    %149 = vector.multi_reduction <add>, %148, %cst_54 [1] : vector<8x8xf32> to vector<8xf32>
    %150 = vector.shape_cast %149 : vector<8xf32> to vector<8x1xf32>
    %151 = tpu.reciprocal %150 {approx = true} : vector<8x1xf32> -> vector<8x1xf32>
    %152 = vector.broadcast %151 : vector<8x1xf32> to vector<8x8xf32>
    %153 = arith.mulf %148, %152 : vector<8x8xf32>
    %cst_55 = arith.constant dense<0.000000e+00> : vector<8x8xf32>
    %154 = tpu.matmul %153, %139, %cst_55 {dimension_numbers = #tpu.dot_dimension_numbers<[1], [0], [0], [1], [0, 0, 1, 1], [], []>} : vector<8x8xf32>, vector<8x8xf32>, vector<8x8xf32> -> vector<8x8xf32>
    %c8_56 = arith.constant 8 : index
    %c16_57 = arith.constant 16 : index
    %155 = vector.load %arg33[%c8_56, %c16_57] : memref<16x32xf32, #tpu.memory_space<vmem>>, vector<8x8xf32>
    tpu.vector_store %arg33[%c8_56, %c16_57], %154 {strides = array<i32>} : memref<16x32xf32, #tpu.memory_space<vmem>>, vector<8x8xf32>,
    %156 = vector.extract_strided_slice %96 {offsets = [0, 24], sizes = [8, 8], strides = [1, 1]} : vector<8x32xf32> to vector<8x8xf32>
    %157 = vector.extract_strided_slice %97 {offsets = [0, 24], sizes = [8, 8], strides = [1, 1]} : vector<8x32xf32> to vector<8x8xf32>
    %158 = vector.extract_strided_slice %98 {offsets = [0, 24], sizes = [8, 8], strides = [1, 1]} : vector<8x32xf32> to vector<8x8xf32>
    %159 = tpu.transpose %157, [1, 0] : vector<8x8xf32> -> vector<8x8xf32>
    %cst_58 = arith.constant dense<0.000000e+00> : vector<8x8xf32>
    %160 = tpu.matmul %156, %159, %cst_58 {dimension_numbers = #tpu.dot_dimension_numbers<[1], [0], [0], [1], [0, 0, 1, 1], [], []>} : vector<8x8xf32>, vector<8x8xf32>, vector<8x8xf32> -> vector<8x8xf32>
    %cst_59 = arith.constant 0.353553385 : f32
    %161 = vector.broadcast %cst_59 : f32 to vector<8x8xf32>
    %162 = arith.mulf %160, %161 : vector<8x8xf32>
    %cst_60 = arith.constant dense<0xFF800000> : vector<8xf32>
    %163 = vector.multi_reduction <maximumf>, %162, %cst_60 [1] : vector<8x8xf32> to vector<8xf32>
    %164 = vector.shape_cast %163 : vector<8xf32> to vector<8x1xf32>
    %165 = vector.broadcast %164 : vector<8x1xf32> to vector<8x8xf32>
    %166 = arith.subf %162, %165 : vector<8x8xf32>
    %167 = math.exp %166 : vector<8x8xf32>
    %cst_61 = arith.constant dense<0.000000e+00> : vector<8xf32>
    %168 = vector.multi_reduction <add>, %167, %cst_61 [1] : vector<8x8xf32> to vector<8xf32>
    %169 = vector.shape_cast %168 : vector<8xf32> to vector<8x1xf32>
    %170 = tpu.reciprocal %169 {approx = true} : vector<8x1xf32> -> vector<8x1xf32>
    %171 = vector.broadcast %170 : vector<8x1xf32> to vector<8x8xf32>
    %172 = arith.mulf %167, %171 : vector<8x8xf32>
    %cst_62 = arith.constant dense<0.000000e+00> : vector<8x8xf32>
    %173 = tpu.matmul %172, %158, %cst_62 {dimension_numbers = #tpu.dot_dimension_numbers<[1], [0], [0], [1], [0, 0, 1, 1], [], []>} : vector<8x8xf32>, vector<8x8xf32>, vector<8x8xf32> -> vector<8x8xf32>
    %c8_63 = arith.constant 8 : index
    %c24_64 = arith.constant 24 : index
    %174 = vector.load %arg33[%c8_63, %c24_64] : memref<16x32xf32, #tpu.memory_space<vmem>>, vector<8x8xf32>
    tpu.vector_store %arg33[%c8_63, %c24_64], %173 {strides = array<i32>} : memref<16x32xf32, #tpu.memory_space<vmem>>, vector<8x8xf32>,
    %c0_65 = arith.constant 0 : index
    %c0_66 = arith.constant 0 : index
    %175 = vector.load %arg33[%c0_65, %c0_66] : memref<16x32xf32, #tpu.memory_space<vmem>>, vector<16x32xf32>
    %176 = arith.truncf %175 : vector<16x32xf32> to vector<16x32xbf16>
    %c0_67 = arith.constant 0 : index
    %c0_68 = arith.constant 0 : index
    %177 = vector.load %arg6[%c0_67, %c0_68] : memref<32x32xbf16, #tpu.memory_space<vmem>>, vector<32x32xbf16>
    %cst_69 = arith.constant dense<0.000000e+00> : vector<16x32xf32>
    %178 = tpu.matmul %176, %177, %cst_69 {dimension_numbers = #tpu.dot_dimension_numbers<[1], [0], [0], [1], [0, 0, 1, 1], [], []>} : vector<16x32xbf16>, vector<32x32xbf16>, vector<16x32xf32> -> vector<16x32xf32>
    %c0_70 = arith.constant 0 : index
    %c0_71 = arith.constant 0 : index
    %179 = vector.load %arg7[%c0_70, %c0_71] : memref<1x32xf32, #tpu.memory_space<vmem>>, vector<1x32xf32>
    %180 = vector.broadcast %179 : vector<1x32xf32> to vector<16x32xf32>
    %181 = arith.addf %178, %180 : vector<16x32xf32>
    %182 = arith.addf %7, %181 : vector<16x32xf32>
    %c0_72 = arith.constant 0 : index
    %c0_73 = arith.constant 0 : index
    %183 = vector.load %arg8[%c0_72, %c0_73] : memref<1x32xf32, #tpu.memory_space<vmem>>, vector<1x32xf32>
    %c0_74 = arith.constant 0 : index
    %c0_75 = arith.constant 0 : index
    %184 = vector.load %arg9[%c0_74, %c0_75] : memref<1x32xf32, #tpu.memory_space<vmem>>, vector<1x32xf32>
    %cst_76 = arith.constant dense<0.000000e+00> : vector<16xf32>
    %185 = vector.multi_reduction <add>, %182, %cst_76 [1] : vector<16x32xf32> to vector<16xf32>
    %186 = vector.shape_cast %185 : vector<16xf32> to vector<16x1xf32>
    %cst_77 = arith.constant 3.200000e+01 : f32
    %187 = vector.broadcast %cst_77 : f32 to vector<16x1xf32>
    %188 = arith.divf %186, %187 : vector<16x1xf32>
    %189 = vector.broadcast %188 : vector<16x1xf32> to vector<16x32xf32>
    %190 = arith.subf %182, %189 : vector<16x32xf32>
    %191 = arith.mulf %190, %190 : vector<16x32xf32>
    %cst_78 = arith.constant dense<0.000000e+00> : vector<16xf32>
    %192 = vector.multi_reduction <add>, %191, %cst_78 [1] : vector<16x32xf32> to vector<16xf32>
    %193 = vector.shape_cast %192 : vector<16xf32> to vector<16x1xf32>
    %cst_79 = arith.constant 3.200000e+01 : f32
    %194 = vector.broadcast %cst_79 : f32 to vector<16x1xf32>
    %195 = arith.divf %193, %194 : vector<16x1xf32>
    %196 = vector.broadcast %188 : vector<16x1xf32> to vector<16x32xf32>
    %197 = arith.subf %182, %196 : vector<16x32xf32>
    %cst_80 = arith.constant 9.99999974E-6 : f32
    %198 = vector.broadcast %cst_80 : f32 to vector<16x1xf32>
    %199 = arith.addf %195, %198 : vector<16x1xf32>
    %200 = math.rsqrt %199 : vector<16x1xf32>
    %201 = vector.broadcast %200 : vector<16x1xf32> to vector<16x32xf32>
    %202 = arith.mulf %197, %201 : vector<16x32xf32>
    %203 = vector.broadcast %183 : vector<1x32xf32> to vector<16x32xf32>
    %204 = arith.mulf %202, %203 : vector<16x32xf32>
    %205 = vector.broadcast %184 : vector<1x32xf32> to vector<16x32xf32>
    %206 = arith.addf %204, %205 : vector<16x32xf32>
    %207 = arith.truncf %206 : vector<16x32xf32> to vector<16x32xbf16>
    %cst_81 = arith.constant 0.000000e+00 : f32
    %208 = vector.broadcast %cst_81 : f32 to vector<16x32xf32>
    %c0_82 = arith.constant 0 : index
    %c0_83 = arith.constant 0 : index
    %209 = vector.load %arg10[%c0_82, %c0_83] : memref<32x2048xbf16, #tpu.memory_space<vmem>>, vector<32x512xbf16>
    %cst_84 = arith.constant dense<0.000000e+00> : vector<16x512xf32>
    %210 = tpu.matmul %207, %209, %cst_84 {dimension_numbers = #tpu.dot_dimension_numbers<[1], [0], [0], [1], [0, 0, 1, 1], [], []>} : vector<16x32xbf16>, vector<32x512xbf16>, vector<16x512xf32> -> vector<16x512xf32>
    %c0_85 = arith.constant 0 : index
    %c0_86 = arith.constant 0 : index
    %211 = vector.load %arg11[%c0_85, %c0_86] : memref<1x2048xf32, #tpu.memory_space<vmem>>, vector<1x512xf32>
    %212 = vector.broadcast %211 : vector<1x512xf32> to vector<16x512xf32>
    %213 = arith.addf %210, %212 : vector<16x512xf32>
    %cst_87 = arith.constant 0.000000e+00 : f32
    %214 = vector.broadcast %cst_87 : f32 to vector<16x512xf32>
    %215 = arith.maximumf %213, %214 : vector<16x512xf32>
    %216 = arith.truncf %215 : vector<16x512xf32> to vector<16x512xbf16>
    %c0_88 = arith.constant 0 : index
    %c0_89 = arith.constant 0 : index
    %217 = vector.load %arg12[%c0_88, %c0_89] : memref<2048x32xbf16, #tpu.memory_space<vmem>>, vector<512x32xbf16>
    %cst_90 = arith.constant dense<0.000000e+00> : vector<16x32xf32>
    %218 = tpu.matmul %216, %217, %cst_90 {dimension_numbers = #tpu.dot_dimension_numbers<[1], [0], [0], [1], [0, 0, 1, 1], [], []>} : vector<16x512xbf16>, vector<512x32xbf16>, vector<16x32xf32> -> vector<16x32xf32>
    %219 = arith.addf %208, %218 : vector<16x32xf32>
    %c0_91 = arith.constant 0 : index
    %c512 = arith.constant 512 : index
    %220 = vector.load %arg10[%c0_91, %c512] : memref<32x2048xbf16, #tpu.memory_space<vmem>>, vector<32x512xbf16>
    %cst_92 = arith.constant dense<0.000000e+00> : vector<16x512xf32>
    %221 = tpu.matmul %207, %220, %cst_92 {dimension_numbers = #tpu.dot_dimension_numbers<[1], [0], [0], [1], [0, 0, 1, 1], [], []>} : vector<16x32xbf16>, vector<32x512xbf16>, vector<16x512xf32> -> vector<16x512xf32>
    %c0_93 = arith.constant 0 : index
    %c512_94 = arith.constant 512 : index
    %222 = vector.load %arg11[%c0_93, %c512_94] : memref<1x2048xf32, #tpu.memory_space<vmem>>, vector<1x512xf32>
    %223 = vector.broadcast %222 : vector<1x512xf32> to vector<16x512xf32>
    %224 = arith.addf %221, %223 : vector<16x512xf32>
    %cst_95 = arith.constant 0.000000e+00 : f32
    %225 = vector.broadcast %cst_95 : f32 to vector<16x512xf32>
    %226 = arith.maximumf %224, %225 : vector<16x512xf32>
    %227 = arith.truncf %226 : vector<16x512xf32> to vector<16x512xbf16>
    %c512_96 = arith.constant 512 : index
    %c0_97 = arith.constant 0 : index
    %228 = vector.load %arg12[%c512_96, %c0_97] : memref<2048x32xbf16, #tpu.memory_space<vmem>>, vector<512x32xbf16>
    %cst_98 = arith.constant dense<0.000000e+00> : vector<16x32xf32>
    %229 = tpu.matmul %227, %228, %cst_98 {dimension_numbers = #tpu.dot_dimension_numbers<[1], [0], [0], [1], [0, 0, 1, 1], [], []>} : vector<16x512xbf16>, vector<512x32xbf16>, vector<16x32xf32> -> vector<16x32xf32>
    %230 = arith.addf %219, %229 : vector<16x32xf32>
    %c0_99 = arith.constant 0 : index
    %c1024 = arith.constant 1024 : index
    %231 = vector.load %arg10[%c0_99, %c1024] : memref<32x2048xbf16, #tpu.memory_space<vmem>>, vector<32x512xbf16>
    %cst_100 = arith.constant dense<0.000000e+00> : vector<16x512xf32>
    %232 = tpu.matmul %207, %231, %cst_100 {dimension_numbers = #tpu.dot_dimension_numbers<[1], [0], [0], [1], [0, 0, 1, 1], [], []>} : vector<16x32xbf16>, vector<32x512xbf16>, vector<16x512xf32> -> vector<16x512xf32>
    %c0_101 = arith.constant 0 : index
    %c1024_102 = arith.constant 1024 : index
    %233 = vector.load %arg11[%c0_101, %c1024_102] : memref<1x2048xf32, #tpu.memory_space<vmem>>, vector<1x512xf32>
    %234 = vector.broadcast %233 : vector<1x512xf32> to vector<16x512xf32>
    %235 = arith.addf %232, %234 : vector<16x512xf32>
    %cst_103 = arith.constant 0.000000e+00 : f32
    %236 = vector.broadcast %cst_103 : f32 to vector<16x512xf32>
    %237 = arith.maximumf %235, %236 : vector<16x512xf32>
    %238 = arith.truncf %237 : vector<16x512xf32> to vector<16x512xbf16>
    %c1024_104 = arith.constant 1024 : index
    %c0_105 = arith.constant 0 : index
    %239 = vector.load %arg12[%c1024_104, %c0_105] : memref<2048x32xbf16, #tpu.memory_space<vmem>>, vector<512x32xbf16>
    %cst_106 = arith.constant dense<0.000000e+00> : vector<16x32xf32>
    %240 = tpu.matmul %238, %239, %cst_106 {dimension_numbers = #tpu.dot_dimension_numbers<[1], [0], [0], [1], [0, 0, 1, 1], [], []>} : vector<16x512xbf16>, vector<512x32xbf16>, vector<16x32xf32> -> vector<16x32xf32>
    %241 = arith.addf %230, %240 : vector<16x32xf32>
    %c0_107 = arith.constant 0 : index
    %c1536 = arith.constant 1536 : index
    %242 = vector.load %arg10[%c0_107, %c1536] : memref<32x2048xbf16, #tpu.memory_space<vmem>>, vector<32x512xbf16>
    %cst_108 = arith.constant dense<0.000000e+00> : vector<16x512xf32>
    %243 = tpu.matmul %207, %242, %cst_108 {dimension_numbers = #tpu.dot_dimension_numbers<[1], [0], [0], [1], [0, 0, 1, 1], [], []>} : vector<16x32xbf16>, vector<32x512xbf16>, vector<16x512xf32> -> vector<16x512xf32>
    %c0_109 = arith.constant 0 : index
    %c1536_110 = arith.constant 1536 : index
    %244 = vector.load %arg11[%c0_109, %c1536_110] : memref<1x2048xf32, #tpu.memory_space<vmem>>, vector<1x512xf32>
    %245 = vector.broadcast %244 : vector<1x512xf32> to vector<16x512xf32>
    %246 = arith.addf %243, %245 : vector<16x512xf32>
    %cst_111 = arith.constant 0.000000e+00 : f32
    %247 = vector.broadcast %cst_111 : f32 to vector<16x512xf32>
    %248 = arith.maximumf %246, %247 : vector<16x512xf32>
    %249 = arith.truncf %248 : vector<16x512xf32> to vector<16x512xbf16>
    %c1536_112 = arith.constant 1536 : index
    %c0_113 = arith.constant 0 : index
    %250 = vector.load %arg12[%c1536_112, %c0_113] : memref<2048x32xbf16, #tpu.memory_space<vmem>>, vector<512x32xbf16>
    %cst_114 = arith.constant dense<0.000000e+00> : vector<16x32xf32>
    %251 = tpu.matmul %249, %250, %cst_114 {dimension_numbers = #tpu.dot_dimension_numbers<[1], [0], [0], [1], [0, 0, 1, 1], [], []>} : vector<16x512xbf16>, vector<512x32xbf16>, vector<16x32xf32> -> vector<16x32xf32>
    %252 = arith.addf %241, %251 : vector<16x32xf32>
    %253 = arith.addf %206, %252 : vector<16x32xf32>
    %c0_115 = arith.constant 0 : index
    %c0_116 = arith.constant 0 : index
    %254 = vector.load %arg13[%c0_115, %c0_116] : memref<1x32xf32, #tpu.memory_space<vmem>>, vector<1x32xf32>
    %255 = vector.broadcast %254 : vector<1x32xf32> to vector<16x32xf32>
    %256 = arith.addf %253, %255 : vector<16x32xf32>
    %c0_117 = arith.constant 0 : index
    %c0_118 = arith.constant 0 : index
    %257 = vector.load %arg14[%c0_117, %c0_118] : memref<1x32xf32, #tpu.memory_space<vmem>>, vector<1x32xf32>
    %c0_119 = arith.constant 0 : index
    %c0_120 = arith.constant 0 : index
    %258 = vector.load %arg15[%c0_119, %c0_120] : memref<1x32xf32, #tpu.memory_space<vmem>>, vector<1x32xf32>
    %cst_121 = arith.constant dense<0.000000e+00> : vector<16xf32>
    %259 = vector.multi_reduction <add>, %256, %cst_121 [1] : vector<16x32xf32> to vector<16xf32>
    %260 = vector.shape_cast %259 : vector<16xf32> to vector<16x1xf32>
    %cst_122 = arith.constant 3.200000e+01 : f32
    %261 = vector.broadcast %cst_122 : f32 to vector<16x1xf32>
    %262 = arith.divf %260, %261 : vector<16x1xf32>
    %263 = vector.broadcast %262 : vector<16x1xf32> to vector<16x32xf32>
    %264 = arith.subf %256, %263 : vector<16x32xf32>
    %265 = arith.mulf %264, %264 : vector<16x32xf32>
    %cst_123 = arith.constant dense<0.000000e+00> : vector<16xf32>
    %266 = vector.multi_reduction <add>, %265, %cst_123 [1] : vector<16x32xf32> to vector<16xf32>
    %267 = vector.shape_cast %266 : vector<16xf32> to vector<16x1xf32>
    %cst_124 = arith.constant 3.200000e+01 : f32
    %268 = vector.broadcast %cst_124 : f32 to vector<16x1xf32>
    %269 = arith.divf %267, %268 : vector<16x1xf32>
    %270 = vector.broadcast %262 : vector<16x1xf32> to vector<16x32xf32>
    %271 = arith.subf %256, %270 : vector<16x32xf32>
    %cst_125 = arith.constant 9.99999974E-6 : f32
    %272 = vector.broadcast %cst_125 : f32 to vector<16x1xf32>
    %273 = arith.addf %269, %272 : vector<16x1xf32>
    %274 = math.rsqrt %273 : vector<16x1xf32>
    %275 = vector.broadcast %274 : vector<16x1xf32> to vector<16x32xf32>
    %276 = arith.mulf %271, %275 : vector<16x32xf32>
    %277 = vector.broadcast %257 : vector<1x32xf32> to vector<16x32xf32>
    %278 = arith.mulf %276, %277 : vector<16x32xf32>
    %279 = vector.broadcast %258 : vector<1x32xf32> to vector<16x32xf32>
    %280 = arith.addf %278, %279 : vector<16x32xf32>
    %281 = arith.truncf %280 : vector<16x32xf32> to vector<16x32xbf16>
    %c0_126 = arith.constant 0 : index
    %c0_127 = arith.constant 0 : index
    %282 = vector.load %arg16[%c0_126, %c0_127] : memref<32x128xbf16, #tpu.memory_space<vmem>>, vector<32x128xbf16>
    %cst_128 = arith.constant dense<0.000000e+00> : vector<16x128xf32>
    %283 = tpu.matmul %281, %282, %cst_128 {dimension_numbers = #tpu.dot_dimension_numbers<[1], [0], [0], [1], [0, 0, 1, 1], [], []>} : vector<16x32xbf16>, vector<32x128xbf16>, vector<16x128xf32> -> vector<16x128xf32>
    %c0_129 = arith.constant 0 : index
    %c0_130 = arith.constant 0 : index
    %284 = vector.load %arg17[%c0_129, %c0_130] : memref<1x128xf32, #tpu.memory_space<vmem>>, vector<1x128xf32>
    %285 = vector.broadcast %284 : vector<1x128xf32> to vector<16x128xf32>
    %286 = arith.addf %283, %285 : vector<16x128xf32>
    %287 = vector.extract_strided_slice %286 {offsets = [0, 0], sizes = [16, 32], strides = [1, 1]} : vector<16x128xf32> to vector<16x32xf32>
    %288 = vector.extract_strided_slice %286 {offsets = [0, 32], sizes = [16, 32], strides = [1, 1]} : vector<16x128xf32> to vector<16x32xf32>
    %289 = vector.extract_strided_slice %286 {offsets = [0, 64], sizes = [16, 32], strides = [1, 1]} : vector<16x128xf32> to vector<16x32xf32>
    %290 = vector.extract_strided_slice %287 {offsets = [0, 0], sizes = [8, 32], strides = [1, 1]} : vector<16x32xf32> to vector<8x32xf32>
    %291 = vector.extract_strided_slice %288 {offsets = [0, 0], sizes = [8, 32], strides = [1, 1]} : vector<16x32xf32> to vector<8x32xf32>
    %292 = vector.extract_strided_slice %289 {offsets = [0, 0], sizes = [8, 32], strides = [1, 1]} : vector<16x32xf32> to vector<8x32xf32>
    %293 = vector.extract_strided_slice %290 {offsets = [0, 0], sizes = [8, 8], strides = [1, 1]} : vector<8x32xf32> to vector<8x8xf32>
    %294 = vector.extract_strided_slice %291 {offsets = [0, 0], sizes = [8, 8], strides = [1, 1]} : vector<8x32xf32> to vector<8x8xf32>
    %295 = vector.extract_strided_slice %292 {offsets = [0, 0], sizes = [8, 8], strides = [1, 1]} : vector<8x32xf32> to vector<8x8xf32>
    %296 = tpu.transpose %294, [1, 0] : vector<8x8xf32> -> vector<8x8xf32>
    %cst_131 = arith.constant dense<0.000000e+00> : vector<8x8xf32>
    %297 = tpu.matmul %293, %296, %cst_131 {dimension_numbers = #tpu.dot_dimension_numbers<[1], [0], [0], [1], [0, 0, 1, 1], [], []>} : vector<8x8xf32>, vector<8x8xf32>, vector<8x8xf32> -> vector<8x8xf32>
    %cst_132 = arith.constant 0.353553385 : f32
    %298 = vector.broadcast %cst_132 : f32 to vector<8x8xf32>
    %299 = arith.mulf %297, %298 : vector<8x8xf32>
    %cst_133 = arith.constant dense<0xFF800000> : vector<8xf32>
    %300 = vector.multi_reduction <maximumf>, %299, %cst_133 [1] : vector<8x8xf32> to vector<8xf32>
    %301 = vector.shape_cast %300 : vector<8xf32> to vector<8x1xf32>
    %302 = vector.broadcast %301 : vector<8x1xf32> to vector<8x8xf32>
    %303 = arith.subf %299, %302 : vector<8x8xf32>
    %304 = math.exp %303 : vector<8x8xf32>
    %cst_134 = arith.constant dense<0.000000e+00> : vector<8xf32>
    %305 = vector.multi_reduction <add>, %304, %cst_134 [1] : vector<8x8xf32> to vector<8xf32>
    %306 = vector.shape_cast %305 : vector<8xf32> to vector<8x1xf32>
    %307 = tpu.reciprocal %306 {approx = true} : vector<8x1xf32> -> vector<8x1xf32>
    %308 = vector.broadcast %307 : vector<8x1xf32> to vector<8x8xf32>
    %309 = arith.mulf %304, %308 : vector<8x8xf32>
    %cst_135 = arith.constant dense<0.000000e+00> : vector<8x8xf32>
    %310 = tpu.matmul %309, %295, %cst_135 {dimension_numbers = #tpu.dot_dimension_numbers<[1], [0], [0], [1], [0, 0, 1, 1], [], []>} : vector<8x8xf32>, vector<8x8xf32>, vector<8x8xf32> -> vector<8x8xf32>
    %c0_136 = arith.constant 0 : index
    %c0_137 = arith.constant 0 : index
    %311 = vector.load %arg33[%c0_136, %c0_137] : memref<16x32xf32, #tpu.memory_space<vmem>>, vector<8x8xf32>
    tpu.vector_store %arg33[%c0_136, %c0_137], %310 {strides = array<i32>} : memref<16x32xf32, #tpu.memory_space<vmem>>, vector<8x8xf32>,
    %312 = vector.extract_strided_slice %290 {offsets = [0, 8], sizes = [8, 8], strides = [1, 1]} : vector<8x32xf32> to vector<8x8xf32>
    %313 = vector.extract_strided_slice %291 {offsets = [0, 8], sizes = [8, 8], strides = [1, 1]} : vector<8x32xf32> to vector<8x8xf32>
    %314 = vector.extract_strided_slice %292 {offsets = [0, 8], sizes = [8, 8], strides = [1, 1]} : vector<8x32xf32> to vector<8x8xf32>
    %315 = tpu.transpose %313, [1, 0] : vector<8x8xf32> -> vector<8x8xf32>
    %cst_138 = arith.constant dense<0.000000e+00> : vector<8x8xf32>
    %316 = tpu.matmul %312, %315, %cst_138 {dimension_numbers = #tpu.dot_dimension_numbers<[1], [0], [0], [1], [0, 0, 1, 1], [], []>} : vector<8x8xf32>, vector<8x8xf32>, vector<8x8xf32> -> vector<8x8xf32>
    %cst_139 = arith.constant 0.353553385 : f32
    %317 = vector.broadcast %cst_139 : f32 to vector<8x8xf32>
    %318 = arith.mulf %316, %317 : vector<8x8xf32>
    %cst_140 = arith.constant dense<0xFF800000> : vector<8xf32>
    %319 = vector.multi_reduction <maximumf>, %318, %cst_140 [1] : vector<8x8xf32> to vector<8xf32>
    %320 = vector.shape_cast %319 : vector<8xf32> to vector<8x1xf32>
    %321 = vector.broadcast %320 : vector<8x1xf32> to vector<8x8xf32>
    %322 = arith.subf %318, %321 : vector<8x8xf32>
    %323 = math.exp %322 : vector<8x8xf32>
    %cst_141 = arith.constant dense<0.000000e+00> : vector<8xf32>
    %324 = vector.multi_reduction <add>, %323, %cst_141 [1] : vector<8x8xf32> to vector<8xf32>
    %325 = vector.shape_cast %324 : vector<8xf32> to vector<8x1xf32>
    %326 = tpu.reciprocal %325 {approx = true} : vector<8x1xf32> -> vector<8x1xf32>
    %327 = vector.broadcast %326 : vector<8x1xf32> to vector<8x8xf32>
    %328 = arith.mulf %323, %327 : vector<8x8xf32>
    %cst_142 = arith.constant dense<0.000000e+00> : vector<8x8xf32>
    %329 = tpu.matmul %328, %314, %cst_142 {dimension_numbers = #tpu.dot_dimension_numbers<[1], [0], [0], [1], [0, 0, 1, 1], [], []>} : vector<8x8xf32>, vector<8x8xf32>, vector<8x8xf32> -> vector<8x8xf32>
    %c0_143 = arith.constant 0 : index
    %c8_144 = arith.constant 8 : index
    %330 = vector.load %arg33[%c0_143, %c8_144] : memref<16x32xf32, #tpu.memory_space<vmem>>, vector<8x8xf32>
    tpu.vector_store %arg33[%c0_143, %c8_144], %329 {strides = array<i32>} : memref<16x32xf32, #tpu.memory_space<vmem>>, vector<8x8xf32>,
    %331 = vector.extract_strided_slice %290 {offsets = [0, 16], sizes = [8, 8], strides = [1, 1]} : vector<8x32xf32> to vector<8x8xf32>
    %332 = vector.extract_strided_slice %291 {offsets = [0, 16], sizes = [8, 8], strides = [1, 1]} : vector<8x32xf32> to vector<8x8xf32>
    %333 = vector.extract_strided_slice %292 {offsets = [0, 16], sizes = [8, 8], strides = [1, 1]} : vector<8x32xf32> to vector<8x8xf32>
    %334 = tpu.transpose %332, [1, 0] : vector<8x8xf32> -> vector<8x8xf32>
    %cst_145 = arith.constant dense<0.000000e+00> : vector<8x8xf32>
    %335 = tpu.matmul %331, %334, %cst_145 {dimension_numbers = #tpu.dot_dimension_numbers<[1], [0], [0], [1], [0, 0, 1, 1], [], []>} : vector<8x8xf32>, vector<8x8xf32>, vector<8x8xf32> -> vector<8x8xf32>
    %cst_146 = arith.constant 0.353553385 : f32
    %336 = vector.broadcast %cst_146 : f32 to vector<8x8xf32>
    %337 = arith.mulf %335, %336 : vector<8x8xf32>
    %cst_147 = arith.constant dense<0xFF800000> : vector<8xf32>
    %338 = vector.multi_reduction <maximumf>, %337, %cst_147 [1] : vector<8x8xf32> to vector<8xf32>
    %339 = vector.shape_cast %338 : vector<8xf32> to vector<8x1xf32>
    %340 = vector.broadcast %339 : vector<8x1xf32> to vector<8x8xf32>
    %341 = arith.subf %337, %340 : vector<8x8xf32>
    %342 = math.exp %341 : vector<8x8xf32>
    %cst_148 = arith.constant dense<0.000000e+00> : vector<8xf32>
    %343 = vector.multi_reduction <add>, %342, %cst_148 [1] : vector<8x8xf32> to vector<8xf32>
    %344 = vector.shape_cast %343 : vector<8xf32> to vector<8x1xf32>
    %345 = tpu.reciprocal %344 {approx = true} : vector<8x1xf32> -> vector<8x1xf32>
    %346 = vector.broadcast %345 : vector<8x1xf32> to vector<8x8xf32>
    %347 = arith.mulf %342, %346 : vector<8x8xf32>
    %cst_149 = arith.constant dense<0.000000e+00> : vector<8x8xf32>
    %348 = tpu.matmul %347, %333, %cst_149 {dimension_numbers = #tpu.dot_dimension_numbers<[1], [0], [0], [1], [0, 0, 1, 1], [], []>} : vector<8x8xf32>, vector<8x8xf32>, vector<8x8xf32> -> vector<8x8xf32>
    %c0_150 = arith.constant 0 : index
    %c16_151 = arith.constant 16 : index
    %349 = vector.load %arg33[%c0_150, %c16_151] : memref<16x32xf32, #tpu.memory_space<vmem>>, vector<8x8xf32>
    tpu.vector_store %arg33[%c0_150, %c16_151], %348 {strides = array<i32>} : memref<16x32xf32, #tpu.memory_space<vmem>>, vector<8x8xf32>,
    %350 = vector.extract_strided_slice %290 {offsets = [0, 24], sizes = [8, 8], strides = [1, 1]} : vector<8x32xf32> to vector<8x8xf32>
    %351 = vector.extract_strided_slice %291 {offsets = [0, 24], sizes = [8, 8], strides = [1, 1]} : vector<8x32xf32> to vector<8x8xf32>
    %352 = vector.extract_strided_slice %292 {offsets = [0, 24], sizes = [8, 8], strides = [1, 1]} : vector<8x32xf32> to vector<8x8xf32>
    %353 = tpu.transpose %351, [1, 0] : vector<8x8xf32> -> vector<8x8xf32>
    %cst_152 = arith.constant dense<0.000000e+00> : vector<8x8xf32>
    %354 = tpu.matmul %350, %353, %cst_152 {dimension_numbers = #tpu.dot_dimension_numbers<[1], [0], [0], [1], [0, 0, 1, 1], [], []>} : vector<8x8xf32>, vector<8x8xf32>, vector<8x8xf32> -> vector<8x8xf32>
    %cst_153 = arith.constant 0.353553385 : f32
    %355 = vector.broadcast %cst_153 : f32 to vector<8x8xf32>
    %356 = arith.mulf %354, %355 : vector<8x8xf32>
    %cst_154 = arith.constant dense<0xFF800000> : vector<8xf32>
    %357 = vector.multi_reduction <maximumf>, %356, %cst_154 [1] : vector<8x8xf32> to vector<8xf32>
    %358 = vector.shape_cast %357 : vector<8xf32> to vector<8x1xf32>
    %359 = vector.broadcast %358 : vector<8x1xf32> to vector<8x8xf32>
    %360 = arith.subf %356, %359 : vector<8x8xf32>
    %361 = math.exp %360 : vector<8x8xf32>
    %cst_155 = arith.constant dense<0.000000e+00> : vector<8xf32>
    %362 = vector.multi_reduction <add>, %361, %cst_155 [1] : vector<8x8xf32> to vector<8xf32>
    %363 = vector.shape_cast %362 : vector<8xf32> to vector<8x1xf32>
    %364 = tpu.reciprocal %363 {approx = true} : vector<8x1xf32> -> vector<8x1xf32>
    %365 = vector.broadcast %364 : vector<8x1xf32> to vector<8x8xf32>
    %366 = arith.mulf %361, %365 : vector<8x8xf32>
    %cst_156 = arith.constant dense<0.000000e+00> : vector<8x8xf32>
    %367 = tpu.matmul %366, %352, %cst_156 {dimension_numbers = #tpu.dot_dimension_numbers<[1], [0], [0], [1], [0, 0, 1, 1], [], []>} : vector<8x8xf32>, vector<8x8xf32>, vector<8x8xf32> -> vector<8x8xf32>
    %c0_157 = arith.constant 0 : index
    %c24_158 = arith.constant 24 : index
    %368 = vector.load %arg33[%c0_157, %c24_158] : memref<16x32xf32, #tpu.memory_space<vmem>>, vector<8x8xf32>
    tpu.vector_store %arg33[%c0_157, %c24_158], %367 {strides = array<i32>} : memref<16x32xf32, #tpu.memory_space<vmem>>, vector<8x8xf32>,
    %369 = vector.extract_strided_slice %287 {offsets = [8, 0], sizes = [8, 32], strides = [1, 1]} : vector<16x32xf32> to vector<8x32xf32>
    %370 = vector.extract_strided_slice %288 {offsets = [8, 0], sizes = [8, 32], strides = [1, 1]} : vector<16x32xf32> to vector<8x32xf32>
    %371 = vector.extract_strided_slice %289 {offsets = [8, 0], sizes = [8, 32], strides = [1, 1]} : vector<16x32xf32> to vector<8x32xf32>
    %372 = vector.extract_strided_slice %369 {offsets = [0, 0], sizes = [8, 8], strides = [1, 1]} : vector<8x32xf32> to vector<8x8xf32>
    %373 = vector.extract_strided_slice %370 {offsets = [0, 0], sizes = [8, 8], strides = [1, 1]} : vector<8x32xf32> to vector<8x8xf32>
    %374 = vector.extract_strided_slice %371 {offsets = [0, 0], sizes = [8, 8], strides = [1, 1]} : vector<8x32xf32> to vector<8x8xf32>
    %375 = tpu.transpose %373, [1, 0] : vector<8x8xf32> -> vector<8x8xf32>
    %cst_159 = arith.constant dense<0.000000e+00> : vector<8x8xf32>
    %376 = tpu.matmul %372, %375, %cst_159 {dimension_numbers = #tpu.dot_dimension_numbers<[1], [0], [0], [1], [0, 0, 1, 1], [], []>} : vector<8x8xf32>, vector<8x8xf32>, vector<8x8xf32> -> vector<8x8xf32>
    %cst_160 = arith.constant 0.353553385 : f32
    %377 = vector.broadcast %cst_160 : f32 to vector<8x8xf32>
    %378 = arith.mulf %376, %377 : vector<8x8xf32>
    %cst_161 = arith.constant dense<0xFF800000> : vector<8xf32>
    %379 = vector.multi_reduction <maximumf>, %378, %cst_161 [1] : vector<8x8xf32> to vector<8xf32>
    %380 = vector.shape_cast %379 : vector<8xf32> to vector<8x1xf32>
    %381 = vector.broadcast %380 : vector<8x1xf32> to vector<8x8xf32>
    %382 = arith.subf %378, %381 : vector<8x8xf32>
    %383 = math.exp %382 : vector<8x8xf32>
    %cst_162 = arith.constant dense<0.000000e+00> : vector<8xf32>
    %384 = vector.multi_reduction <add>, %383, %cst_162 [1] : vector<8x8xf32> to vector<8xf32>
    %385 = vector.shape_cast %384 : vector<8xf32> to vector<8x1xf32>
    %386 = tpu.reciprocal %385 {approx = true} : vector<8x1xf32> -> vector<8x1xf32>
    %387 = vector.broadcast %386 : vector<8x1xf32> to vector<8x8xf32>
    %388 = arith.mulf %383, %387 : vector<8x8xf32>
    %cst_163 = arith.constant dense<0.000000e+00> : vector<8x8xf32>
    %389 = tpu.matmul %388, %374, %cst_163 {dimension_numbers = #tpu.dot_dimension_numbers<[1], [0], [0], [1], [0, 0, 1, 1], [], []>} : vector<8x8xf32>, vector<8x8xf32>, vector<8x8xf32> -> vector<8x8xf32>
    %c8_164 = arith.constant 8 : index
    %c0_165 = arith.constant 0 : index
    %390 = vector.load %arg33[%c8_164, %c0_165] : memref<16x32xf32, #tpu.memory_space<vmem>>, vector<8x8xf32>
    tpu.vector_store %arg33[%c8_164, %c0_165], %389 {strides = array<i32>} : memref<16x32xf32, #tpu.memory_space<vmem>>, vector<8x8xf32>,
    %391 = vector.extract_strided_slice %369 {offsets = [0, 8], sizes = [8, 8], strides = [1, 1]} : vector<8x32xf32> to vector<8x8xf32>
    %392 = vector.extract_strided_slice %370 {offsets = [0, 8], sizes = [8, 8], strides = [1, 1]} : vector<8x32xf32> to vector<8x8xf32>
    %393 = vector.extract_strided_slice %371 {offsets = [0, 8], sizes = [8, 8], strides = [1, 1]} : vector<8x32xf32> to vector<8x8xf32>
    %394 = tpu.transpose %392, [1, 0] : vector<8x8xf32> -> vector<8x8xf32>
    %cst_166 = arith.constant dense<0.000000e+00> : vector<8x8xf32>
    %395 = tpu.matmul %391, %394, %cst_166 {dimension_numbers = #tpu.dot_dimension_numbers<[1], [0], [0], [1], [0, 0, 1, 1], [], []>} : vector<8x8xf32>, vector<8x8xf32>, vector<8x8xf32> -> vector<8x8xf32>
    %cst_167 = arith.constant 0.353553385 : f32
    %396 = vector.broadcast %cst_167 : f32 to vector<8x8xf32>
    %397 = arith.mulf %395, %396 : vector<8x8xf32>
    %cst_168 = arith.constant dense<0xFF800000> : vector<8xf32>
    %398 = vector.multi_reduction <maximumf>, %397, %cst_168 [1] : vector<8x8xf32> to vector<8xf32>
    %399 = vector.shape_cast %398 : vector<8xf32> to vector<8x1xf32>
    %400 = vector.broadcast %399 : vector<8x1xf32> to vector<8x8xf32>
    %401 = arith.subf %397, %400 : vector<8x8xf32>
    %402 = math.exp %401 : vector<8x8xf32>
    %cst_169 = arith.constant dense<0.000000e+00> : vector<8xf32>
    %403 = vector.multi_reduction <add>, %402, %cst_169 [1] : vector<8x8xf32> to vector<8xf32>
    %404 = vector.shape_cast %403 : vector<8xf32> to vector<8x1xf32>
    %405 = tpu.reciprocal %404 {approx = true} : vector<8x1xf32> -> vector<8x1xf32>
    %406 = vector.broadcast %405 : vector<8x1xf32> to vector<8x8xf32>
    %407 = arith.mulf %402, %406 : vector<8x8xf32>
    %cst_170 = arith.constant dense<0.000000e+00> : vector<8x8xf32>
    %408 = tpu.matmul %407, %393, %cst_170 {dimension_numbers = #tpu.dot_dimension_numbers<[1], [0], [0], [1], [0, 0, 1, 1], [], []>} : vector<8x8xf32>, vector<8x8xf32>, vector<8x8xf32> -> vector<8x8xf32>
    %c8_171 = arith.constant 8 : index
    %c8_172 = arith.constant 8 : index
    %409 = vector.load %arg33[%c8_171, %c8_172] : memref<16x32xf32, #tpu.memory_space<vmem>>, vector<8x8xf32>
    tpu.vector_store %arg33[%c8_171, %c8_172], %408 {strides = array<i32>} : memref<16x32xf32, #tpu.memory_space<vmem>>, vector<8x8xf32>,
    %410 = vector.extract_strided_slice %369 {offsets = [0, 16], sizes = [8, 8], strides = [1, 1]} : vector<8x32xf32> to vector<8x8xf32>
    %411 = vector.extract_strided_slice %370 {offsets = [0, 16], sizes = [8, 8], strides = [1, 1]} : vector<8x32xf32> to vector<8x8xf32>
    %412 = vector.extract_strided_slice %371 {offsets = [0, 16], sizes = [8, 8], strides = [1, 1]} : vector<8x32xf32> to vector<8x8xf32>
    %413 = tpu.transpose %411, [1, 0] : vector<8x8xf32> -> vector<8x8xf32>
    %cst_173 = arith.constant dense<0.000000e+00> : vector<8x8xf32>
    %414 = tpu.matmul %410, %413, %cst_173 {dimension_numbers = #tpu.dot_dimension_numbers<[1], [0], [0], [1], [0, 0, 1, 1], [], []>} : vector<8x8xf32>, vector<8x8xf32>, vector<8x8xf32> -> vector<8x8xf32>
    %cst_174 = arith.constant 0.353553385 : f32
    %415 = vector.broadcast %cst_174 : f32 to vector<8x8xf32>
    %416 = arith.mulf %414, %415 : vector<8x8xf32>
    %cst_175 = arith.constant dense<0xFF800000> : vector<8xf32>
    %417 = vector.multi_reduction <maximumf>, %416, %cst_175 [1] : vector<8x8xf32> to vector<8xf32>
    %418 = vector.shape_cast %417 : vector<8xf32> to vector<8x1xf32>
    %419 = vector.broadcast %418 : vector<8x1xf32> to vector<8x8xf32>
    %420 = arith.subf %416, %419 : vector<8x8xf32>
    %421 = math.exp %420 : vector<8x8xf32>
    %cst_176 = arith.constant dense<0.000000e+00> : vector<8xf32>
    %422 = vector.multi_reduction <add>, %421, %cst_176 [1] : vector<8x8xf32> to vector<8xf32>
    %423 = vector.shape_cast %422 : vector<8xf32> to vector<8x1xf32>
    %424 = tpu.reciprocal %423 {approx = true} : vector<8x1xf32> -> vector<8x1xf32>
    %425 = vector.broadcast %424 : vector<8x1xf32> to vector<8x8xf32>
    %426 = arith.mulf %421, %425 : vector<8x8xf32>
    %cst_177 = arith.constant dense<0.000000e+00> : vector<8x8xf32>
    %427 = tpu.matmul %426, %412, %cst_177 {dimension_numbers = #tpu.dot_dimension_numbers<[1], [0], [0], [1], [0, 0, 1, 1], [], []>} : vector<8x8xf32>, vector<8x8xf32>, vector<8x8xf32> -> vector<8x8xf32>
    %c8_178 = arith.constant 8 : index
    %c16_179 = arith.constant 16 : index
    %428 = vector.load %arg33[%c8_178, %c16_179] : memref<16x32xf32, #tpu.memory_space<vmem>>, vector<8x8xf32>
    tpu.vector_store %arg33[%c8_178, %c16_179], %427 {strides = array<i32>} : memref<16x32xf32, #tpu.memory_space<vmem>>, vector<8x8xf32>,
    %429 = vector.extract_strided_slice %369 {offsets = [0, 24], sizes = [8, 8], strides = [1, 1]} : vector<8x32xf32> to vector<8x8xf32>
    %430 = vector.extract_strided_slice %370 {offsets = [0, 24], sizes = [8, 8], strides = [1, 1]} : vector<8x32xf32> to vector<8x8xf32>
    %431 = vector.extract_strided_slice %371 {offsets = [0, 24], sizes = [8, 8], strides = [1, 1]} : vector<8x32xf32> to vector<8x8xf32>
    %432 = tpu.transpose %430, [1, 0] : vector<8x8xf32> -> vector<8x8xf32>
    %cst_180 = arith.constant dense<0.000000e+00> : vector<8x8xf32>
    %433 = tpu.matmul %429, %432, %cst_180 {dimension_numbers = #tpu.dot_dimension_numbers<[1], [0], [0], [1], [0, 0, 1, 1], [], []>} : vector<8x8xf32>, vector<8x8xf32>, vector<8x8xf32> -> vector<8x8xf32>
    %cst_181 = arith.constant 0.353553385 : f32
    %434 = vector.broadcast %cst_181 : f32 to vector<8x8xf32>
    %435 = arith.mulf %433, %434 : vector<8x8xf32>
    %cst_182 = arith.constant dense<0xFF800000> : vector<8xf32>
    %436 = vector.multi_reduction <maximumf>, %435, %cst_182 [1] : vector<8x8xf32> to vector<8xf32>
    %437 = vector.shape_cast %436 : vector<8xf32> to vector<8x1xf32>
    %438 = vector.broadcast %437 : vector<8x1xf32> to vector<8x8xf32>
    %439 = arith.subf %435, %438 : vector<8x8xf32>
    %440 = math.exp %439 : vector<8x8xf32>
    %cst_183 = arith.constant dense<0.000000e+00> : vector<8xf32>
    %441 = vector.multi_reduction <add>, %440, %cst_183 [1] : vector<8x8xf32> to vector<8xf32>
    %442 = vector.shape_cast %441 : vector<8xf32> to vector<8x1xf32>
    %443 = tpu.reciprocal %442 {approx = true} : vector<8x1xf32> -> vector<8x1xf32>
    %444 = vector.broadcast %443 : vector<8x1xf32> to vector<8x8xf32>
    %445 = arith.mulf %440, %444 : vector<8x8xf32>
    %cst_184 = arith.constant dense<0.000000e+00> : vector<8x8xf32>
    %446 = tpu.matmul %445, %431, %cst_184 {dimension_numbers = #tpu.dot_dimension_numbers<[1], [0], [0], [1], [0, 0, 1, 1], [], []>} : vector<8x8xf32>, vector<8x8xf32>, vector<8x8xf32> -> vector<8x8xf32>
    %c8_185 = arith.constant 8 : index
    %c24_186 = arith.constant 24 : index
    %447 = vector.load %arg33[%c8_185, %c24_186] : memref<16x32xf32, #tpu.memory_space<vmem>>, vector<8x8xf32>
    tpu.vector_store %arg33[%c8_185, %c24_186], %446 {strides = array<i32>} : memref<16x32xf32, #tpu.memory_space<vmem>>, vector<8x8xf32>,
    %c0_187 = arith.constant 0 : index
    %c0_188 = arith.constant 0 : index
    %448 = vector.load %arg33[%c0_187, %c0_188] : memref<16x32xf32, #tpu.memory_space<vmem>>, vector<16x32xf32>
    %449 = arith.truncf %448 : vector<16x32xf32> to vector<16x32xbf16>
    %c0_189 = arith.constant 0 : index
    %c0_190 = arith.constant 0 : index
    %450 = vector.load %arg18[%c0_189, %c0_190] : memref<32x32xbf16, #tpu.memory_space<vmem>>, vector<32x32xbf16>
    %cst_191 = arith.constant dense<0.000000e+00> : vector<16x32xf32>
    %451 = tpu.matmul %449, %450, %cst_191 {dimension_numbers = #tpu.dot_dimension_numbers<[1], [0], [0], [1], [0, 0, 1, 1], [], []>} : vector<16x32xbf16>, vector<32x32xbf16>, vector<16x32xf32> -> vector<16x32xf32>
    %c0_192 = arith.constant 0 : index
    %c0_193 = arith.constant 0 : index
    %452 = vector.load %arg19[%c0_192, %c0_193] : memref<1x32xf32, #tpu.memory_space<vmem>>, vector<1x32xf32>
    %453 = vector.broadcast %452 : vector<1x32xf32> to vector<16x32xf32>
    %454 = arith.addf %451, %453 : vector<16x32xf32>
    %455 = arith.addf %280, %454 : vector<16x32xf32>
    %c0_194 = arith.constant 0 : index
    %c0_195 = arith.constant 0 : index
    %456 = vector.load %arg20[%c0_194, %c0_195] : memref<1x32xf32, #tpu.memory_space<vmem>>, vector<1x32xf32>
    %c0_196 = arith.constant 0 : index
    %c0_197 = arith.constant 0 : index
    %457 = vector.load %arg21[%c0_196, %c0_197] : memref<1x32xf32, #tpu.memory_space<vmem>>, vector<1x32xf32>
    %cst_198 = arith.constant dense<0.000000e+00> : vector<16xf32>
    %458 = vector.multi_reduction <add>, %455, %cst_198 [1] : vector<16x32xf32> to vector<16xf32>
    %459 = vector.shape_cast %458 : vector<16xf32> to vector<16x1xf32>
    %cst_199 = arith.constant 3.200000e+01 : f32
    %460 = vector.broadcast %cst_199 : f32 to vector<16x1xf32>
    %461 = arith.divf %459, %460 : vector<16x1xf32>
    %462 = vector.broadcast %461 : vector<16x1xf32> to vector<16x32xf32>
    %463 = arith.subf %455, %462 : vector<16x32xf32>
    %464 = arith.mulf %463, %463 : vector<16x32xf32>
    %cst_200 = arith.constant dense<0.000000e+00> : vector<16xf32>
    %465 = vector.multi_reduction <add>, %464, %cst_200 [1] : vector<16x32xf32> to vector<16xf32>
    %466 = vector.shape_cast %465 : vector<16xf32> to vector<16x1xf32>
    %cst_201 = arith.constant 3.200000e+01 : f32
    %467 = vector.broadcast %cst_201 : f32 to vector<16x1xf32>
    %468 = arith.divf %466, %467 : vector<16x1xf32>
    %469 = vector.broadcast %461 : vector<16x1xf32> to vector<16x32xf32>
    %470 = arith.subf %455, %469 : vector<16x32xf32>
    %cst_202 = arith.constant 9.99999974E-6 : f32
    %471 = vector.broadcast %cst_202 : f32 to vector<16x1xf32>
    %472 = arith.addf %468, %471 : vector<16x1xf32>
    %473 = math.rsqrt %472 : vector<16x1xf32>
    %474 = vector.broadcast %473 : vector<16x1xf32> to vector<16x32xf32>
    %475 = arith.mulf %470, %474 : vector<16x32xf32>
    %476 = vector.broadcast %456 : vector<1x32xf32> to vector<16x32xf32>
    %477 = arith.mulf %475, %476 : vector<16x32xf32>
    %478 = vector.broadcast %457 : vector<1x32xf32> to vector<16x32xf32>
    %479 = arith.addf %477, %478 : vector<16x32xf32>
    %480 = arith.truncf %479 : vector<16x32xf32> to vector<16x32xbf16>
    %cst_203 = arith.constant 0.000000e+00 : f32
    %481 = vector.broadcast %cst_203 : f32 to vector<16x32xf32>
    %c0_204 = arith.constant 0 : index
    %c0_205 = arith.constant 0 : index
    %482 = vector.load %arg22[%c0_204, %c0_205] : memref<32x2048xbf16, #tpu.memory_space<vmem>>, vector<32x512xbf16>
    %cst_206 = arith.constant dense<0.000000e+00> : vector<16x512xf32>
    %483 = tpu.matmul %480, %482, %cst_206 {dimension_numbers = #tpu.dot_dimension_numbers<[1], [0], [0], [1], [0, 0, 1, 1], [], []>} : vector<16x32xbf16>, vector<32x512xbf16>, vector<16x512xf32> -> vector<16x512xf32>
    %c0_207 = arith.constant 0 : index
    %c0_208 = arith.constant 0 : index
    %484 = vector.load %arg23[%c0_207, %c0_208] : memref<1x2048xf32, #tpu.memory_space<vmem>>, vector<1x512xf32>
    %485 = vector.broadcast %484 : vector<1x512xf32> to vector<16x512xf32>
    %486 = arith.addf %483, %485 : vector<16x512xf32>
    %cst_209 = arith.constant 0.000000e+00 : f32
    %487 = vector.broadcast %cst_209 : f32 to vector<16x512xf32>
    %488 = arith.maximumf %486, %487 : vector<16x512xf32>
    %489 = arith.truncf %488 : vector<16x512xf32> to vector<16x512xbf16>
    %c0_210 = arith.constant 0 : index
    %c0_211 = arith.constant 0 : index
    %490 = vector.load %arg24[%c0_210, %c0_211] : memref<2048x32xbf16, #tpu.memory_space<vmem>>, vector<512x32xbf16>
    %cst_212 = arith.constant dense<0.000000e+00> : vector<16x32xf32>
    %491 = tpu.matmul %489, %490, %cst_212 {dimension_numbers = #tpu.dot_dimension_numbers<[1], [0], [0], [1], [0, 0, 1, 1], [], []>} : vector<16x512xbf16>, vector<512x32xbf16>, vector<16x32xf32> -> vector<16x32xf32>
    %492 = arith.addf %481, %491 : vector<16x32xf32>
    %c0_213 = arith.constant 0 : index
    %c512_214 = arith.constant 512 : index
    %493 = vector.load %arg22[%c0_213, %c512_214] : memref<32x2048xbf16, #tpu.memory_space<vmem>>, vector<32x512xbf16>
    %cst_215 = arith.constant dense<0.000000e+00> : vector<16x512xf32>
    %494 = tpu.matmul %480, %493, %cst_215 {dimension_numbers = #tpu.dot_dimension_numbers<[1], [0], [0], [1], [0, 0, 1, 1], [], []>} : vector<16x32xbf16>, vector<32x512xbf16>, vector<16x512xf32> -> vector<16x512xf32>
    %c0_216 = arith.constant 0 : index
    %c512_217 = arith.constant 512 : index
    %495 = vector.load %arg23[%c0_216, %c512_217] : memref<1x2048xf32, #tpu.memory_space<vmem>>, vector<1x512xf32>
    %496 = vector.broadcast %495 : vector<1x512xf32> to vector<16x512xf32>
    %497 = arith.addf %494, %496 : vector<16x512xf32>
    %cst_218 = arith.constant 0.000000e+00 : f32
    %498 = vector.broadcast %cst_218 : f32 to vector<16x512xf32>
    %499 = arith.maximumf %497, %498 : vector<16x512xf32>
    %500 = arith.truncf %499 : vector<16x512xf32> to vector<16x512xbf16>
    %c512_219 = arith.constant 512 : index
    %c0_220 = arith.constant 0 : index
    %501 = vector.load %arg24[%c512_219, %c0_220] : memref<2048x32xbf16, #tpu.memory_space<vmem>>, vector<512x32xbf16>
    %cst_221 = arith.constant dense<0.000000e+00> : vector<16x32xf32>
    %502 = tpu.matmul %500, %501, %cst_221 {dimension_numbers = #tpu.dot_dimension_numbers<[1], [0], [0], [1], [0, 0, 1, 1], [], []>} : vector<16x512xbf16>, vector<512x32xbf16>, vector<16x32xf32> -> vector<16x32xf32>
    %503 = arith.addf %492, %502 : vector<16x32xf32>
    %c0_222 = arith.constant 0 : index
    %c1024_223 = arith.constant 1024 : index
    %504 = vector.load %arg22[%c0_222, %c1024_223] : memref<32x2048xbf16, #tpu.memory_space<vmem>>, vector<32x512xbf16>
    %cst_224 = arith.constant dense<0.000000e+00> : vector<16x512xf32>
    %505 = tpu.matmul %480, %504, %cst_224 {dimension_numbers = #tpu.dot_dimension_numbers<[1], [0], [0], [1], [0, 0, 1, 1], [], []>} : vector<16x32xbf16>, vector<32x512xbf16>, vector<16x512xf32> -> vector<16x512xf32>
    %c0_225 = arith.constant 0 : index
    %c1024_226 = arith.constant 1024 : index
    %506 = vector.load %arg23[%c0_225, %c1024_226] : memref<1x2048xf32, #tpu.memory_space<vmem>>, vector<1x512xf32>
    %507 = vector.broadcast %506 : vector<1x512xf32> to vector<16x512xf32>
    %508 = arith.addf %505, %507 : vector<16x512xf32>
    %cst_227 = arith.constant 0.000000e+00 : f32
    %509 = vector.broadcast %cst_227 : f32 to vector<16x512xf32>
    %510 = arith.maximumf %508, %509 : vector<16x512xf32>
    %511 = arith.truncf %510 : vector<16x512xf32> to vector<16x512xbf16>
    %c1024_228 = arith.constant 1024 : index
    %c0_229 = arith.constant 0 : index
    %512 = vector.load %arg24[%c1024_228, %c0_229] : memref<2048x32xbf16, #tpu.memory_space<vmem>>, vector<512x32xbf16>
    %cst_230 = arith.constant dense<0.000000e+00> : vector<16x32xf32>
    %513 = tpu.matmul %511, %512, %cst_230 {dimension_numbers = #tpu.dot_dimension_numbers<[1], [0], [0], [1], [0, 0, 1, 1], [], []>} : vector<16x512xbf16>, vector<512x32xbf16>, vector<16x32xf32> -> vector<16x32xf32>
    %514 = arith.addf %503, %513 : vector<16x32xf32>
    %c0_231 = arith.constant 0 : index
    %c1536_232 = arith.constant 1536 : index
    %515 = vector.load %arg22[%c0_231, %c1536_232] : memref<32x2048xbf16, #tpu.memory_space<vmem>>, vector<32x512xbf16>
    %cst_233 = arith.constant dense<0.000000e+00> : vector<16x512xf32>
    %516 = tpu.matmul %480, %515, %cst_233 {dimension_numbers = #tpu.dot_dimension_numbers<[1], [0], [0], [1], [0, 0, 1, 1], [], []>} : vector<16x32xbf16>, vector<32x512xbf16>, vector<16x512xf32> -> vector<16x512xf32>
    %c0_234 = arith.constant 0 : index
    %c1536_235 = arith.constant 1536 : index
    %517 = vector.load %arg23[%c0_234, %c1536_235] : memref<1x2048xf32, #tpu.memory_space<vmem>>, vector<1x512xf32>
    %518 = vector.broadcast %517 : vector<1x512xf32> to vector<16x512xf32>
    %519 = arith.addf %516, %518 : vector<16x512xf32>
    %cst_236 = arith.constant 0.000000e+00 : f32
    %520 = vector.broadcast %cst_236 : f32 to vector<16x512xf32>
    %521 = arith.maximumf %519, %520 : vector<16x512xf32>
    %522 = arith.truncf %521 : vector<16x512xf32> to vector<16x512xbf16>
    %c1536_237 = arith.constant 1536 : index
    %c0_238 = arith.constant 0 : index
    %523 = vector.load %arg24[%c1536_237, %c0_238] : memref<2048x32xbf16, #tpu.memory_space<vmem>>, vector<512x32xbf16>
    %cst_239 = arith.constant dense<0.000000e+00> : vector<16x32xf32>
    %524 = tpu.matmul %522, %523, %cst_239 {dimension_numbers = #tpu.dot_dimension_numbers<[1], [0], [0], [1], [0, 0, 1, 1], [], []>} : vector<16x512xbf16>, vector<512x32xbf16>, vector<16x32xf32> -> vector<16x32xf32>
    %525 = arith.addf %514, %524 : vector<16x32xf32>
    %526 = arith.addf %479, %525 : vector<16x32xf32>
    %c0_240 = arith.constant 0 : index
    %c0_241 = arith.constant 0 : index
    %527 = vector.load %arg25[%c0_240, %c0_241] : memref<1x32xf32, #tpu.memory_space<vmem>>, vector<1x32xf32>
    %528 = vector.broadcast %527 : vector<1x32xf32> to vector<16x32xf32>
    %529 = arith.addf %526, %528 : vector<16x32xf32>
    %c0_242 = arith.constant 0 : index
    %c0_243 = arith.constant 0 : index
    %530 = vector.load %arg26[%c0_242, %c0_243] : memref<1x32xf32, #tpu.memory_space<vmem>>, vector<1x32xf32>
    %c0_244 = arith.constant 0 : index
    %c0_245 = arith.constant 0 : index
    %531 = vector.load %arg27[%c0_244, %c0_245] : memref<1x32xf32, #tpu.memory_space<vmem>>, vector<1x32xf32>
    %cst_246 = arith.constant dense<0.000000e+00> : vector<16xf32>
    %532 = vector.multi_reduction <add>, %529, %cst_246 [1] : vector<16x32xf32> to vector<16xf32>
    %533 = vector.shape_cast %532 : vector<16xf32> to vector<16x1xf32>
    %cst_247 = arith.constant 3.200000e+01 : f32
    %534 = vector.broadcast %cst_247 : f32 to vector<16x1xf32>
    %535 = arith.divf %533, %534 : vector<16x1xf32>
    %536 = vector.broadcast %535 : vector<16x1xf32> to vector<16x32xf32>
    %537 = arith.subf %529, %536 : vector<16x32xf32>
    %538 = arith.mulf %537, %537 : vector<16x32xf32>
    %cst_248 = arith.constant dense<0.000000e+00> : vector<16xf32>
    %539 = vector.multi_reduction <add>, %538, %cst_248 [1] : vector<16x32xf32> to vector<16xf32>
    %540 = vector.shape_cast %539 : vector<16xf32> to vector<16x1xf32>
    %cst_249 = arith.constant 3.200000e+01 : f32
    %541 = vector.broadcast %cst_249 : f32 to vector<16x1xf32>
    %542 = arith.divf %540, %541 : vector<16x1xf32>
    %543 = vector.broadcast %535 : vector<16x1xf32> to vector<16x32xf32>
    %544 = arith.subf %529, %543 : vector<16x32xf32>
    %cst_250 = arith.constant 9.99999974E-6 : f32
    %545 = vector.broadcast %cst_250 : f32 to vector<16x1xf32>
    %546 = arith.addf %542, %545 : vector<16x1xf32>
    %547 = math.rsqrt %546 : vector<16x1xf32>
    %548 = vector.broadcast %547 : vector<16x1xf32> to vector<16x32xf32>
    %549 = arith.mulf %544, %548 : vector<16x32xf32>
    %550 = vector.broadcast %530 : vector<1x32xf32> to vector<16x32xf32>
    %551 = arith.mulf %549, %550 : vector<16x32xf32>
    %552 = vector.broadcast %531 : vector<1x32xf32> to vector<16x32xf32>
    %553 = arith.addf %551, %552 : vector<16x32xf32>
    %c0_251 = arith.constant 0 : index
    %c0_252 = arith.constant 0 : index
    %554 = vector.load %arg30[%c0_251, %c0_252] : memref<32x4xf32, #tpu.memory_space<vmem>>, vector<32x4xf32>
    %555 = tpu.transpose %554, [1, 0] : vector<32x4xf32> -> vector<4x32xf32>
    %556 = vector.extract_strided_slice %553 {offsets = [0, 0], sizes = [8, 32], strides = [1, 1]} : vector<16x32xf32> to vector<8x32xf32>
    %557 = tpu.transpose %556, [1, 0] : vector<8x32xf32> -> vector<32x8xf32>
    %c0_253 = arith.constant 0 : index
    %c0_254 = arith.constant 0 : index
    %558 = vector.load %arg28[%c0_253, %c0_254] : memref<8x4xf32, #tpu.memory_space<vmem>>, vector<8x4xf32>
    %cst_255 = arith.constant dense<0.000000e+00> : vector<32x4xf32>
    %559 = tpu.matmul %557, %558, %cst_255 {dimension_numbers = #tpu.dot_dimension_numbers<[1], [0], [0], [1], [0, 0, 1, 1], [], []>} : vector<32x8xf32>, vector<8x4xf32>, vector<32x4xf32> -> vector<32x4xf32>
    %c0_256 = arith.constant 0 : index
    %c0_257 = arith.constant 0 : index
    %560 = vector.load %arg29[%c0_256, %c0_257] : memref<1x4xf32, #tpu.memory_space<vmem>>, vector<1x4xf32>
    %561 = vector.broadcast %560 : vector<1x4xf32> to vector<32x4xf32>
    %562 = arith.addf %559, %561 : vector<32x4xf32>
    %cst_258 = arith.constant dense<0.000000e+00> : vector<4x4xf32>
    %563 = tpu.matmul %555, %562, %cst_258 {dimension_numbers = #tpu.dot_dimension_numbers<[1], [0], [0], [1], [0, 0, 1, 1], [], []>} : vector<4x32xf32>, vector<32x4xf32>, vector<4x4xf32> -> vector<4x4xf32>
    %c0_259 = arith.constant 0 : index
    %c0_260 = arith.constant 0 : index
    %564 = vector.load %arg31[%c0_259, %c0_260] : memref<4x1xf32, #tpu.memory_space<vmem>>, vector<4x1xf32>
    %565 = vector.broadcast %564 : vector<4x1xf32> to vector<4x4xf32>
    %566 = arith.addf %563, %565 : vector<4x4xf32>
    %c0_261 = arith.constant 0 : index
    %c0_262 = arith.constant 0 : index
    %c0_263 = arith.constant 0 : index
    %567 = vector.load %arg32[%c0_261, %c0_262, %c0_263] : memref<2x4x4xf32, #tpu.memory_space<vmem>>, vector<1x4x4xf32>
    %568 = vector.shape_cast %567 : vector<1x4x4xf32> to vector<4x4xf32>
    %569 = vector.shape_cast %566 : vector<4x4xf32> to vector<1x4x4xf32>
    tpu.vector_store %arg32[%c0_261, %c0_262, %c0_263], %569 {strides = array<i32>} : memref<2x4x4xf32, #tpu.memory_space<vmem>>, vector<1x4x4xf32>,
    %570 = vector.extract_strided_slice %553 {offsets = [8, 0], sizes = [8, 32], strides = [1, 1]} : vector<16x32xf32> to vector<8x32xf32>
    %571 = tpu.transpose %570, [1, 0] : vector<8x32xf32> -> vector<32x8xf32>
    %c0_264 = arith.constant 0 : index
    %c0_265 = arith.constant 0 : index
    %572 = vector.load %arg28[%c0_264, %c0_265] : memref<8x4xf32, #tpu.memory_space<vmem>>, vector<8x4xf32>
    %cst_266 = arith.constant dense<0.000000e+00> : vector<32x4xf32>
    %573 = tpu.matmul %571, %572, %cst_266 {dimension_numbers = #tpu.dot_dimension_numbers<[1], [0], [0], [1], [0, 0, 1, 1], [], []>} : vector<32x8xf32>, vector<8x4xf32>, vector<32x4xf32> -> vector<32x4xf32>
    %c0_267 = arith.constant 0 : index
    %c0_268 = arith.constant 0 : index
    %574 = vector.load %arg29[%c0_267, %c0_268] : memref<1x4xf32, #tpu.memory_space<vmem>>, vector<1x4xf32>
    %575 = vector.broadcast %574 : vector<1x4xf32> to vector<32x4xf32>
    %576 = arith.addf %573, %575 : vector<32x4xf32>
    %cst_269 = arith.constant dense<0.000000e+00> : vector<4x4xf32>
    %577 = tpu.matmul %555, %576, %cst_269 {dimension_numbers = #tpu.dot_dimension_numbers<[1], [0], [0], [1], [0, 0, 1, 1], [], []>} : vector<4x32xf32>, vector<32x4xf32>, vector<4x4xf32> -> vector<4x4xf32>
    %c0_270 = arith.constant 0 : index
    %c0_271 = arith.constant 0 : index
    %578 = vector.load %arg31[%c0_270, %c0_271] : memref<4x1xf32, #tpu.memory_space<vmem>>, vector<4x1xf32>
    %579 = vector.broadcast %578 : vector<4x1xf32> to vector<4x4xf32>
    %580 = arith.addf %577, %579 : vector<4x4xf32>
    %c1 = arith.constant 1 : index
    %c0_272 = arith.constant 0 : index
    %c0_273 = arith.constant 0 : index
    %581 = vector.load %arg32[%c1, %c0_272, %c0_273] : memref<2x4x4xf32, #tpu.memory_space<vmem>>, vector<1x4x4xf32>
    %582 = vector.shape_cast %581 : vector<1x4x4xf32> to vector<4x4xf32>
    %583 = vector.shape_cast %580 : vector<4x4xf32> to vector<1x4x4xf32>
    tpu.vector_store %arg32[%c1, %c0_272, %c0_273], %583 {strides = array<i32>} : memref<2x4x4xf32, #tpu.memory_space<vmem>>, vector<1x4x4xf32>,
    return
  }
}

</mosaic_0001>

<bundles_post_ra>
// kernel: transformer_forward.1
= control target key start
LH: loop header
LB: loop body
LE: loop exit
PB: predicated region body
PF: predicated region fallthrough
CT: control target
= control target key end

     0   :  { %s7451_s6 = smov 1   ;;  %s7452_s10 = smov 2   ;;  %s8598_s0 = inlined_call_operand.smem [shape: u32[33], index: -1, kind: input, shape index: {}] }
   0x1   :  { %s7509_s5 = sld [smem:[%s8598_s0]]   ;;  %s7453_s14 = smov 3  }
   0x2   :  { %s7514_s9 = sld [smem:[%s8598_s0 + %s7451_s6]]   ;;  %s7454_s18 = smov 4  }
   0x3   :  { %s7519_s13 = sld [smem:[%s8598_s0 + %s7452_s10]]   ;;  %s7455_s22 = smov 5  }
   0x4   :  { %s7524_s17 = sld [smem:[%s8598_s0 + %s7453_s14]]   ;;  %s7456_s26 = smov 6  }
   0x5   :  { %s7529_s21 = sld [smem:[%s8598_s0 + %s7454_s18]]   ;;  %s7457_s30 = smov 7  }
   0x6   :  { %s7534_s25 = sld [smem:[%s8598_s0 + %s7455_s22]]   ;;  %s7458_s4 = smov 8  }
   0x7   :  { %s7539_s29 = sld [smem:[%s8598_s0 + %s7456_s26]]   ;;  %s7459_s10 = smov 9  }
   0x8   :  { %s7544_s3 = sld [smem:[%s8598_s0 + %s7457_s30]]   ;;  %s7460_s15 = smov 10  }
   0x9   :  { %s7549_s8 = sld [smem:[%s8598_s0 + %s7458_s4]]   ;;  %s7461_s20 = smov 11  }
   0xa   :  { %s7554_s14 = sld [smem:[%s8598_s0 + %s7459_s10]]   ;;  %s7462_s26 = smov 12  }
   0xb   :  { %s7559_s19 = sld [smem:[%s8598_s0 + %s7460_s15]]   ;;  %s7463_s1 = smov 13  }
   0xc   :  { %s7564_s24 = sld [smem:[%s8598_s0 + %s7461_s20]]   ;;  %s7464_s7 = smov 14  }
   0xd   :  { %s7569_s30 = sld [smem:[%s8598_s0 + %s7462_s26]]   ;;  %s7465_s15 = smov 15  }
   0xe   :  { %s7574_s6 = sld [smem:[%s8598_s0 + %s7463_s1]]   ;;  %s7466_s22 = smov 16  }
   0xf   :  { %s7579_s12 = sld [smem:[%s8598_s0 + %s7464_s7]]   ;;  %s7467_s28 = smov 17  }
  0x10   :  { %s7584_s20 = sld [smem:[%s8598_s0 + %s7465_s15]]   ;;  %s7468_s7 = smov 18  }
  0x11   :  { %s7589_s27 = sld [smem:[%s8598_s0 + %s7466_s22]]   ;;  %s7469_s15 = smov 19  }
  0x12   :  { %s7594_s4 = sld [smem:[%s8598_s0 + %s7467_s28]]   ;;  %s7470_s22 = smov 20  }
  0x13   :  { %s7471_s28 = smov 21  }
  0x15   :  { %8604 = sst [smem:[#allocation6_spill]] %s7579_s12 }
  0x16   :  { %8605 = sst [smem:[#allocation7_spill]] %s7584_s20 }
  0x17   :  { %8606 = sst [smem:[#allocation8_spill]] %s7589_s27 }
  0x18   :  { %8607 = sst [smem:[#allocation9_spill]] %s7594_s4 }
  0x19   :  { %s7599_s12 = sld [smem:[%s8598_s0 + %s7468_s7]]   ;;  %s7472_s7 = smov 22  }
  0x1a   :  { %s7604_s20 = sld [smem:[%s8598_s0 + %s7469_s15]]   ;;  %s7473_s15 = smov 23  }
  0x1b   :  { %s7609_s27 = sld [smem:[%s8598_s0 + %s7470_s22]]   ;;  %s7474_s22 = smov 24  }
  0x1c   :  { %s7614_s4 = sld [smem:[%s8598_s0 + %s7471_s28]]   ;;  %s7475_s28 = smov 25  }
  0x1f   :  { %8608 = sst [smem:[#allocation10_spill]] %s7599_s12 }
  0x20   :  { %8609 = sst [smem:[#allocation11_spill]] %s7604_s20 }
  0x21   :  { %8610 = sst [smem:[#allocation12_spill]] %s7609_s27 }
  0x22   :  { %8611 = sst [smem:[#allocation13_spill]] %s7614_s4 }
  0x23   :  { %s7619_s12 = sld [smem:[%s8598_s0 + %s7472_s7]]   ;;  %s7476_s7 = smov 26  }
  0x24   :  { %s7624_s20 = sld [smem:[%s8598_s0 + %s7473_s15]]   ;;  %s7477_s15 = smov 27  }
  0x25   :  { %s7629_s27 = sld [smem:[%s8598_s0 + %s7474_s22]]   ;;  %s7478_s22 = smov 28  }
  0x26   :  { %s7634_s4 = sld [smem:[%s8598_s0 + %s7475_s28]]   ;;  %s7479_s28 = smov 29  }
  0x29   :  { %8612 = sst [smem:[#allocation14_spill]] %s7619_s12 }
  0x2a   :  { %8613 = sst [smem:[#allocation15_spill]] %s7624_s20 }
  0x2b   :  { %8614 = sst [smem:[#allocation16_spill]] %s7629_s27 }
  0x2c   :  { %8615 = sst [smem:[#allocation17_spill]] %s7634_s4 }
  0x2d   :  { %s7639_s12 = sld [smem:[%s8598_s0 + %s7476_s7]]   ;;  %s7480_s7 = smov 30  }
  0x2e   :  { %s7644_s20 = sld [smem:[%s8598_s0 + %s7477_s15]]   ;;  %s7481_s15 = smov 31  }
  0x2f   :  { %s7649_s27 = sld [smem:[%s8598_s0 + %s7478_s22]]   ;;  %s7482_s22 = smov 32  }
  0x30   :  { %s7654_s4 = sld [smem:[%s8598_s0 + %s7479_s28]]  }
  0x33   :  { %8616 = sst [smem:[#allocation18_spill]] %s7639_s12 }
  0x34   :  { %8617 = sst [smem:[#allocation19_spill]] %s7644_s20 }
  0x35   :  { %8618 = sst [smem:[#allocation20_spill]] %s7649_s27 }
  0x36   :  { %s7659_s12 = sld [smem:[%s8598_s0 + %s7480_s7]]  }
  0x37   :  { %s7664_s20 = sld [smem:[%s8598_s0 + %s7481_s15]]  }
  0x38   :  { %s7669_s27 = sld [smem:[%s8598_s0 + %s7482_s22]]  }
  0x39   :  { %v138_v0 = vld [vmem:[%s7519_s13] sm:$0xf]  ;;  %vm150_vm0 = vcmask 1043456   ;;  %vm143_vm1 = vcmask 31744   ;;  %v137_v2 = vld [vmem:[%s7509_s5 + $0x8] sm:$0xff] }
  0x3a   :  { %v136_v1 = vld [vmem:[%s7509_s5] sm:$0xff]  ;;  %5530 = vmatpush.msk.msra.mxu0 %vm150_vm0, %v138_v0 }
  0x3b   :  { %5531 = vmatmul.msk.f32.vlgmr.msra.gmra.mxu0 %vm143_vm1, %v136_v1 }
  0x3c   :  { %70 = vsyncpa [#allocation4], 0  ;;  %v6940_v3 = vld [vmem:[%s7529_s21 + $0x8] sm:$0xff]  ;;  %v6939_v4 = vld [vmem:[%s7529_s21] sm:$0xff]  ;;  %vm202_vm2 = vcmask 261120   ;;  %s7483_s0 = smov 120  }
  0x3d   :  { %212 = vmatpush.bf16.msra.mxu1 %v6940_v3  ;;  %v7326_v6 = vld [vmem:[%s7524_s17] ss:$0 sm:$0xff]  ;;  %v178_v10 = vld [vmem:[%s7514_s9 + $0x8] sm:$0xff]  ;;  %s7484_s5 = smov 96   ;;  %vm223_vm3 = vcmask 64512   ;;  %s7486_s13 = smov 104  }
  0x3e   :  { %v177_v8 = vld [vmem:[%s7514_s9] sm:$0xff]  ;;  %s7485_s9 = smov 88   ;;  %s7487_s17 = smov 64   ;;  %vm357_vm4 = vcmask 130112   ;;  %vm429_vm5 = vcmask 195712   ;;  %vm501_vm6 = vcmask 261312  }
  0x3f   :  { %v7327_v15 = vld [vmem:[%s7534_s25] ss:$0 sm:$0xff]  ;;  %s7488_s21 = smov 80   ;;  %s7489_s25 = smov 56  }
  0x40   :  { %s7490_s28 = smov 112   ;;  %s7491_s1 = smov 72  }
  0x41   :  { %213 = vmatpush.bf16.msra.mxu1 %v6939_v4  ;;  %s7492_s2 = smov 40   ;;  %s7493_s7 = smov 8  }
  0x42   :  { %s7494_s10 = smov 48   ;;  %s7495_s11 = smov 16  }
  0x43   :  { %5532 = vmatmul.msk.f32.gmra.mxu0 %vm143_vm1, %v137_v2  ;;  %s7496_s15 = smov 24   ;;  %s8627_s16 = sld [smem:[#allocation13_spill]] }
  0x44   :  { %s8628_s18 = sld [smem:[#allocation16_spill]] }
  0x45   :  { %s8629_s22 = sld [smem:[#allocation15_spill]] }
  0x46   :  { %s8630_s23 = sld [smem:[#allocation17_spill]] }
  0x47   :  { %s8631_s26 = sld [smem:[#allocation20_spill]] }
  0xb8   :  { %v171_v5 = vpop.f32.mrf.mxu0 }
  0xb9   :  { %v172_v7 = vadd.f32 %v7326_v6, %v171_v5 }
  0xbb   :  { %v7679_v12 = vadd.f32 %v177_v8, %v172_v7 }
  0xc0   :  { %v174_v9 = vpop.f32.mrf.mxu0 }
  0xc1   :  { %v175_v11 = vadd.f32 %v7326_v6, %v174_v9 }
  0xc3   :  { %v7681_v13 = vadd.f32 %v178_v10, %v175_v11 }
  0xc5   :  { %v181_v14 = vpack.c.bf16 %v7681_v13, %v7679_v12 }
  0xc7   :  { %5541 = vmatmul.msk.bf16.vlgmr.msra.gmra.mxu1 %vm202_vm2, %v181_v14 }
 0x144   :  { %v215_v16 = vpop.f32.mrf.mxu1 }
 0x145   :  { %v7687_v17 = vadd.f32 %v7327_v15, %v215_v16 }
 0x147   :  { %287 = vrot.lane.b32.xlu1 %v7687_v17, %s7483_s0  ;;  %221 = vrot.lane.b32.xlu0 %v7687_v17, %s7484_s5 }
 0x14c   :  { %v217_v37 = vpop.f32.mrf.mxu1 }
 0x14d   :  { %v7718_v38 = vadd.f32 %v7327_v15, %v217_v37 }
 0x14f   :  { %289 = vrot.lane.b32.xlu0 %v7687_v17, %s7485_s9 }
 0x1b9   :  { %v222_v18 = vpop.permute.xlu0 %221  ;;  %v288_v20 = vpop.permute.xlu1 %287 }
 0x1ba   :  { %5542 = vmatpush.xpose.msk.msra.mxu2 %vm223_vm3, %v222_v18 }
 0x1bd   :  { %5543 = vmatmul.msk.f32.vlgmr.msra.gmra.mxu2 %vm223_vm3, %v7687_v17 }
 0x1c1   :  { %v290_v19 = vpop.permute.xlu0 %289 }
 0x1c2   :  { %5545 = vmatpush.xpose.msk.msra.mxu3 %vm223_vm3, %v290_v19 }
 0x1c5   :  { %5546 = vmatmul.msk.f32.vlgmr.msra.gmra.mxu3 %vm223_vm3, %v288_v20 }
 0x240   :  { %v245_v21 = vpop.f32.mrf.mxu2 }
 0x241   :  { %v248_v22 = vmul.f32 0.35355338, %v245_v21 }
 0x243   :  { %v249_v23 = vsel %vm223_vm3, %v248_v22, -inf }
 0x244   :  { %250 = vmax.xlane.f32.xlu1 %v249_v23 }
 0x248   :  { %v312_v24 = vpop.f32.mrf.mxu3 }
 0x249   :  { %v315_v25 = vmul.f32 0.35355338, %v312_v24 }
 0x24b   :  { %v316_v26 = vsel %vm223_vm3, %v315_v25, -inf }
 0x24c   :  { %317 = vmax.xlane.f32.xlu2 %v316_v26 }
 0x25d   :  { %431 = vrot.lane.b32.xlu1 %v7687_v17, %s7486_s13 }
 0x2b7   :  { %v251_v27 = vpop.xlane.xlu1 %250 }
 0x2b8   :  { %v252_v28 = vsub.f32 %v248_v22, %v251_v27 }
 0x2ba   :  { %v253_v29 = vmul.f32 1.442695, %v252_v28 }
 0x2bc   :  { %7343 = vpow2.f32 %v253_v29 }
 0x2bf   :  { %v318_v30 = vpop.xlane.xlu2 %317 }
 0x2c0   :  { %v319_v31 = vsub.f32 %v315_v25, %v318_v30 }
 0x2c2   :  { %v7344_v32 = vpop.eup %7343  ;;  %v320_v33 = vmul.f32 1.442695, %v319_v31 }
 0x2c3   :  { %v255_v34 = vsel %vm223_vm3, %v7344_v32, 0.0 }
 0x2c4   :  { %7345 = vpow2.f32 %v320_v33  ;;  %256 = vadd.xlane.f32.xlu2 %v255_v34 }
 0x2ca   :  { %v7346_v35 = vpop.eup %7345 }
 0x2cb   :  { %v322_v36 = vsel %vm223_vm3, %v7346_v35, 0.0 }
 0x2cc   :  { %323 = vadd.xlane.f32.xlu0 %v322_v36 }
 0x2cf   :  { %v432_v48 = vpop.permute.xlu1 %431 }
 0x2dc   :  { %260 = vrot.lane.b32.xlu2 %v7687_v17, %s7487_s17 }
 0x2e0   :  { %361 = vrot.lane.b32.xlu0 %v7687_v17, %s7488_s21 }
 0x2e4   :  { %327 = vrot.lane.b32.xlu2 %v7687_v17, %s7489_s25 }
 0x2e8   :  { %359 = vrot.lane.b32.xlu0 %v7687_v17, %s7490_s28 }
 0x2ec   :  { %433 = vrot.lane.b32.xlu2 %v7687_v17, %s7491_s1 }
 0x2f0   :  { %471 = vrot.lane.b32.xlu0 %v7687_v17, %s7492_s2 }
 0x2f8   :  { %504 = vrot.lane.b32.xlu0 %v7718_v38, %s7484_s5 }
 0x300   :  { %569 = vrot.lane.b32.xlu0 %v7718_v38, %s7483_s0 }
 0x308   :  { %642 = vrot.lane.b32.xlu0 %v7718_v38, %s7488_s21 }
 0x310   :  { %640 = vrot.lane.b32.xlu0 %v7718_v38, %s7490_s28 }
 0x337   :  { %v257_v39 = vpop.xlane.xlu2 %256 }
 0x338   :  { %7347 = vrcp.f32 %v257_v39 }
 0x33e   :  { %v7348_v40 = vpop.eup %7347 }
 0x33f   :  { %v324_v41 = vpop.xlane.xlu0 %323  ;;  %v261_v42 = vpop.permute.xlu2 %260  ;;  %v259_v43 = vmul.f32 %v7348_v40, %v7344_v32 }
 0x340   :  { %7349 = vrcp.f32 %v324_v41  ;;  %281 = vmatpush.msrb.mxu2 %v261_v42 }
 0x341   :  { %5544 = vmatmul.msk.f32.vlgmr.msrb.gmra.mxu2 %vm223_vm3, %v259_v43 }
 0x346   :  { %v7350_v44 = vpop.eup %7349 }
 0x347   :  { %v326_v45 = vmul.f32 %v7350_v44, %v7346_v35  ;;  %v328_v46 = vpop.permute.xlu2 %327 }
 0x348   :  { %348 = vmatpush.msra.mxu2 %v328_v46 }
 0x349   :  { %5547 = vmatmul.msk.f32.vlgmr.msra.gmra.mxu2 %vm223_vm3, %v326_v45 }
 0x34f   :  { %v434_v47 = vpop.permute.xlu2 %433 }
 0x350   :  { %5551 = vmatpush.xpose.msk.msrb.mxu2 %vm223_vm3, %v434_v47 }
 0x352   :  { %v362_v49 = vpop.permute.xlu0 %361 }
 0x353   :  { %5548 = vmatpush.xpose.msk.msrb.mxu0 %vm223_vm3, %v362_v49  ;;  %5552 = vmatmul.msk.f32.vlgmr.msrb.gmra.mxu2 %vm223_vm3, %v432_v48 }
 0x35a   :  { %v360_v50 = vpop.permute.xlu0 %359 }
 0x35b   :  { %5549 = vmatmul.msk.f32.vlgmr.msrb.gmra.mxu0 %vm223_vm3, %v360_v50 }
 0x362   :  { %v472_v51 = vpop.permute.xlu0 %471 }
 0x363   :  { %492 = vmatpush.msra.mxu0 %v472_v51 }
 0x36a   :  { %v505_v52 = vpop.permute.xlu0 %504 }
 0x36b   :  { %5554 = vmatpush.xpose.msk.msrb.mxu0 %vm223_vm3, %v505_v52 }
 0x372   :  { %v570_v2 = vpop.permute.xlu0 %569 }
 0x37a   :  { %v643_v7 = vpop.permute.xlu0 %642 }
 0x382   :  { %v641_v14 = vpop.permute.xlu0 %640 }
 0x3c4   :  { %v283_v53 = vpop.f32.mrf.mxu2 }
 0x3c5   :  { %286 = vst.msk [vmem:[#allocation2] sm:$0xff] %vm223_vm3, %v283_v53 }
 0x3cc   :  { %v7736_v54 = vpop.f32.mrf.mxu2 }
 0x3d6   :  { %v456_v55 = vpop.f32.mrf.mxu2 }
 0x3d7   :  { %v459_v56 = vmul.f32 0.35355338, %v456_v55 }
 0x3d8   :  { %v384_v57 = vpop.f32.mrf.mxu0 }
 0x3d9   :  { %v387_v58 = vmul.f32 0.35355338, %v384_v57  ;;  %v460_v59 = vsel %vm223_vm3, %v459_v56, -inf }
 0x3da   :  { %461 = vmax.xlane.f32.xlu2 %v460_v59 }
 0x3db   :  { %v388_v60 = vsel %vm223_vm3, %v387_v58, -inf }
 0x3dc   :  { %389 = vmax.xlane.f32.xlu0 %v388_v60 }
 0x3f2   :  { %571 = vrot.lane.b32.xlu2 %v7718_v38, %s7485_s9 }
 0x3fa   :  { %711 = vrot.lane.b32.xlu2 %v7718_v38, %s7486_s13 }
 0x44d   :  { %v462_v61 = vpop.xlane.xlu2 %461 }
 0x44e   :  { %v463_v62 = vsub.f32 %v459_v56, %v462_v61 }
 0x44f   :  { %v390_v21 = vpop.xlane.xlu0 %389 }
 0x450   :  { %v464_v63 = vmul.f32 1.442695, %v463_v62  ;;  %v391_v25 = vsub.f32 %v387_v58, %v390_v21 }
 0x452   :  { %7351 = vpow2.f32 %v464_v63  ;;  %v392_v28 = vmul.f32 1.442695, %v391_v25 }
 0x455   :  { %v572_v0 = vpop.permute.xlu2 %571 }
 0x456   :  { %5557 = vmatpush.xpose.msk.msra.mxu2 %vm223_vm3, %v572_v0 }
 0x458   :  { %v7352_v1 = vpop.eup %7351 }
 0x459   :  { %5558 = vmatmul.msk.f32.vlgmr.msra.gmra.mxu2 %vm223_vm3, %v570_v2  ;;  %v466_v3 = vsel %vm223_vm3, %v7352_v1, 0.0 }
 0x45a   :  { %467 = vadd.xlane.f32.xlu1 %v466_v3 }
 0x45d   :  { %v712_v15 = vpop.permute.xlu2 %711 }
 0x473   :  { %713 = vrot.lane.b32.xlu1 %v7718_v38, %s7491_s1 }
 0x4cd   :  { %v468_v4 = vpop.xlane.xlu1 %467 }
 0x4ce   :  { %7353 = vrcp.f32 %v468_v4 }
 0x4d4   :  { %v7354_v5 = vpop.eup %7353 }
 0x4d5   :  { %v470_v6 = vmul.f32 %v7354_v5, %v7352_v1 }
 0x4d7   :  { %5553 = vmatmul.msk.f32.vlgmr.msra.gmra.mxu0 %vm223_vm3, %v470_v6 }
 0x4d8   :  { %5560 = vmatpush.xpose.msk.msra.mxu0 %vm223_vm3, %v643_v7 }
 0x4dc   :  { %v594_v8 = vpop.f32.mrf.mxu2 }
 0x4dd   :  { %v597_v9 = vmul.f32 0.35355338, %v594_v8 }
 0x4df   :  { %5555 = vmatmul.msk.f32.vlgmr.msrb.gmra.mxu0 %vm223_vm3, %v7718_v38  ;;  %v598_v10 = vsel %vm223_vm3, %v597_v9, -inf }
 0x4e0   :  { %599 = vmax.xlane.f32.xlu1 %v598_v10 }
 0x4e5   :  { %v714_v11 = vpop.permute.xlu1 %713 }
 0x4e6   :  { %5563 = vmatpush.xpose.msk.msrb.mxu2 %vm223_vm3, %v714_v11 }
 0x4e7   :  { %5561 = vmatmul.msk.f32.vlgmr.msra.gmra.mxu0 %vm223_vm3, %v641_v14 }
 0x4e9   :  { %5564 = vmatmul.msk.f32.vlgmr.msrb.gmra.mxu2 %vm223_vm3, %v712_v15 }
 0x553   :  { %v600_v16 = vpop.xlane.xlu1 %599 }
 0x554   :  { %v601_v18 = vsub.f32 %v597_v9, %v600_v16  ;;  %v7757_v19 = vpop.f32.mrf.mxu0  ;;  %v6942_v16 = vld [vmem:[%s7539_s29 + $0x8] sm:$0xff] }
 0x555   :  { %814 = vmatpush.bf16.msrb.mxu0 %v6942_v16  ;;  %v6989_v16 = vld [vmem:[%s7559_s19 + $0xcc] sm:$0xf0] }
 0x556   :  { %v602_v20 = vmul.f32 1.442695, %v601_v18  ;;  %v6941_v18 = vld [vmem:[%s7539_s29] sm:$0xff]  ;;  %s8619_s29 = sld [smem:[#allocation8_spill]] }
 0x558   :  { %7355 = vpow2.f32 %v602_v20 }
 0x559   :  { %7357 = vpow2.f32 %v392_v28  ;;  %815 = vmatpush.bf16.msrb.mxu0 %v6941_v18  ;;  %v6987_v18 = vld [vmem:[%s7559_s19 + $0x94] sm:$0xf] }
 0x55c   :  { %v527_v22 = vpop.f32.mrf.mxu0 }
 0x55d   :  { %v530_v23 = vmul.f32 0.35355338, %v527_v22 }
 0x55e   :  { %v7759_v24 = vpop.eup %7355 }
 0x55f   :  { %v531_v26 = vsel %vm223_vm3, %v530_v23, -inf  ;;  %v604_v27 = vsel %vm223_vm3, %v7759_v24, 0.0  ;;  %v7358_v32 = vpop.eup %7357 }
 0x560   :  { %532 = vmax.xlane.f32.xlu2 %v531_v26  ;;  %605 = vadd.xlane.f32.xlu1 %v604_v27  ;;  %v394_v35 = vsel %vm223_vm3, %v7358_v32, 0.0  ;;  %v7328_v26 = vld [vmem:[%s7544_s3] ss:$0 sm:$0xff]  ;;  %s8620_s3 = sld [smem:[#allocation6_spill]] }
 0x564   :  { %v665_v29 = vpop.f32.mrf.mxu0 }
 0x565   :  { %v668_v30 = vmul.f32 0.35355338, %v665_v29 }
 0x567   :  { %v669_v31 = vsel %vm223_vm3, %v668_v30, -inf }
 0x568   :  { %670 = vmax.xlane.f32.xlu0 %v669_v31 }
 0x56c   :  { %v736_v33 = vpop.f32.mrf.mxu2 }
 0x56d   :  { %v739_v34 = vmul.f32 0.35355338, %v736_v33 }
 0x56f   :  { %v740_v36 = vsel %vm223_vm3, %v739_v34, -inf }
 0x570   :  { %395 = vadd.xlane.f32.xlu0 %v394_v35  ;;  %741 = vmax.xlane.f32.xlu2 %v740_v36  ;;  %v7497_v35 = vmov 32.0  }
 0x579   :  { %542 = vrot.lane.b32.xlu1 %v7718_v38, %s7487_s17 }
 0x581   :  { %354 = vrot.lane.b32.xlu1 %v7736_v54, %s7493_s7 }
 0x584   :  { %399 = vrot.lane.b32.xlu0 %v7687_v17, %s7494_s10 }
 0x58c   :  { %680 = vrot.lane.b32.xlu0 %v7718_v38, %s7494_s10 }
 0x594   :  { %751 = vrot.lane.b32.xlu0 %v7718_v38, %s7492_s2 }
 0x5d3   :  { %v533_v37 = vpop.xlane.xlu2 %532  ;;  %v606_v40 = vpop.xlane.xlu1 %605 }
 0x5d4   :  { %v534_v43 = vsub.f32 %v530_v23, %v533_v37 }
 0x5d6   :  { %v535_v45 = vmul.f32 1.442695, %v534_v43 }
 0x5db   :  { %v671_v39 = vpop.xlane.xlu0 %670 }
 0x5dc   :  { %v672_v17 = vsub.f32 %v668_v30, %v671_v39 }
 0x5de   :  { %v673_v50 = vmul.f32 1.442695, %v672_v17 }
 0x5e3   :  { %v742_v41 = vpop.xlane.xlu2 %741  ;;  %v396_v46 = vpop.xlane.xlu0 %395 }
 0x5e4   :  { %v743_v42 = vsub.f32 %v739_v34, %v742_v41 }
 0x5e6   :  { %v744_v44 = vmul.f32 1.442695, %v743_v42 }
 0x5e8   :  { %7359 = vpow2.f32 %v744_v44 }
 0x5e9   :  { %7361 = vrcp.f32 %v396_v46 }
 0x5ea   :  { %7363 = vpow2.f32 %v535_v45 }
 0x5eb   :  { %v543_v47 = vpop.permute.xlu1 %542  ;;  %7365 = vpow2.f32 %v673_v50  ;;  %v5593_v50 = vld [vmem:[%s7559_s19 + $0x80] sm:$0xf] }
 0x5ee   :  { %v7360_v48 = vpop.eup %7359 }
 0x5ef   :  { %v746_v49 = vsel %vm223_vm3, %v7360_v48, 0.0  ;;  %v7362_v51 = vpop.eup %7361 }
 0x5f0   :  { %747 = vadd.xlane.f32.xlu2 %v746_v49  ;;  %v7364_v53 = vpop.eup %7363  ;;  %v398_v55 = vmul.f32 %v7362_v51, %v7358_v32  ;;  %v6949_v51 = vld [vmem:[%s7559_s19 + $0xbc] sm:$0xf0] }
 0x5f1   :  { %v537_v56 = vsel %vm223_vm3, %v7364_v53, 0.0  ;;  %v7366_v57 = vpop.eup %7365 }
 0x5f2   :  { %v675_v59 = vsel %vm223_vm3, %v7366_v57, 0.0 }
 0x5f3   :  { %v355_v52 = vpop.permute.xlu1 %354 }
 0x5f4   :  { %358 = vst.msk [vmem:[#allocation2] sm:$0xff] %vm357_vm4, %v355_v52  ;;  %v6947_v52 = vld [vmem:[%s7559_s19 + $0x84] sm:$0xf] }
 0x5f6   :  { %v400_v54 = vpop.permute.xlu0 %399 }
 0x5f7   :  { %420 = vmatpush.msrb.mxu3 %v400_v54  ;;  %v5595_v54 = vld [vmem:[%s7559_s19 + $0xc0] sm:$0xf0] }
 0x5f8   :  { %5550 = vmatmul.msk.f32.vlgmr.msrb.gmra.mxu3 %vm223_vm3, %v398_v55  ;;  %538 = vadd.xlane.f32.xlu2 %v537_v56  ;;  %v5601_v55 = vld [vmem:[%s7559_s19 + $0x88] sm:$0xf] }
 0x5f9   :  { %563 = vmatpush.msra.mxu3 %v543_v47  ;;  %v6950_v56 = vld [vmem:[%s7559_s19 + $0xc4] sm:$0xf0] }
 0x5fe   :  { %v681_v58 = vpop.permute.xlu0 %680 }
 0x5ff   :  { %701 = vmatpush.msrb.mxu3 %v681_v58  ;;  %v5602_v58 = vor.u32 %v6950_v56, %v5601_v55  ;;  %v7329_v55 = vld [vmem:[%s7549_s8] ss:$0 sm:$0xff]  ;;  %s8621_s8 = sld [smem:[#allocation7_spill]] }
 0x600   :  { %676 = vadd.xlane.f32.xlu2 %v675_v59  ;;  %v6948_v59 = vld [vmem:[%s7559_s19 + $0x8c] sm:$0xf] }
 0x618   :  { %609 = vrot.lane.b32.xlu2 %v7718_v38, %s7489_s25  ;;  %v752_v38 = vpop.permute.xlu0 %751 }
 0x663   :  { %v748_v60 = vpop.xlane.xlu2 %747 }
 0x66b   :  { %v539_v61 = vpop.xlane.xlu2 %538 }
 0x66c   :  { %7367 = vrcp.f32 %v539_v61 }
 0x66d   :  { %7369 = vrcp.f32 %v606_v40 }
 0x672   :  { %v7368_v62 = vpop.eup %7367 }
 0x673   :  { %v541_v63 = vmul.f32 %v7368_v62, %v7364_v53  ;;  %v677_v0 = vpop.xlane.xlu2 %676  ;;  %v7370_v1 = vpop.eup %7369  ;;  %v5594_v53 = vor.u32 %v6949_v51, %v5593_v50 }
 0x674   :  { %7371 = vrcp.f32 %v677_v0  ;;  %v608_v6 = vmul.f32 %v7370_v1, %v7759_v24  ;;  %v5577_v0 = vld [vmem:[%s7559_s19] sm:$0xf] }
 0x675   :  { %5556 = vmatmul.msk.f32.vlgmr.msra.gmra.mxu3 %vm223_vm3, %v541_v63  ;;  %7373 = vrcp.f32 %v748_v60  ;;  %v5603_v60 = vld [vmem:[%s7559_s19 + $0xc8] sm:$0xf0]  ;;  %v6945_v1 = vld [vmem:[%s7559_s19 + $0x3c] sm:$0xf0] }
 0x676   :  { %7375 = vrcp.f32 %v7497_v35  ;;  %955 = vmatpush.bf16.msra.mxu3 %v5594_v53  ;;  %v5606_v62 = vor.u32 %v6948_v59, %v5603_v60  ;;  %v7330_v59 = vld [vmem:[%s7554_s14] ss:$0 sm:$0xff]  ;;  %s8622_s14 = sld [smem:[#allocation9_spill]] }
 0x678   :  { %997 = vmatpush.bf16.msra.mxu0 %v5606_v62 }
 0x67a   :  { %v7372_v2 = vpop.eup %7371 }
 0x67b   :  { %v679_v3 = vmul.f32 %v7372_v2, %v7366_v57  ;;  %v422_v4 = vpop.f32.mrf.mxu3  ;;  %v610_v5 = vpop.permute.xlu2 %609  ;;  %v5598_v57 = vor.u32 %v6947_v52, %v5595_v54  ;;  %v6943_v2 = vld [vmem:[%s7559_s19 + $0x4] sm:$0xf] }
 0x67c   :  { %426 = vrot.lane.b32.xlu1 %v422_v4, %s7495_s11  ;;  %630 = vmatpush.msrb.mxu1 %v610_v5  ;;  %v7374_v7 = vpop.eup %7373  ;;  %v5579_v4 = vld [vmem:[%s7559_s19 + $0x40] sm:$0xf0]  ;;  %v5585_v5 = vld [vmem:[%s7559_s19 + $0x8] sm:$0xf] }
 0x67d   :  { %5559 = vmatmul.msk.f32.vlgmr.msrb.gmra.mxu1 %vm223_vm3, %v608_v6  ;;  %5562 = vmatmul.msk.f32.vlgmr.msrb.gmra.mxu3 %vm223_vm3, %v679_v3  ;;  %v750_v8 = vmul.f32 %v7374_v7, %v7360_v48  ;;  %v7376_v36 = vpop.eup %7375  ;;  %v5578_v3 = vor.u32 %v6945_v1, %v5577_v0  ;;  %v6946_v6 = vld [vmem:[%s7559_s19 + $0x44] sm:$0xf0]  ;;  %v5582_v7 = vor.u32 %v6943_v2, %v5579_v4  ;;  %v7022_v2 = vld [vmem:[%s7569_s30 + $0x1f8] sm:$0xff] }
 0x67e   :  { %772 = vmatpush.msra.mxu1 %v752_v38  ;;  %v833_v37 = vmul.f32 32.0, %v7376_v36  ;;  %vm837_vm7 = vweird.f32 %v7376_v36  ;;  %969 = vmatpush.bf16.msra.mxu2 %v5598_v57  ;;  %v7006_v4 = vld [vmem:[%s7569_s30 + $0x178] sm:$0xff] }
 0x67f   :  { %956 = vmatpush.bf16.msra.mxu3 %v5578_v3  ;;  %v6998_v3 = vld [vmem:[%s7569_s30 + $0x138] sm:$0xff] }
 0x680   :  { %v834_v39 = vsub.f32 1.0, %v833_v37  ;;  %983 = vmatpush.bf16.msrb.mxu1 %v5602_v58  ;;  %v5621_v37 = vld [vmem:[%s7559_s19 + $0x18] sm:$0xf] }
 0x682   :  { %v835_v40 = vmul.f32 %v7376_v36, %v834_v39  ;;  %970 = vmatpush.bf16.msra.mxu2 %v5582_v7  ;;  %v6986_v39 = vld [vmem:[%s7559_s19 + $0x54] sm:$0xf0]  ;;  %v7012_v7 = vld [vmem:[%s7569_s30 + $0x1a8] sm:$0xff] }
 0x684   :  { %v836_v41 = vadd.f32 %v7376_v36, %v835_v40 }
 0x685   :  { %5565 = vmatmul.msk.f32.vlgmr.msra.gmra.mxu1 %vm223_vm3, %v750_v8  ;;  %v5586_v8 = vor.u32 %v6946_v6, %v5585_v5  ;;  %v7021_v5 = vld [vmem:[%s7569_s30 + $0x1f0] sm:$0xff] }
 0x686   :  { %v6997_v6 = vld [vmem:[%s7569_s30 + $0x130] sm:$0xff] }
 0x687   :  { %984 = vmatpush.bf16.msrb.mxu1 %v5586_v8  ;;  %v7020_v8 = vld [vmem:[%s7569_s30 + $0x1e8] sm:$0xff] }
 0x6ee   :  { %v427_v9 = vpop.permute.xlu1 %426 }
 0x6ef   :  { %430 = vst.msk [vmem:[#allocation2] sm:$0xff] %vm429_vm5, %v427_v9  ;;  %v6944_v9 = vld [vmem:[%s7559_s19 + $0xc] sm:$0xf] }
 0x6f8   :  { %v565_v10 = vpop.f32.mrf.mxu3 }
 0x6f9   :  { %568 = vst.msk [vmem:[#allocation2 + $0x8] sm:$0xff] %vm223_vm3, %v565_v10  ;;  %v5587_v10 = vld [vmem:[%s7559_s19 + $0x48] sm:$0xf0] }
 0x6fa   :  { %v632_v11 = vpop.f32.mrf.mxu1 }
 0x6fb   :  { %636 = vrot.lane.b32.xlu0 %v632_v11, %s7493_s7  ;;  %v5590_v11 = vor.u32 %v6944_v9, %v5587_v10  ;;  %v7011_v9 = vld [vmem:[%s7569_s30 + $0x1a0] sm:$0xff] }
 0x6fc   :  { %v7019_v10 = vld [vmem:[%s7569_s30 + $0x1e0] sm:$0xff] }
 0x6fd   :  { %998 = vmatpush.bf16.msra.mxu0 %v5590_v11  ;;  %v6996_v11 = vld [vmem:[%s7569_s30 + $0x128] sm:$0xff] }
 0x700   :  { %v703_v14 = vpop.f32.mrf.mxu3 }
 0x701   :  { %707 = vrot.lane.b32.xlu2 %v703_v14, %s7495_s11 }
 0x702   :  { %v774_v15 = vpop.f32.mrf.mxu1 }
 0x703   :  { %498 = vrot.lane.b32.xlu0 %v7757_v19, %s7496_s15  ;;  %778 = vrot.lane.b32.xlu1 %v774_v15, %s7496_s15  ;;  %v5629_v15 = vld [vmem:[%s7559_s19 + $0x90] sm:$0xf] }
 0x75b   :  { %v708_v21 = vpop.permute.xlu2 %707 }
 0x76d   :  { %v637_v20 = vpop.permute.xlu0 %636 }
 0x76e   :  { %639 = vst.msk [vmem:[#allocation2 + $0x8] sm:$0xff] %vm357_vm4, %v637_v20 }
 0x76f   :  { %710 = vst.msk [vmem:[#allocation2 + $0x8] sm:$0xff] %vm429_vm5, %v708_v21  ;;  %v5630_v21 = vor.u32 %v6989_v16, %v5629_v15  ;;  %v7010_v15 = vld [vmem:[%s7569_s30 + $0x198] sm:$0xff] }
 0x770   :  { %v7018_v16 = vld [vmem:[%s7569_s30 + $0x1d8] sm:$0xff] }
 0x771   :  { %1145 = vmatpush.bf16.msrb.mxu3 %v5630_v21  ;;  %v7009_v21 = vld [vmem:[%s7569_s30 + $0x190] sm:$0xff] }
 0x775   :  { %v499_v22 = vpop.permute.xlu0 %498  ;;  %v779_v23 = vpop.permute.xlu1 %778 }
 0x776   :  { %502 = vst.msk [vmem:[#allocation2] sm:$0xff] %vm501_vm6, %v499_v22  ;;  %v5631_v22 = vld [vmem:[%s7559_s19 + $0xd0] sm:$0xf0] }
 0x777   :  { %781 = vst.msk [vmem:[#allocation2 + $0x8] sm:$0xff] %vm501_vm6, %v779_v23  ;;  %v5637_v23 = vld [vmem:[%s7559_s19 + $0x98] sm:$0xf] }
 0x77d   :  { %v782_v19 = vld [vmem:[#allocation2] sm:$0xff] }
 0x77e   :  { %v783_v24 = vld [vmem:[#allocation2 + $0x8] sm:$0xff] }
 0x77f   :  { %v784_v25 = vpack.c.bf16 %v783_v24, %v782_v19  ;;  %v6990_v19 = vld [vmem:[%s7559_s19 + $0xd4] sm:$0xf0]  ;;  %v5634_v24 = vor.u32 %v6987_v18, %v5631_v22  ;;  %v6995_v18 = vld [vmem:[%s7569_s30 + $0x120] sm:$0xff]  ;;  %v7017_v22 = vld [vmem:[%s7569_s30 + $0x1d0] sm:$0xff] }
 0x781   :  { %5574 = vmatmul.msk.bf16.vlgmr.msrb.gmra.mxu0 %vm202_vm2, %v784_v25  ;;  %v5638_v25 = vor.u32 %v6990_v19, %v5637_v23  ;;  %1159 = vmatpush.bf16.msrb.mxu2 %v5634_v24  ;;  %v6994_v23 = vld [vmem:[%s7569_s30 + $0x118] sm:$0xff]  ;;  %v7008_v24 = vld [vmem:[%s7569_s30 + $0x188] sm:$0xff] }
 0x782   :  { %v7002_v19 = vld [vmem:[%s7569_s30 + $0x158] sm:$0xff] }
 0x783   :  { %1173 = vmatpush.bf16.msra.mxu1 %v5638_v25  ;;  %v7016_v25 = vld [vmem:[%s7569_s30 + $0x1c8] sm:$0xff] }
 0x7fe   :  { %v817_v27 = vpop.f32.mrf.mxu0 }
 0x7ff   :  { %v818_v28 = vadd.f32 %v7328_v26, %v817_v27  ;;  %v5639_v27 = vld [vmem:[%s7559_s19 + $0xd8] sm:$0xf0] }
 0x801   :  { %v822_v29 = vadd.f32 %v818_v28, %v7679_v12  ;;  %v7809_v12 = vsel %vm837_vm7, %v7376_v36, %v836_v41  ;;  %v5613_v28 = vld [vmem:[%s7559_s19 + $0x10] sm:$0xf]  ;;  %v5615_v36 = vld [vmem:[%s7559_s19 + $0x50] sm:$0xf0]  ;;  %v5622_v41 = vor.u32 %v6986_v39, %v5621_v37  ;;  %v6999_v37 = vld [vmem:[%s7569_s30 + $0x140] sm:$0xff] }
 0x802   :  { %v6958_v39 = vld [vmem:[%s7569_s30 + $0x38] sm:$0xff] }
 0x803   :  { %v826_v30 = vsel %vm202_vm2, %v822_v29, 0.0  ;;  %1174 = vmatpush.bf16.msra.mxu1 %v5622_v41  ;;  %v6972_v41 = vld [vmem:[%s7569_s30 + $0xa8] sm:$0xff] }
 0x804   :  { %827 = vadd.xlane.f32.xlu2 %v826_v30 }
 0x806   :  { %v819_v31 = vpop.f32.mrf.mxu0 }
 0x807   :  { %v820_v32 = vadd.f32 %v7328_v26, %v819_v31  ;;  %v6988_v26 = vld [vmem:[%s7559_s19 + $0x9c] sm:$0xf] }
 0x808   :  { %v5642_v31 = vor.u32 %v6988_v26, %v5639_v27  ;;  %v6993_v26 = vld [vmem:[%s7569_s30 + $0x110] sm:$0xff] }
 0x809   :  { %v823_v33 = vadd.f32 %v820_v32, %v7681_v13  ;;  %v6985_v32 = vld [vmem:[%s7559_s19 + $0x4c] sm:$0xf0] }
 0x80a   :  { %v5614_v35 = vor.u32 %v6985_v32, %v5613_v28  ;;  %1187 = vmatpush.bf16.msrb.mxu0 %v5642_v31  ;;  %v7001_v27 = vld [vmem:[%s7569_s30 + $0x150] sm:$0xff]  ;;  %v7007_v28 = vld [vmem:[%s7569_s30 + $0x180] sm:$0xff]  ;;  %v6982_v31 = vld [vmem:[%s7569_s30 + $0xf8] sm:$0xff] }
 0x80b   :  { %v829_v34 = vsel %vm202_vm2, %v823_v33, 0.0  ;;  %v6992_v32 = vld [vmem:[%s7569_s30 + $0x108] sm:$0xff] }
 0x80c   :  { %830 = vadd.xlane.f32.xlu0 %v829_v34  ;;  %1146 = vmatpush.bf16.msrb.mxu3 %v5614_v35  ;;  %v6981_v35 = vld [vmem:[%s7569_s30 + $0xf0] sm:$0xff] }
 0x877   :  { %v828_v42 = vpop.xlane.xlu2 %827 }
 0x878   :  { %v839_v13 = vmul.f32 %v7809_v12, %v828_v42  ;;  %v6984_v42 = vld [vmem:[%s7559_s19 + $0x1c] sm:$0xf] }
 0x87a   :  { %v7812_v43 = vsub.f32 %v822_v29, %v839_v13  ;;  %v5623_v13 = vld [vmem:[%s7559_s19 + $0x58] sm:$0xf0] }
 0x87c   :  { %v843_v44 = vmul.f32 %v7812_v43, %v7812_v43 }
 0x87e   :  { %v845_v45 = vsel %vm202_vm2, %v843_v44, 0.0 }
 0x87f   :  { %v831_v46 = vpop.xlane.xlu0 %830  ;;  %846 = vadd.xlane.f32.xlu1 %v845_v45  ;;  %v5626_v45 = vor.u32 %v6984_v42, %v5623_v13  ;;  %v6980_v42 = vld [vmem:[%s7569_s30 + $0xe8] sm:$0xff]  ;;  %v6957_v13 = vld [vmem:[%s7569_s30 + $0x30] sm:$0xff] }
 0x880   :  { %v840_v47 = vmul.f32 %v7809_v12, %v831_v46 }
 0x881   :  { %1188 = vmatpush.bf16.msrb.mxu0 %v5626_v45  ;;  %v6971_v45 = vld [vmem:[%s7569_s30 + $0xa0] sm:$0xff] }
 0x882   :  { %v7818_v48 = vsub.f32 %v823_v33, %v840_v47  ;;  %v6983_v33 = vld [vmem:[%s7559_s19 + $0x14] sm:$0xf] }
 0x883   :  { %v5618_v40 = vor.u32 %v6983_v33, %v5615_v36  ;;  %v7000_v33 = vld [vmem:[%s7569_s30 + $0x148] sm:$0xff]  ;;  %v6991_v36 = vld [vmem:[%s7569_s30 + $0x100] sm:$0xff] }
 0x884   :  { %v844_v17 = vmul.f32 %v7818_v48, %v7818_v48 }
 0x885   :  { %1160 = vmatpush.bf16.msrb.mxu2 %v5618_v40  ;;  %v6966_v40 = vld [vmem:[%s7569_s30 + $0x78] sm:$0xff] }
 0x886   :  { %v848_v49 = vsel %vm202_vm2, %v844_v17, 0.0 }
 0x887   :  { %849 = vadd.xlane.f32.xlu2 %v848_v49 }
 0x8f2   :  { %v847_v61 = vpop.xlane.xlu1 %846 }
 0x8f3   :  { %v851_v63 = vmul.f32 %v847_v61, %v7809_v12 }
 0x8f5   :  { %v853_v38 = vadd.f32 1e-05, %v851_v63 }
 0x8f7   :  { %7377 = vrsqrt.f32 %v853_v38  ;;  %vm861_vm9 = vweird.f32 %v853_v38 }
 0x8fa   :  { %v850_v14 = vpop.xlane.xlu2 %849 }
 0x8fb   :  { %v852_v20 = vmul.f32 %v850_v14, %v7809_v12  ;;  %v7004_v14 = vld [vmem:[%s7569_s30 + $0x168] sm:$0xff] }
 0x8fd   :  { %v7378_v29 = vpop.eup %7377  ;;  %v854_v30 = vadd.f32 1e-05, %v852_v20  ;;  %v7003_v20 = vld [vmem:[%s7569_s30 + $0x160] sm:$0xff] }
 0x8fe   :  { %v856_v34 = vmul.f32 %v7378_v29, %v853_v38  ;;  %vm862_vm8 = vweird.f32 %v7378_v29  ;;  %v7005_v38 = vld [vmem:[%s7569_s30 + $0x170] sm:$0xff] }
 0x8ff   :  { %7379 = vrsqrt.f32 %v854_v30  ;;  %vm863_vm10 = vmor %vm861_vm9, %vm862_vm8  ;;  %vm871_vm12 = vweird.f32 %v854_v30 }
 0x900   :  { %v857_v44 = vmul.f32 %v7378_v29, %v856_v34  ;;  %v6973_v34 = vld [vmem:[%s7569_s30 + $0xb0] sm:$0xff] }
 0x902   :  { %v858_v46 = vmul.f32 0.5, %v857_v44  ;;  %v6965_v44 = vld [vmem:[%s7569_s30 + $0x70] sm:$0xff] }
 0x904   :  { %v859_v47 = vsub.f32 1.5, %v858_v46  ;;  %v6979_v46 = vld [vmem:[%s7569_s30 + $0xe0] sm:$0xff] }
 0x905   :  { %v7380_v17 = vpop.eup %7379 }
 0x906   :  { %v860_v49 = vmul.f32 %v7378_v29, %v859_v47  ;;  %v866_v50 = vmul.f32 %v7380_v17, %v854_v30  ;;  %vm872_vm11 = vweird.f32 %v7380_v17  ;;  %v6974_v30 = vld [vmem:[%s7569_s30 + $0xb8] sm:$0xff]  ;;  %v6956_v47 = vld [vmem:[%s7569_s30 + $0x28] sm:$0xff] }
 0x907   :  { %vm873_vm13 = vmor %vm871_vm12, %vm872_vm11 }
 0x908   :  { %v867_v51 = vmul.f32 %v7380_v17, %v866_v50  ;;  %v864_v52 = vsel %vm863_vm10, %v7378_v29, %v860_v49  ;;  %v7015_v29 = vld [vmem:[%s7569_s30 + $0x1c0] sm:$0xff]  ;;  %v6970_v49 = vld [vmem:[%s7569_s30 + $0x98] sm:$0xff] }
 0x909   :  { %v875_v56 = vmul.f32 %v864_v52, %v7812_v43  ;;  %v7014_v43 = vld [vmem:[%s7569_s30 + $0x1b8] sm:$0xff] }
 0x90a   :  { %v868_v53 = vmul.f32 0.5, %v867_v51  ;;  %v6978_v50 = vld [vmem:[%s7569_s30 + $0xd8] sm:$0xff] }
 0x90b   :  { %v880_v60 = vmul.f32 %v7329_v55, %v875_v56  ;;  %v6977_v56 = vld [vmem:[%s7569_s30 + $0xd0] sm:$0xff] }
 0x90c   :  { %v869_v54 = vsub.f32 1.5, %v868_v53  ;;  %v6955_v53 = vld [vmem:[%s7569_s30 + $0x20] sm:$0xff] }
 0x90d   :  { %v7861_v63 = vadd.f32 %v7330_v59, %v880_v60 }
 0x90e   :  { %v870_v57 = vmul.f32 %v7380_v17, %v869_v54  ;;  %v6963_v54 = vld [vmem:[%s7569_s30 + $0x60] sm:$0xff] }
 0x910   :  { %v874_v58 = vsel %vm873_vm13, %v7380_v17, %v870_v57  ;;  %v6964_v17 = vld [vmem:[%s7569_s30 + $0x68] sm:$0xff]  ;;  %v6954_v57 = vld [vmem:[%s7569_s30 + $0x18] sm:$0xff] }
 0x911   :  { %v876_v61 = vmul.f32 %v874_v58, %v7818_v48  ;;  %v7013_v48 = vld [vmem:[%s7569_s30 + $0x1b0] sm:$0xff]  ;;  %v6962_v58 = vld [vmem:[%s7569_s30 + $0x58] sm:$0xff] }
 0x913   :  { %v881_v62 = vmul.f32 %v7329_v55, %v876_v61  ;;  %v6969_v55 = vld [vmem:[%s7569_s30 + $0x90] sm:$0xff] }
 0x915   :  { %v7863_v0 = vadd.f32 %v7330_v59, %v881_v62  ;;  %v6968_v59 = vld [vmem:[%s7569_s30 + $0x88] sm:$0xff] }
 0x916   :  { %v6976_v62 = vld [vmem:[%s7569_s30 + $0xc8] sm:$0xff] }
 0x917   :  { %v7867_v1 = vpack.c.bf16 %v7863_v0, %v7861_v63 }
 0x919   :  { %5607 = vmatmul.msk.bf16.vlgmr.msra.gmra.mxu3 %vm202_vm2, %v7867_v1  ;;  %5608 = vmatmul.msk.bf16.vlgmr.msra.gmra.mxu2 %vm202_vm2, %v7867_v1 }
 0x91a   :  { %5609 = vmatmul.msk.bf16.vlgmr.msrb.gmra.mxu1 %vm202_vm2, %v7867_v1  ;;  %5610 = vmatmul.msk.bf16.vlgmr.msra.gmra.mxu0 %vm202_vm2, %v7867_v1 }
 0x91b   :  { %1491 = vmatpush.bf16.msrb.mxu1 %v7014_v43  ;;  %1505 = vmatpush.bf16.msra.mxu0 %v7022_v2  ;;  %v6953_v43 = vld [vmem:[%s7569_s30 + $0x10] sm:$0xff] }
 0x91c   :  { %1463 = vmatpush.bf16.msra.mxu3 %v6998_v3  ;;  %1477 = vmatpush.bf16.msra.mxu2 %v7006_v4  ;;  %v6961_v2 = vld [vmem:[%s7569_s30 + $0x50] sm:$0xff] }
 0x91f   :  { %1492 = vmatpush.bf16.msrb.mxu1 %v7013_v48  ;;  %1506 = vmatpush.bf16.msra.mxu0 %v7021_v5  ;;  %v6967_v48 = vld [vmem:[%s7569_s30 + $0x80] sm:$0xff] }
 0x920   :  { %1464 = vmatpush.bf16.msra.mxu3 %v6997_v6  ;;  %1478 = vmatpush.bf16.msra.mxu2 %v7005_v38  ;;  %v6975_v5 = vld [vmem:[%s7569_s30 + $0xc0] sm:$0xff]  ;;  %v6952_v6 = vld [vmem:[%s7569_s30 + $0x8] sm:$0xff] }
 0x921   :  { %v6960_v38 = vld [vmem:[%s7569_s30 + $0x48] sm:$0xff] }
 0x923   :  { %1493 = vmatpush.bf16.msrb.mxu1 %v7012_v7  ;;  %1507 = vmatpush.bf16.msra.mxu0 %v7020_v8 }
 0x924   :  { %1465 = vmatpush.bf16.msra.mxu3 %v6996_v11  ;;  %1479 = vmatpush.bf16.msra.mxu2 %v7004_v14  ;;  %v1089_v11 = vld [vmem:[%s7564_s24 + $0x4] sm:$0xf] }
 0x927   :  { %1494 = vmatpush.bf16.msrb.mxu1 %v7011_v9  ;;  %1508 = vmatpush.bf16.msra.mxu0 %v7019_v10  ;;  %v6951_v9 = vld [vmem:[%s7569_s30] sm:$0xff] }
 0x928   :  { %1466 = vmatpush.bf16.msra.mxu3 %v6995_v18  ;;  %1480 = vmatpush.bf16.msra.mxu2 %v7003_v20  ;;  %v6959_v10 = vld [vmem:[%s7569_s30 + $0x40] sm:$0xff]  ;;  %v1094_v18 = vperm.slane %v1089_v11, 3 }
 0x929   :  { %5643 = vmatmul.msk.bf16.vlgmr.msrb.gmra.mxu3 %vm202_vm2, %v7867_v1  ;;  %5644 = vmatmul.msk.bf16.vlgmr.msrb.gmra.mxu2 %vm202_vm2, %v7867_v1 }
 0x92a   :  { %5645 = vmatmul.msk.bf16.vlgmr.msra.gmra.mxu1 %vm202_vm2, %v7867_v1  ;;  %5646 = vmatmul.msk.bf16.vlgmr.msrb.gmra.mxu0 %vm202_vm2, %v7867_v1 }
 0x92b   :  { %1495 = vmatpush.bf16.msrb.mxu1 %v7010_v15  ;;  %1509 = vmatpush.bf16.msra.mxu0 %v7018_v16  ;;  %v1093_v16 = vperm.slane %v1089_v11, 2 }
 0x92c   :  { %1467 = vmatpush.bf16.msra.mxu3 %v6994_v23  ;;  %1481 = vmatpush.bf16.msra.mxu2 %v7002_v19  ;;  %v1091_v19 = vperm.slane %v1089_v11, 0 }
 0x92f   :  { %1496 = vmatpush.bf16.msrb.mxu1 %v7009_v21  ;;  %1510 = vmatpush.bf16.msra.mxu0 %v7017_v22 }
 0x930   :  { %1468 = vmatpush.bf16.msra.mxu3 %v6993_v26  ;;  %1482 = vmatpush.bf16.msra.mxu2 %v7001_v27  ;;  %v5929_v27 = vld [vmem:[%s7559_s19 + $0xa8] sm:$0xf] }
 0x933   :  { %1497 = vmatpush.bf16.msrb.mxu1 %v7008_v24  ;;  %1511 = vmatpush.bf16.msra.mxu0 %v7016_v25  ;;  %v1092_v24 = vperm.slane %v1089_v11, 1 }
 0x934   :  { %1469 = vmatpush.bf16.msra.mxu3 %v6992_v32  ;;  %1483 = vmatpush.bf16.msra.mxu2 %v7000_v33  ;;  %v5931_v32 = vld [vmem:[%s7559_s19 + $0xe8] sm:$0xf0] }
 0x937   :  { %1498 = vmatpush.bf16.msrb.mxu1 %v7007_v28  ;;  %1512 = vmatpush.bf16.msra.mxu0 %v7015_v29 }
 0x938   :  { %1470 = vmatpush.bf16.msra.mxu3 %v6991_v36  ;;  %1484 = vmatpush.bf16.msra.mxu2 %v6999_v37 }
 0x93b   :  { %1739 = vmatpush.bf16.msra.mxu1 %v6974_v30  ;;  %1753 = vmatpush.bf16.msrb.mxu0 %v6982_v31  ;;  %v7030_v30 = vld [vmem:[%s7559_s19 + $0xe4] sm:$0xf0]  ;;  %v7028_v31 = vld [vmem:[%s7559_s19 + $0xac] sm:$0xf] }
 0x93c   :  { %1711 = vmatpush.bf16.msrb.mxu3 %v6958_v39  ;;  %1725 = vmatpush.bf16.msrb.mxu2 %v6966_v40  ;;  %v5930_v40 = vor.u32 %v7030_v30, %v5929_v27 }
 0x93f   :  { %1740 = vmatpush.bf16.msra.mxu1 %v6973_v34  ;;  %1754 = vmatpush.bf16.msrb.mxu0 %v6981_v35 }
 0x940   :  { %1712 = vmatpush.bf16.msrb.mxu3 %v6957_v13  ;;  %1726 = vmatpush.bf16.msrb.mxu2 %v6965_v44 }
 0x943   :  { %1741 = vmatpush.bf16.msra.mxu1 %v6972_v41  ;;  %1755 = vmatpush.bf16.msrb.mxu0 %v6980_v42  ;;  %v5934_v41 = vor.u32 %v7028_v31, %v5931_v32  ;;  %v896_v42 = vld [vmem:[%s7564_s24] sm:$0xf] }
 0x944   :  { %1713 = vmatpush.bf16.msrb.mxu3 %v6956_v47  ;;  %1727 = vmatpush.bf16.msrb.mxu2 %v6964_v17  ;;  %v5913_v47 = vld [vmem:[%s7559_s19 + $0x28] sm:$0xf]  ;;  %v899_v27 = vperm.slane %v896_v42, 1 }
 0x945   :  { %v7026_v17 = vld [vmem:[%s7559_s19 + $0x64] sm:$0xf0] }
 0x947   :  { %1742 = vmatpush.bf16.msra.mxu1 %v6971_v45  ;;  %1756 = vmatpush.bf16.msrb.mxu0 %v6979_v46 }
 0x948   :  { %1714 = vmatpush.bf16.msrb.mxu3 %v6955_v53  ;;  %1728 = vmatpush.bf16.msrb.mxu2 %v6963_v54  ;;  %v7024_v53 = vld [vmem:[%s7559_s19 + $0x2c] sm:$0xf] }
 0x949   :  { %v5915_v54 = vld [vmem:[%s7559_s19 + $0x68] sm:$0xf0] }
 0x94b   :  { %1743 = vmatpush.bf16.msra.mxu1 %v6970_v49  ;;  %1757 = vmatpush.bf16.msrb.mxu0 %v6978_v50 }
 0x94c   :  { %1715 = vmatpush.bf16.msrb.mxu3 %v6954_v57  ;;  %1729 = vmatpush.bf16.msrb.mxu2 %v6962_v58  ;;  %v7027_v57 = vld [vmem:[%s7559_s19 + $0xa4] sm:$0xf] }
 0x94d   :  { %v5923_v58 = vld [vmem:[%s7559_s19 + $0xe0] sm:$0xf0] }
 0x94f   :  { %1744 = vmatpush.bf16.msra.mxu1 %v6969_v55  ;;  %1758 = vmatpush.bf16.msrb.mxu0 %v6977_v56  ;;  %v5921_v55 = vld [vmem:[%s7559_s19 + $0xa0] sm:$0xf] }
 0x950   :  { %1716 = vmatpush.bf16.msrb.mxu3 %v6953_v43  ;;  %1730 = vmatpush.bf16.msrb.mxu2 %v6961_v2  ;;  %v7029_v56 = vld [vmem:[%s7559_s19 + $0xdc] sm:$0xf0] }
 0x951   :  { %v5922_v11 = vor.u32 %v7029_v56, %v5921_v55  ;;  %v7036_v55 = vld [vmem:[%s7569_s30 + $0x228] sm:$0xff] }
 0x952   :  { %v7044_v56 = vld [vmem:[%s7569_s30 + $0x268] sm:$0xff] }
 0x953   :  { %1745 = vmatpush.bf16.msra.mxu1 %v6968_v59  ;;  %1759 = vmatpush.bf16.msrb.mxu0 %v6976_v62 }
 0x954   :  { %1717 = vmatpush.bf16.msrb.mxu3 %v6952_v6  ;;  %1731 = vmatpush.bf16.msrb.mxu2 %v6960_v38  ;;  %v5914_v6 = vor.u32 %v7026_v17, %v5913_v47  ;;  %v5918_v38 = vor.u32 %v7024_v53, %v5915_v54  ;;  %v7037_v47 = vld [vmem:[%s7569_s30 + $0x230] sm:$0xff] }
 0x955   :  { %v7045_v17 = vld [vmem:[%s7569_s30 + $0x270] sm:$0xff] }
 0x957   :  { %1746 = vmatpush.bf16.msra.mxu1 %v6967_v48  ;;  %1760 = vmatpush.bf16.msrb.mxu0 %v6975_v5  ;;  %v900_v48 = vperm.slane %v896_v42, 2  ;;  %v901_v5 = vperm.slane %v896_v42, 3 }
 0x958   :  { %1718 = vmatpush.bf16.msrb.mxu3 %v6951_v9  ;;  %1732 = vmatpush.bf16.msrb.mxu2 %v6959_v10 }
 0x997   :  { %v7933_v51 = vpop.f32.mrf.mxu1  ;;  %v7935_v52 = vpop.f32.mrf.mxu0 }
 0x99c   :  { %v7944_v60 = vpop.f32.mrf.mxu3  ;;  %v7946_v61 = vpop.f32.mrf.mxu2 }
 0x99f   :  { %v7951_v3 = vpop.f32.mrf.mxu1  ;;  %v7953_v4 = vpop.f32.mrf.mxu0 }
 0x9a4   :  { %v7959_v7 = vpop.f32.mrf.mxu3  ;;  %v7961_v8 = vpop.f32.mrf.mxu2 }
 0x9a7   :  { %v1176_v14 = vpop.f32.mrf.mxu1  ;;  %v1190_v15 = vpop.f32.mrf.mxu0 }
 0x9a8   :  { %v1177_v22 = vadd.f32 %v1176_v14, %v1093_v16  ;;  %v1191_v23 = vadd.f32 %v1190_v15, %v1094_v18  ;;  %v5926_v14 = vor.u32 %v7027_v57, %v5923_v58  ;;  %v5905_v15 = vld [vmem:[%s7559_s19 + $0x20] sm:$0xf]  ;;  %v7049_v57 = vld [vmem:[%s7569_s30 + $0x290] sm:$0xff] }
 0x9a9   :  { %v7057_v58 = vld [vmem:[%s7569_s30 + $0x2d0] sm:$0xff] }
 0x9aa   :  { %v1197_v33 = vmax.f32 %v1177_v22, 0.0  ;;  %v1198_v34 = vmax.f32 %v1191_v23, 0.0  ;;  %v1003_v22 = vadd.f32 %v7953_v4, %v901_v5 }
 0x9ac   :  { %v1148_v20 = vpop.f32.mrf.mxu3  ;;  %v1162_v21 = vpop.f32.mrf.mxu2 }
 0x9ad   :  { %v1149_v37 = vadd.f32 %v1148_v20, %v1091_v19  ;;  %v1163_v39 = vadd.f32 %v1162_v21, %v1092_v24  ;;  %v5907_v20 = vld [vmem:[%s7559_s19 + $0x60] sm:$0xf0]  ;;  %v989_v21 = vadd.f32 %v7951_v3, %v900_v48  ;;  %v975_v3 = vadd.f32 %v7961_v8, %v899_v27 }
 0x9af   :  { %v1178_v25 = vpop.f32.mrf.mxu1  ;;  %v1192_v26 = vpop.f32.mrf.mxu0  ;;  %v1195_v59 = vmax.f32 %v1149_v37, 0.0  ;;  %v1196_v62 = vmax.f32 %v1163_v39, 0.0  ;;  %v7053_v39 = vld [vmem:[%s7569_s30 + $0x2b0] sm:$0xff] }
 0x9b0   :  { %v1179_v28 = vadd.f32 %v1178_v25, %v1093_v16  ;;  %v1193_v29 = vadd.f32 %v1192_v26, %v1094_v18  ;;  %v7025_v16 = vld [vmem:[%s7559_s19 + $0x5c] sm:$0xf0]  ;;  %v7023_v18 = vld [vmem:[%s7559_s19 + $0x24] sm:$0xf]  ;;  %v1001_v25 = vadd.f32 %v7935_v52, %v901_v5  ;;  %v898_v26 = vperm.slane %v896_v42, 0  ;;  %v7060_v42 = vld [vmem:[%s7569_s30 + $0x2e8] sm:$0xff] }
 0x9b1   :  { %v5906_v23 = vor.u32 %v7025_v16, %v5905_v15  ;;  %v7033_v15 = vld [vmem:[%s7569_s30 + $0x210] sm:$0xff] }
 0x9b2   :  { %v1201_v35 = vmax.f32 %v1179_v28, 0.0  ;;  %v1202_v36 = vmax.f32 %v1193_v29, 0.0  ;;  %v1011_v28 = vmax.f32 %v989_v21, 0.0  ;;  %v1012_v29 = vmax.f32 %v1003_v22, 0.0  ;;  %v7041_v16 = vld [vmem:[%s7569_s30 + $0x250] sm:$0xff]  ;;  %v7032_v21 = vld [vmem:[%s7569_s30 + $0x208] sm:$0xff] }
 0x9b3   :  { %v961_v30 = vadd.f32 %v7959_v7, %v898_v26  ;;  %v1008_v31 = vmax.f32 %v1001_v25, 0.0  ;;  %v959_v32 = vadd.f32 %v7944_v60, %v898_v26  ;;  %v7054_v60 = vld [vmem:[%s7569_s30 + $0x2b8] sm:$0xff]  ;;  %v7040_v22 = vld [vmem:[%s7569_s30 + $0x248] sm:$0xff] }
 0x9b4   :  { %v1205_v13 = vpack.c.bf16 %v1201_v35, %v1197_v33  ;;  %v1206_v44 = vpack.c.bf16 %v1202_v36, %v1198_v34  ;;  %v1150_v45 = vpop.f32.mrf.mxu3  ;;  %v1164_v46 = vpop.f32.mrf.mxu2  ;;  %v973_v33 = vadd.f32 %v7946_v61, %v899_v27  ;;  %v1010_v35 = vmax.f32 %v975_v3, 0.0  ;;  %v7062_v61 = vld [vmem:[%s7569_s30 + $0x2f8] sm:$0xff] }
 0x9b5   :  { %v1151_v49 = vadd.f32 %v1150_v45, %v1091_v19  ;;  %v1165_v50 = vadd.f32 %v1164_v46, %v1092_v24  ;;  %v5910_v19 = vor.u32 %v7023_v18, %v5907_v20  ;;  %v987_v24 = vadd.f32 %v7933_v51, %v900_v48  ;;  %v7051_v45 = vld [vmem:[%s7569_s30 + $0x2a0] sm:$0xff]  ;;  %v6093_v25 = vld [vmem:[%s7559_s19 + $0xb8] sm:$0xf]  ;;  %v7068_v27 = vld [vmem:[%s7559_s19 + $0xbc] sm:$0xf] }
 0x9b6   :  { %1499 = vmatmul.bf16.vlgmr.msrb.gmra.mxu1 %v1205_v13  ;;  %1513 = vmatmul.bf16.vlgmr.msra.gmra.mxu0 %v1206_v44  ;;  %v1016_v51 = vpack.c.bf16 %v1012_v29, %v1008_v31  ;;  %v1009_v52 = vmax.f32 %v961_v30, 0.0  ;;  %v1005_v7 = vmax.f32 %v959_v32, 0.0  ;;  %v1006_v8 = vmax.f32 %v973_v33, 0.0  ;;  %v7038_v13 = vld [vmem:[%s7569_s30 + $0x238] sm:$0xff]  ;;  %v7059_v46 = vld [vmem:[%s7569_s30 + $0x2e0] sm:$0xff] }
 0x9b7   :  { %v1199_v43 = vmax.f32 %v1151_v49, 0.0  ;;  %v1200_v2 = vmax.f32 %v1165_v50, 0.0  ;;  %1859 = vmatpush.bf16.msrb.mxu1 %v5930_v40  ;;  %1873 = vmatpush.bf16.msra.mxu0 %v5934_v41  ;;  %v1007_v4 = vmax.f32 %v987_v24, 0.0  ;;  %v7061_v40 = vld [vmem:[%s7569_s30 + $0x2f0] sm:$0xff]  ;;  %v7052_v41 = vld [vmem:[%s7569_s30 + $0x2a8] sm:$0xff]  ;;  %v7046_v44 = vld [vmem:[%s7569_s30 + $0x278] sm:$0xff] }
 0x9b8   :  { %v1013_v36 = vpack.c.bf16 %v1009_v52, %v1005_v7  ;;  %v1014_v37 = vpack.c.bf16 %v1010_v35, %v1006_v8  ;;  %v7050_v49 = vld [vmem:[%s7569_s30 + $0x298] sm:$0xff]  ;;  %v7031_v29 = vld [vmem:[%s7569_s30 + $0x200] sm:$0xff] }
 0x9b9   :  { %v1203_v9 = vpack.c.bf16 %v1199_v43, %v1195_v59  ;;  %v1204_v10 = vpack.c.bf16 %v1200_v2, %v1196_v62  ;;  %v1015_v34 = vpack.c.bf16 %v1011_v28, %v1007_v4  ;;  %v7058_v50 = vld [vmem:[%s7569_s30 + $0x2d8] sm:$0xff]  ;;  %v7035_v59 = vld [vmem:[%s7569_s30 + $0x220] sm:$0xff]  ;;  %v7048_v43 = vld [vmem:[%s7569_s30 + $0x288] sm:$0xff] }
 0x9ba   :  { %v7043_v62 = vld [vmem:[%s7569_s30 + $0x260] sm:$0xff]  ;;  %v7056_v2 = vld [vmem:[%s7569_s30 + $0x2c8] sm:$0xff]  ;;  %v7070_v26 = vld [vmem:[%s7559_s19 + $0xf4] sm:$0xf0] }
 0x9bb   :  { %1471 = vmatmul.bf16.vlgmr.msra.gmra.mxu3 %v1203_v9  ;;  %1485 = vmatmul.bf16.vlgmr.msra.gmra.mxu2 %v1204_v10  ;;  %v7047_v9 = vld [vmem:[%s7569_s30 + $0x280] sm:$0xff]  ;;  %v6094_v3 = vor.u32 %v7070_v26, %v6093_v25  ;;  %v6095_v4 = vld [vmem:[%s7559_s19 + $0xf8] sm:$0xf0]  ;;  %v7066_v52 = vld [vmem:[%s7559_s19 + $0x74] sm:$0xf0] }
 0x9bc   :  { %1860 = vmatpush.bf16.msrb.mxu1 %v5914_v6  ;;  %1874 = vmatpush.bf16.msra.mxu0 %v5918_v38  ;;  %v7034_v6 = vld [vmem:[%s7569_s30 + $0x218] sm:$0xff]  ;;  %v7039_v30 = vld [vmem:[%s7569_s30 + $0x240] sm:$0xff]  ;;  %v6098_v31 = vor.u32 %v7068_v27, %v6095_v4 }
 0x9bd   :  { %1831 = vmatpush.bf16.msra.mxu3 %v5922_v11  ;;  %1845 = vmatpush.bf16.msra.mxu2 %v5926_v14  ;;  %v7042_v38 = vld [vmem:[%s7569_s30 + $0x258] sm:$0xff]  ;;  %v7055_v14 = vld [vmem:[%s7569_s30 + $0x2c0] sm:$0xff] }
 0x9be   :  { %v7064_v35 = vld [vmem:[%s7559_s19 + $0x3c] sm:$0xf] }
 0x9bf   :  { %v6079_v8 = vld [vmem:[%s7559_s19 + $0x78] sm:$0xf0] }
 0x9c1   :  { %1832 = vmatpush.bf16.msra.mxu3 %v5906_v23  ;;  %1846 = vmatpush.bf16.msra.mxu2 %v5910_v19 }
 0x9c6   :  { %1747 = vmatmul.bf16.vlgmr.msra.gmra.mxu1 %v1015_v34  ;;  %1761 = vmatmul.bf16.vlgmr.msrb.gmra.mxu0 %v1016_v51  ;;  %v6077_v51 = vld [vmem:[%s7559_s19 + $0x38] sm:$0xf] }
 0x9c7   :  { %2177 = vmatpush.bf16.msra.mxu1 %v7054_v60  ;;  %2191 = vmatpush.bf16.msrb.mxu0 %v7062_v61  ;;  %v6078_v7 = vor.u32 %v7066_v52, %v6077_v51  ;;  %v6082_v60 = vor.u32 %v7064_v35, %v6079_v8  ;;  %v1775_v61 = vld [vmem:[%s7564_s24 + $0x8] sm:$0xf] }
 0x9cb   :  { %1719 = vmatmul.bf16.vlgmr.msrb.gmra.mxu3 %v1013_v36  ;;  %1733 = vmatmul.bf16.vlgmr.msrb.gmra.mxu2 %v1014_v37 }
 0x9cc   :  { %2178 = vmatpush.bf16.msra.mxu1 %v7053_v39  ;;  %2192 = vmatpush.bf16.msrb.mxu0 %v7061_v40  ;;  %v6085_v39 = vld [vmem:[%s7559_s19 + $0xb0] sm:$0xf] }
 0x9cd   :  { %2149 = vmatpush.bf16.msrb.mxu3 %v7038_v13  ;;  %2163 = vmatpush.bf16.msrb.mxu2 %v7046_v44  ;;  %v7069_v40 = vld [vmem:[%s7559_s19 + $0xec] sm:$0xf0] }
 0x9ce   :  { %v6086_v44 = vor.u32 %v7069_v40, %v6085_v39  ;;  %v7093_v39 = vld [vmem:[%s7569_s30 + $0x3b0] sm:$0xff] }
 0x9cf   :  { %v7101_v40 = vld [vmem:[%s7569_s30 + $0x3f0] sm:$0xff] }
 0x9d0   :  { %2179 = vmatpush.bf16.msra.mxu1 %v7052_v41  ;;  %2193 = vmatpush.bf16.msrb.mxu0 %v7060_v42  ;;  %v7067_v41 = vld [vmem:[%s7559_s19 + $0xb4] sm:$0xf] }
 0x9d1   :  { %2150 = vmatpush.bf16.msrb.mxu3 %v7037_v47  ;;  %2164 = vmatpush.bf16.msrb.mxu2 %v7045_v17  ;;  %v7065_v47 = vld [vmem:[%s7559_s19 + $0x6c] sm:$0xf0] }
 0x9d4   :  { %2180 = vmatpush.bf16.msra.mxu1 %v7051_v45  ;;  %2194 = vmatpush.bf16.msrb.mxu0 %v7059_v46  ;;  %v6087_v45 = vld [vmem:[%s7559_s19 + $0xf0] sm:$0xf0]  ;;  %v6069_v46 = vld [vmem:[%s7559_s19 + $0x30] sm:$0xf] }
 0x9d5   :  { %2151 = vmatpush.bf16.msrb.mxu3 %v7036_v55  ;;  %2165 = vmatpush.bf16.msrb.mxu2 %v7044_v56  ;;  %v6090_v17 = vor.u32 %v7067_v41, %v6087_v45  ;;  %v6070_v55 = vor.u32 %v7065_v47, %v6069_v46  ;;  %v1779_v56 = vperm.slane %v1775_v61, 2  ;;  %v7092_v41 = vld [vmem:[%s7569_s30 + $0x3a8] sm:$0xff]  ;;  %v7098_v45 = vld [vmem:[%s7569_s30 + $0x3d8] sm:$0xff] }
 0x9d6   :  { %5937 = vmatmul.msk.bf16.vlgmr.msrb.gmra.mxu1 %vm202_vm2, %v7867_v1  ;;  %5938 = vmatmul.msk.bf16.vlgmr.msra.gmra.mxu0 %vm202_vm2, %v7867_v1  ;;  %v7078_v46 = vld [vmem:[%s7569_s30 + $0x338] sm:$0xff] }
 0x9d7   :  { %v7086_v47 = vld [vmem:[%s7569_s30 + $0x378] sm:$0xff] }
 0x9d8   :  { %2181 = vmatpush.bf16.msra.mxu1 %v7050_v49  ;;  %2195 = vmatpush.bf16.msrb.mxu0 %v7058_v50  ;;  %v7063_v49 = vld [vmem:[%s7559_s19 + $0x34] sm:$0xf] }
 0x9d9   :  { %2152 = vmatpush.bf16.msrb.mxu3 %v7035_v59  ;;  %2166 = vmatpush.bf16.msrb.mxu2 %v7043_v62  ;;  %v6071_v50 = vld [vmem:[%s7559_s19 + $0x70] sm:$0xf0]  ;;  %s8623_s19 = sld [smem:[#allocation10_spill]] }
 0x9da   :  { %v6074_v62 = vor.u32 %v7063_v49, %v6071_v50  ;;  %v7097_v49 = vld [vmem:[%s7569_s30 + $0x3d0] sm:$0xff] }
 0x9db   :  { %5935 = vmatmul.msk.bf16.vlgmr.msra.gmra.mxu3 %vm202_vm2, %v7867_v1  ;;  %5936 = vmatmul.msk.bf16.vlgmr.msra.gmra.mxu2 %vm202_vm2, %v7867_v1  ;;  %v7077_v50 = vld [vmem:[%s7569_s30 + $0x330] sm:$0xff] }
 0x9dc   :  { %2182 = vmatpush.bf16.msra.mxu1 %v7049_v57  ;;  %2196 = vmatpush.bf16.msrb.mxu0 %v7057_v58  ;;  %v1780_v57 = vperm.slane %v1775_v61, 3 }
 0x9dd   :  { %2153 = vmatpush.bf16.msrb.mxu3 %v7034_v6  ;;  %2167 = vmatpush.bf16.msrb.mxu2 %v7042_v38 }
 0x9e0   :  { %2183 = vmatpush.bf16.msra.mxu1 %v7048_v43  ;;  %2197 = vmatpush.bf16.msrb.mxu0 %v7056_v2 }
 0x9e1   :  { %2154 = vmatpush.bf16.msrb.mxu3 %v7033_v15  ;;  %2168 = vmatpush.bf16.msrb.mxu2 %v7041_v16 }
 0x9e4   :  { %2184 = vmatpush.bf16.msra.mxu1 %v7047_v9  ;;  %2198 = vmatpush.bf16.msrb.mxu0 %v7055_v14 }
 0x9e5   :  { %2155 = vmatpush.bf16.msrb.mxu3 %v7032_v21  ;;  %2169 = vmatpush.bf16.msrb.mxu2 %v7040_v22 }
 0x9e8   :  { %2299 = vmatpush.bf16.msrb.mxu1 %v6094_v3  ;;  %2313 = vmatpush.bf16.msra.mxu0 %v6098_v31 }
 0x9e9   :  { %2156 = vmatpush.bf16.msrb.mxu3 %v7031_v29  ;;  %2170 = vmatpush.bf16.msrb.mxu2 %v7039_v30  ;;  %v1778_v29 = vperm.slane %v1775_v61, 1 }
 0x9ec   :  { %2300 = vmatpush.bf16.msrb.mxu1 %v6078_v7  ;;  %2314 = vmatpush.bf16.msra.mxu0 %v6082_v60  ;;  %v7094_v60 = vld [vmem:[%s7569_s30 + $0x3b8] sm:$0xff] }
 0x9ed   :  { %2271 = vmatpush.bf16.msra.mxu3 %v6086_v44  ;;  %2285 = vmatpush.bf16.msra.mxu2 %v6090_v17  ;;  %v7090_v44 = vld [vmem:[%s7569_s30 + $0x398] sm:$0xff]  ;;  %v7089_v17 = vld [vmem:[%s7569_s30 + $0x390] sm:$0xff] }
 0x9f1   :  { %2272 = vmatpush.bf16.msra.mxu3 %v6070_v55  ;;  %2286 = vmatpush.bf16.msra.mxu2 %v6074_v62  ;;  %v7085_v55 = vld [vmem:[%s7569_s30 + $0x370] sm:$0xff]  ;;  %v7087_v62 = vld [vmem:[%s7569_s30 + $0x380] sm:$0xff] }
 0xa33   :  { %v8013_v53 = vpop.f32.mrf.mxu1  ;;  %v8015_v54 = vpop.f32.mrf.mxu0 }
 0xa3b   :  { %v1502_v48 = vpop.f32.mrf.mxu1  ;;  %v1516_v5 = vpop.f32.mrf.mxu0 }
 0xa3e   :  { %v8028_v10 = vpop.f32.mrf.mxu3  ;;  %v8030_v11 = vpop.f32.mrf.mxu2 }
 0xa43   :  { %v8035_v18 = vpop.f32.mrf.mxu1  ;;  %v8037_v20 = vpop.f32.mrf.mxu0 }
 0xa46   :  { %v1474_v23 = vpop.f32.mrf.mxu3  ;;  %v1488_v19 = vpop.f32.mrf.mxu2 }
 0xa47   :  { %v1489_v24 = vadd.f32 %v1488_v19, %v1474_v23 }
 0xa49   :  { %v1503_v28 = vadd.f32 %v1502_v48, %v1489_v24 }
 0xa4b   :  { %v1750_v32 = vpop.f32.mrf.mxu1  ;;  %v1764_v33 = vpop.f32.mrf.mxu0  ;;  %v1517_v34 = vadd.f32 %v1516_v5, %v1503_v28  ;;  %v1777_v28 = vperm.slane %v1775_v61, 0  ;;  %v7102_v61 = vld [vmem:[%s7569_s30 + $0x3f8] sm:$0xff] }
 0xa4e   :  { %v8051_v36 = vpop.f32.mrf.mxu3  ;;  %v8053_v37 = vpop.f32.mrf.mxu2 }
 0xa53   :  { %v1862_v42 = vpop.f32.mrf.mxu1  ;;  %v1876_v13 = vpop.f32.mrf.mxu0 }
 0xa54   :  { %v1863_v48 = vadd.f32 %v1862_v42, %v1779_v56  ;;  %v1877_v5 = vadd.f32 %v1876_v13, %v1780_v57  ;;  %v7100_v42 = vld [vmem:[%s7569_s30 + $0x3e8] sm:$0xff]  ;;  %v7091_v13 = vld [vmem:[%s7569_s30 + $0x3a0] sm:$0xff] }
 0xa56   :  { %v1722_v58 = vpop.f32.mrf.mxu3  ;;  %v1736_v59 = vpop.f32.mrf.mxu2  ;;  %v1883_v21 = vmax.f32 %v1863_v48, 0.0  ;;  %v1884_v22 = vmax.f32 %v1877_v5, 0.0  ;;  %v7083_v48 = vld [vmem:[%s7569_s30 + $0x360] sm:$0xff] }
 0xa57   :  { %v1723_v43 = vadd.f32 %v1722_v58, %v1517_v34  ;;  %v7076_v58 = vld [vmem:[%s7569_s30 + $0x328] sm:$0xff] }
 0xa59   :  { %v1737_v2 = vadd.f32 %v1736_v59, %v1723_v43  ;;  %v7084_v59 = vld [vmem:[%s7569_s30 + $0x368] sm:$0xff]  ;;  %v7095_v43 = vld [vmem:[%s7569_s30 + $0x3c0] sm:$0xff] }
 0xa5b   :  { %v1751_v6 = vadd.f32 %v1750_v32, %v1737_v2  ;;  %v1864_v38 = vpop.f32.mrf.mxu1  ;;  %v1878_v9 = vpop.f32.mrf.mxu0  ;;  %v7075_v2 = vld [vmem:[%s7569_s30 + $0x320] sm:$0xff] }
 0xa5c   :  { %v1865_v14 = vadd.f32 %v1864_v38, %v1779_v56  ;;  %v1879_v15 = vadd.f32 %v1878_v9, %v1780_v57  ;;  %v7088_v56 = vld [vmem:[%s7569_s30 + $0x388] sm:$0xff]  ;;  %v7074_v38 = vld [vmem:[%s7569_s30 + $0x318] sm:$0xff] }
 0xa5d   :  { %v8064_v16 = vadd.f32 %v1764_v33, %v1751_v6  ;;  %v7096_v57 = vld [vmem:[%s7569_s30 + $0x3c8] sm:$0xff]  ;;  %v7082_v9 = vld [vmem:[%s7569_s30 + $0x358] sm:$0xff] }
 0xa5e   :  { %v1887_v23 = vmax.f32 %v1865_v14, 0.0  ;;  %v1888_v19 = vmax.f32 %v1879_v15, 0.0  ;;  %v1834_v24 = vpop.f32.mrf.mxu3  ;;  %v1848_v25 = vpop.f32.mrf.mxu2  ;;  %v7073_v14 = vld [vmem:[%s7569_s30 + $0x310] sm:$0xff] }
 0xa5f   :  { %v1835_v30 = vadd.f32 %v1834_v24, %v1777_v28  ;;  %v1849_v3 = vadd.f32 %v1848_v25, %v1778_v29  ;;  %v7081_v15 = vld [vmem:[%s7569_s30 + $0x350] sm:$0xff]  ;;  %v7071_v24 = vld [vmem:[%s7569_s30 + $0x300] sm:$0xff] }
 0xa60   :  { %v1891_v26 = vpack.c.bf16 %v1887_v23, %v1883_v21  ;;  %v1892_v27 = vpack.c.bf16 %v1888_v19, %v1884_v22  ;;  %v7072_v23 = vld [vmem:[%s7569_s30 + $0x308] sm:$0xff]  ;;  %v7079_v25 = vld [vmem:[%s7569_s30 + $0x340] sm:$0xff] }
 0xa61   :  { %v1881_v34 = vmax.f32 %v1835_v30, 0.0  ;;  %v1882_v51 = vmax.f32 %v1849_v3, 0.0  ;;  %v7080_v19 = vld [vmem:[%s7569_s30 + $0x348] sm:$0xff] }
 0xa62   :  { %2185 = vmatmul.bf16.vlgmr.msra.gmra.mxu1 %v1891_v26  ;;  %2199 = vmatmul.bf16.vlgmr.msrb.gmra.mxu0 %v1892_v27  ;;  %v2215_v26 = vld [vmem:[%s7564_s24 + $0xc] sm:$0xf]  ;;  %s8624_s24 = sld [smem:[#allocation11_spill]] }
 0xa63   :  { %2617 = vmatpush.bf16.msra.mxu1 %v7094_v60  ;;  %2631 = vmatpush.bf16.msrb.mxu0 %v7102_v61  ;;  %v2219_v3 = vperm.slane %v2215_v26, 2 }
 0xa66   :  { %v1836_v4 = vpop.f32.mrf.mxu3  ;;  %v1850_v31 = vpop.f32.mrf.mxu2 }
 0xa67   :  { %v1837_v32 = vadd.f32 %v1836_v4, %v1777_v28  ;;  %v1851_v33 = vadd.f32 %v1850_v31, %v1778_v29  ;;  %2618 = vmatpush.bf16.msra.mxu1 %v7093_v39  ;;  %2632 = vmatpush.bf16.msrb.mxu0 %v7101_v40  ;;  %v2220_v4 = vperm.slane %v2215_v26, 3 }
 0xa69   :  { %v1885_v52 = vmax.f32 %v1837_v32, 0.0  ;;  %v1886_v35 = vmax.f32 %v1851_v33, 0.0 }
 0xa6b   :  { %v1889_v7 = vpack.c.bf16 %v1885_v52, %v1881_v34  ;;  %v1890_v8 = vpack.c.bf16 %v1886_v35, %v1882_v51  ;;  %2619 = vmatpush.bf16.msra.mxu1 %v7092_v41  ;;  %2633 = vmatpush.bf16.msrb.mxu0 %v7100_v42 }
 0xa6d   :  { %2157 = vmatmul.bf16.vlgmr.msrb.gmra.mxu3 %v1889_v7  ;;  %2171 = vmatmul.bf16.vlgmr.msrb.gmra.mxu2 %v1890_v8 }
 0xa6e   :  { %2589 = vmatpush.bf16.msrb.mxu3 %v7078_v46  ;;  %2603 = vmatpush.bf16.msrb.mxu2 %v7086_v47  ;;  %v2217_v47 = vperm.slane %v2215_v26, 0 }
 0xa6f   :  { %2620 = vmatpush.bf16.msra.mxu1 %v7091_v13 }
 0xa72   :  { %6101 = vmatmul.msk.bf16.vlgmr.msrb.gmra.mxu1 %vm202_vm2, %v7867_v1  ;;  %6102 = vmatmul.msk.bf16.vlgmr.msra.gmra.mxu0 %vm202_vm2, %v7867_v1 }
 0xa73   :  { %2621 = vmatpush.bf16.msra.mxu1 %v7090_v44  ;;  %2590 = vmatpush.bf16.msrb.mxu3 %v7077_v50 }
 0xa74   :  { %2604 = vmatpush.bf16.msrb.mxu2 %v7085_v55 }
 0xa77   :  { %2622 = vmatpush.bf16.msra.mxu1 %v7089_v17  ;;  %2591 = vmatpush.bf16.msrb.mxu3 %v7076_v58  ;;  %v2218_v17 = vperm.slane %v2215_v26, 1 }
 0xa78   :  { %2605 = vmatpush.bf16.msrb.mxu2 %v7084_v59 }
 0xa7b   :  { %2623 = vmatpush.bf16.msra.mxu1 %v7088_v56  ;;  %2592 = vmatpush.bf16.msrb.mxu3 %v7075_v2 }
 0xa7c   :  { %2606 = vmatpush.bf16.msrb.mxu2 %v7083_v48 }
 0xa7d   :  { %6099 = vmatmul.msk.bf16.vlgmr.msra.gmra.mxu3 %vm202_vm2, %v7867_v1  ;;  %6100 = vmatmul.msk.bf16.vlgmr.msra.gmra.mxu2 %vm202_vm2, %v7867_v1  ;;  %v7099_v1 = vld [vmem:[%s7569_s30 + $0x3e0] sm:$0xff]  ;;  %s8625_s30 = sld [smem:[#allocation14_spill]] }
 0xa7e   :  { %2634 = vmatpush.bf16.msrb.mxu0 %v7099_v1 }
 0xa7f   :  { %2624 = vmatpush.bf16.msra.mxu1 %v7087_v62  ;;  %2593 = vmatpush.bf16.msrb.mxu3 %v7074_v38 }
 0xa80   :  { %2607 = vmatpush.bf16.msrb.mxu2 %v7082_v9 }
 0xa82   :  { %2635 = vmatpush.bf16.msrb.mxu0 %v7098_v45 }
 0xa83   :  { %2594 = vmatpush.bf16.msrb.mxu3 %v7073_v14 }
 0xa84   :  { %2608 = vmatpush.bf16.msrb.mxu2 %v7081_v15 }
 0xa86   :  { %2636 = vmatpush.bf16.msrb.mxu0 %v7097_v49 }
 0xa87   :  { %2595 = vmatpush.bf16.msrb.mxu3 %v7072_v23 }
 0xa88   :  { %2609 = vmatpush.bf16.msrb.mxu2 %v7080_v19 }
 0xa8a   :  { %2637 = vmatpush.bf16.msrb.mxu0 %v7096_v57 }
 0xa8b   :  { %2596 = vmatpush.bf16.msrb.mxu3 %v7071_v24 }
 0xa8c   :  { %2610 = vmatpush.bf16.msrb.mxu2 %v7079_v25 }
 0xa8e   :  { %2638 = vmatpush.bf16.msrb.mxu0 %v7095_v43 }
 0xadf   :  { %v8098_v5 = vpop.f32.mrf.mxu1  ;;  %v8100_v6 = vpop.f32.mrf.mxu0 }
 0xae7   :  { %v2188_v21 = vpop.f32.mrf.mxu1  ;;  %v2202_v22 = vpop.f32.mrf.mxu0 }
 0xaef   :  { %v2302_v27 = vpop.f32.mrf.mxu1  ;;  %v2316_v28 = vpop.f32.mrf.mxu0 }
 0xaf0   :  { %v2158_v29 = vpop.f32.mrf.mxu3  ;;  %v2172_v30 = vpop.f32.mrf.mxu2  ;;  %v2303_v31 = vadd.f32 %v2302_v27, %v2219_v3  ;;  %v2317_v32 = vadd.f32 %v2316_v28, %v2220_v4 }
 0xaf2   :  { %v2323_v60 = vmax.f32 %v2303_v31, 0.0  ;;  %v2324_v61 = vmax.f32 %v2317_v32, 0.0 }
 0xaf7   :  { %v2304_v33 = vpop.f32.mrf.mxu1  ;;  %v2318_v34 = vpop.f32.mrf.mxu0 }
 0xaf8   :  { %v2305_v51 = vadd.f32 %v2304_v33, %v2219_v3  ;;  %v2319_v52 = vadd.f32 %v2318_v34, %v2220_v4  ;;  %v2160_v35 = vpop.f32.mrf.mxu3  ;;  %v2174_v7 = vpop.f32.mrf.mxu2 }
 0xaf9   :  { %v2175_v8 = vadd.f32 %v2174_v7, %v2160_v35 }
 0xafa   :  { %v2327_v39 = vmax.f32 %v2305_v51, 0.0  ;;  %v2328_v40 = vmax.f32 %v2319_v52, 0.0 }
 0xafb   :  { %v2189_v41 = vadd.f32 %v2188_v21, %v2175_v8  ;;  %v2173_v21 = vadd.f32 %v2172_v30, %v2158_v29  ;;  %v7331_v29 = vld [vmem:[%s7574_s6] ss:$0 sm:$0xff]  ;;  %s8626_s6 = sld [smem:[#allocation12_spill]] }
 0xafc   :  { %v2331_v42 = vpack.c.bf16 %v2327_v39, %v2323_v60  ;;  %v2332_v13 = vpack.c.bf16 %v2328_v40, %v2324_v61 }
 0xafd   :  { %v2203_v1 = vadd.f32 %v2202_v22, %v2189_v41  ;;  %v2187_v23 = vadd.f32 %v8098_v5, %v2173_v21 }
 0xafe   :  { %2625 = vmatmul.bf16.vlgmr.msra.gmra.mxu1 %v2331_v42  ;;  %2639 = vmatmul.bf16.vlgmr.msrb.gmra.mxu0 %v2332_v13  ;;  %v7104_v13 = vld [vmem:[%s8619_s29 + $0x8] sm:$0xff] }
 0xaff   :  { %v2206_v44 = vadd.f32 %v2203_v1, %v8064_v16  ;;  %v1487_v16 = vadd.f32 %v8030_v11, %v8028_v10  ;;  %v2201_v27 = vadd.f32 %v8100_v6, %v2187_v23  ;;  %2741 = vmatpush.bf16.msra.mxu3 %v7104_v13 }
 0xb00   :  { %v2274_v45 = vpop.f32.mrf.mxu3  ;;  %v2288_v46 = vpop.f32.mrf.mxu2 }
 0xb01   :  { %v2275_v49 = vadd.f32 %v2274_v45, %v2217_v47  ;;  %v2289_v50 = vadd.f32 %v2288_v46, %v2218_v17  ;;  %v1501_v9 = vadd.f32 %v8013_v53, %v1487_v16  ;;  %v7103_v46 = vld [vmem:[%s8619_s29] sm:$0xff] }
 0xb03   :  { %v2321_v59 = vmax.f32 %v2275_v49, 0.0  ;;  %v2322_v62 = vmax.f32 %v2289_v50, 0.0  ;;  %v1515_v14 = vadd.f32 %v8015_v54, %v1501_v9  ;;  %2742 = vmatpush.bf16.msra.mxu3 %v7103_v46  ;;  %v7332_v9 = vld [vmem:[%s8620_s3] ss:$0 sm:$0xff] }
 0xb05   :  { %v1721_v15 = vadd.f32 %v8051_v36, %v1515_v14 }
 0xb07   :  { %v1735_v22 = vadd.f32 %v8053_v37, %v1721_v15 }
 0xb08   :  { %v2276_v55 = vpop.f32.mrf.mxu3  ;;  %v2290_v56 = vpop.f32.mrf.mxu2 }
 0xb09   :  { %v2277_v57 = vadd.f32 %v2276_v55, %v2217_v47  ;;  %v2291_v58 = vadd.f32 %v2290_v56, %v2218_v17  ;;  %v1749_v19 = vadd.f32 %v8035_v18, %v1735_v22  ;;  %v7333_v22 = vld [vmem:[%s8621_s8] ss:$0 sm:$0xff] }
 0xb0b   :  { %v2325_v43 = vmax.f32 %v2277_v57, 0.0  ;;  %v2326_v2 = vmax.f32 %v2291_v58, 0.0  ;;  %v1763_v53 = vadd.f32 %v8037_v20, %v1749_v19 }
 0xb0d   :  { %v2329_v48 = vpack.c.bf16 %v2325_v43, %v2321_v59  ;;  %v2330_v38 = vpack.c.bf16 %v2326_v2, %v2322_v62  ;;  %v2205_v28 = vadd.f32 %v2201_v27, %v1763_v53 }
 0xb0f   :  { %2597 = vmatmul.bf16.vlgmr.msrb.gmra.mxu3 %v2329_v48  ;;  %2611 = vmatmul.bf16.vlgmr.msrb.gmra.mxu2 %v2330_v38 }
 0xb7b   :  { %v2626_v24 = vpop.f32.mrf.mxu1  ;;  %v2640_v11 = vpop.f32.mrf.mxu0 }
 0xb83   :  { %v2628_v18 = vpop.f32.mrf.mxu1  ;;  %v2642_v33 = vpop.f32.mrf.mxu0 }
 0xb92   :  { %v2598_v25 = vpop.f32.mrf.mxu3  ;;  %v2612_v26 = vpop.f32.mrf.mxu2 }
 0xb93   :  { %v2613_v10 = vadd.f32 %v2612_v26, %v2598_v25 }
 0xb95   :  { %v2627_v54 = vadd.f32 %v2626_v24, %v2613_v10  ;;  %v7334_v10 = vld [vmem:[%s8622_s14] ss:$0 sm:$0xff] }
 0xb97   :  { %v2641_v36 = vadd.f32 %v2640_v11, %v2627_v54 }
 0xb99   :  { %v2645_v3 = vadd.f32 %v2641_v36, %v2205_v28 }
 0xb9a   :  { %v2600_v30 = vpop.f32.mrf.mxu3  ;;  %v2614_v37 = vpop.f32.mrf.mxu2 }
 0xb9b   :  { %v2615_v4 = vadd.f32 %v2614_v37, %v2600_v30  ;;  %v2647_v5 = vadd.f32 %v2645_v3, %v7861_v63 }
 0xb9d   :  { %v2629_v31 = vadd.f32 %v2628_v18, %v2615_v4  ;;  %v2653_v32 = vadd.f32 %v7331_v29, %v2647_v5 }
 0xb9f   :  { %v2643_v34 = vadd.f32 %v2642_v33, %v2629_v31  ;;  %v2657_v6 = vsel %vm202_vm2, %v2653_v32, 0.0 }
 0xba0   :  { %2658 = vadd.xlane.f32.xlu0 %v2657_v6 }
 0xba1   :  { %v2646_v51 = vadd.f32 %v2643_v34, %v2206_v44 }
 0xba3   :  { %v2648_v20 = vadd.f32 %v2646_v51, %v7863_v0 }
 0xba5   :  { %v2654_v52 = vadd.f32 %v7331_v29, %v2648_v20 }
 0xba7   :  { %v2660_v35 = vsel %vm202_vm2, %v2654_v52, 0.0 }
 0xba8   :  { %2661 = vadd.xlane.f32.xlu1 %v2660_v35 }
 0xc13   :  { %v2659_v7 = vpop.xlane.xlu0 %2658 }
 0xc14   :  { %v2663_v8 = vmul.f32 %v2659_v7, %v7809_v12 }
 0xc16   :  { %v2665_v63 = vsub.f32 %v2653_v32, %v2663_v8 }
 0xc18   :  { %v2667_v60 = vmul.f32 %v2665_v63, %v2665_v63 }
 0xc1a   :  { %v2669_v61 = vsel %vm202_vm2, %v2667_v60, 0.0 }
 0xc1b   :  { %v2662_v39 = vpop.xlane.xlu1 %2661  ;;  %2670 = vadd.xlane.f32.xlu2 %v2669_v61 }
 0xc1c   :  { %v2664_v40 = vmul.f32 %v2662_v39, %v7809_v12 }
 0xc1e   :  { %v2666_v41 = vsub.f32 %v2654_v52, %v2664_v40 }
 0xc20   :  { %v2668_v42 = vmul.f32 %v2666_v41, %v2666_v41 }
 0xc22   :  { %v2672_v0 = vsel %vm202_vm2, %v2668_v42, 0.0 }
 0xc23   :  { %2673 = vadd.xlane.f32.xlu0 %v2672_v0 }
 0xc8e   :  { %v2671_v1 = vpop.xlane.xlu2 %2670 }
 0xc8f   :  { %v2675_v44 = vmul.f32 %v2671_v1, %v7809_v12 }
 0xc91   :  { %v2677_v45 = vadd.f32 1e-05, %v2675_v44 }
 0xc93   :  { %7381 = vrsqrt.f32 %v2677_v45  ;;  %vm2685_vm15 = vweird.f32 %v2677_v45 }
 0xc96   :  { %v2674_v47 = vpop.xlane.xlu0 %2673 }
 0xc97   :  { %v2676_v17 = vmul.f32 %v2674_v47, %v7809_v12 }
 0xc99   :  { %v7382_v49 = vpop.eup %7381  ;;  %v2678_v50 = vadd.f32 1e-05, %v2676_v17 }
 0xc9a   :  { %v2680_v55 = vmul.f32 %v7382_v49, %v2677_v45  ;;  %vm2686_vm14 = vweird.f32 %v7382_v49 }
 0xc9b   :  { %7383 = vrsqrt.f32 %v2678_v50  ;;  %vm2687_vm0 = vmor %vm2685_vm15, %vm2686_vm14  ;;  %vm2695_vm7 = vweird.f32 %v2678_v50 }
 0xc9c   :  { %v2681_v56 = vmul.f32 %v7382_v49, %v2680_v55 }
 0xc9e   :  { %v2682_v57 = vmul.f32 0.5, %v2681_v56 }
 0xca0   :  { %v2683_v58 = vsub.f32 1.5, %v2682_v57 }
 0xca1   :  { %v7384_v59 = vpop.eup %7383 }
 0xca2   :  { %v2684_v62 = vmul.f32 %v7382_v49, %v2683_v58  ;;  %v2690_v43 = vmul.f32 %v7384_v59, %v2678_v50  ;;  %vm2696_vm1 = vweird.f32 %v7384_v59 }
 0xca3   :  { %vm2697_vm8 = vmor %vm2695_vm7, %vm2696_vm1 }
 0xca4   :  { %v2691_v2 = vmul.f32 %v7384_v59, %v2690_v43  ;;  %v2688_v48 = vsel %vm2687_vm0, %v7382_v49, %v2684_v62 }
 0xca5   :  { %v2699_v14 = vmul.f32 %v2688_v48, %v2665_v63 }
 0xca6   :  { %v2692_v38 = vmul.f32 0.5, %v2691_v2 }
 0xca7   :  { %v2704_v23 = vmul.f32 %v7332_v9, %v2699_v14 }
 0xca8   :  { %v2693_v16 = vsub.f32 1.5, %v2692_v38 }
 0xca9   :  { %v8137_v25 = vadd.f32 %v7333_v22, %v2704_v23 }
 0xcaa   :  { %v2694_v15 = vmul.f32 %v7384_v59, %v2693_v16 }
 0xcac   :  { %v2698_v21 = vsel %vm2697_vm8, %v7384_v59, %v2694_v15 }
 0xcad   :  { %v2700_v19 = vmul.f32 %v2698_v21, %v2666_v41 }
 0xcaf   :  { %v2705_v24 = vmul.f32 %v7332_v9, %v2700_v19 }
 0xcb1   :  { %v8139_v26 = vadd.f32 %v7333_v22, %v2705_v24 }
 0xcb3   :  { %v2711_v27 = vpack.c.bf16 %v8139_v26, %v8137_v25 }
 0xcb5   :  { %6239 = vmatmul.msk.bf16.vlgmr.msra.gmra.mxu3 %vm202_vm2, %v2711_v27 }
 0xd38   :  { %v2744_v11 = vpop.f32.mrf.mxu3 }
 0xd39   :  { %v8145_v53 = vadd.f32 %v7334_v10, %v2744_v11 }
 0xd3b   :  { %2815 = vrot.lane.b32.xlu0 %v8145_v53, %s7483_s0  ;;  %2817 = vrot.lane.b32.xlu2 %v8145_v53, %s7485_s9 }
 0xd3c   :  { %2750 = vrot.lane.b32.xlu1 %v8145_v53, %s7484_s5 }
 0xd40   :  { %v2746_v54 = vpop.f32.mrf.mxu3 }
 0xd41   :  { %v8159_v28 = vadd.f32 %v7334_v10, %v2746_v54 }
 0xd43   :  { %2888 = vrot.lane.b32.xlu0 %v8145_v53, %s7488_s21  ;;  %2959 = vrot.lane.b32.xlu2 %v8145_v53, %s7491_s1  ;;  %v7318_v57 = vpack.i.bf16 %v8159_v28, %v8145_v53 }
 0xd44   :  { %2886 = vrot.lane.b32.xlu1 %v8145_v53, %s7490_s28 }
 0xd4b   :  { %2957 = vrot.lane.b32.xlu0 %v8145_v53, %s7486_s13  ;;  %3029 = vrot.lane.b32.xlu2 %v8159_v28, %s7484_s5  ;;  %s8633_s5 = sld [smem:[#allocation19_spill]] }
 0xd4c   :  { %3096 = vrot.lane.b32.xlu1 %v8159_v28, %s7485_s9 }
 0xd53   :  { %3094 = vrot.lane.b32.xlu0 %v8159_v28, %s7483_s0  ;;  %3167 = vrot.lane.b32.xlu2 %v8159_v28, %s7488_s21  ;;  %s8632_s0 = sld [smem:[#allocation18_spill]]  ;;  %s7441_s21 = scalar_lea.hbm %s7669_s27, 8 }
 0xd54   :  { %3238 = vrot.lane.b32.xlu1 %v8159_v28, %s7491_s1 }
 0xd5b   :  { %3165 = vrot.lane.b32.xlu0 %v8159_v28, %s7490_s28  ;;  %3236 = vrot.lane.b32.xlu2 %v8159_v28, %s7486_s13 }
 0xd95   :  { %v2818_v36 = vpop.permute.xlu2 %2817 }
 0xd9d   :  { %v2960_v3 = vpop.permute.xlu2 %2959 }
 0xda5   :  { %v3030_v37 = vpop.permute.xlu2 %3029 }
 0xdad   :  { %v2816_v29 = vpop.permute.xlu0 %2815  ;;  %v3168_v18 = vpop.permute.xlu2 %3167 }
 0xdae   :  { %v2751_v30 = vpop.permute.xlu1 %2750 }
 0xdaf   :  { %6240 = vmatpush.xpose.msk.msra.mxu2 %vm223_vm3, %v2751_v30 }
 0xdb2   :  { %6241 = vmatmul.msk.f32.vlgmr.msra.gmra.mxu2 %vm223_vm3, %v8145_v53 }
 0xdb3   :  { %6243 = vmatpush.xpose.msk.msrb.mxu2 %vm223_vm3, %v2818_v36 }
 0xdb5   :  { %v2889_v4 = vpop.permute.xlu0 %2888  ;;  %v3237_v51 = vpop.permute.xlu2 %3236 }
 0xdb6   :  { %v2887_v5 = vpop.permute.xlu1 %2886  ;;  %6246 = vmatpush.xpose.msk.msra.mxu0 %vm223_vm3, %v2889_v4 }
 0xdb7   :  { %6249 = vmatpush.xpose.msk.msra.mxu2 %vm223_vm3, %v2960_v3 }
 0xdb9   :  { %6247 = vmatmul.msk.f32.vlgmr.msra.gmra.mxu0 %vm223_vm3, %v2887_v5 }
 0xdba   :  { %6252 = vmatpush.xpose.msk.msrb.mxu0 %vm223_vm3, %v3030_v37  ;;  %6244 = vmatmul.msk.f32.vlgmr.msrb.gmra.mxu2 %vm223_vm3, %v2816_v29 }
 0xdbd   :  { %v2958_v31 = vpop.permute.xlu0 %2957 }
 0xdbe   :  { %6258 = vmatpush.xpose.msk.msra.mxu0 %vm223_vm3, %v3168_v18  ;;  %v3097_v32 = vpop.permute.xlu1 %3096 }
 0xdbf   :  { %6255 = vmatpush.xpose.msk.msrb.mxu2 %vm223_vm3, %v3097_v32 }
 0xdc1   :  { %6253 = vmatmul.msk.f32.vlgmr.msrb.gmra.mxu0 %vm223_vm3, %v8159_v28 }
 0xdc2   :  { %6250 = vmatmul.msk.f32.vlgmr.msra.gmra.mxu2 %vm223_vm3, %v2958_v31 }
 0xdc5   :  { %v3095_v33 = vpop.permute.xlu0 %3094 }
 0xdc6   :  { %v3239_v34 = vpop.permute.xlu1 %3238 }
 0xdc7   :  { %6261 = vmatpush.xpose.msk.msra.mxu2 %vm223_vm3, %v3239_v34 }
 0xdca   :  { %6256 = vmatmul.msk.f32.vlgmr.msrb.gmra.mxu2 %vm223_vm3, %v3095_v33 }
 0xdcd   :  { %v3166_v6 = vpop.permute.xlu0 %3165 }
 0xdce   :  { %6259 = vmatmul.msk.f32.vlgmr.msra.gmra.mxu0 %vm223_vm3, %v3166_v6 }
 0xdd2   :  { %6262 = vmatmul.msk.f32.vlgmr.msra.gmra.mxu2 %vm223_vm3, %v3237_v51 }
 0xe35   :  { %v2773_v20 = vpop.f32.mrf.mxu2 }
 0xe36   :  { %v2776_v52 = vmul.f32 0.35355338, %v2773_v20  ;;  %v2911_v35 = vpop.f32.mrf.mxu0 }
 0xe37   :  { %v2914_v7 = vmul.f32 0.35355338, %v2911_v35 }
 0xe38   :  { %v2777_v8 = vsel %vm223_vm3, %v2776_v52, -inf }
 0xe39   :  { %2778 = vmax.xlane.f32.xlu1 %v2777_v8  ;;  %v2915_v63 = vsel %vm223_vm3, %v2914_v7, -inf }
 0xe3a   :  { %2916 = vmax.xlane.f32.xlu2 %v2915_v63 }
 0xe3d   :  { %v2840_v60 = vpop.f32.mrf.mxu2 }
 0xe3e   :  { %v3052_v61 = vpop.f32.mrf.mxu0  ;;  %v2843_v41 = vmul.f32 0.35355338, %v2840_v60 }
 0xe3f   :  { %v3055_v39 = vmul.f32 0.35355338, %v3052_v61 }
 0xe40   :  { %v2844_v0 = vsel %vm223_vm3, %v2843_v41, -inf }
 0xe41   :  { %v3056_v40 = vsel %vm223_vm3, %v3055_v39, -inf }
 0xe42   :  { %3057 = vmax.xlane.f32.xlu0 %v3056_v40 }
 0xe45   :  { %v2982_v42 = vpop.f32.mrf.mxu2 }
 0xe46   :  { %v2985_v17 = vmul.f32 0.35355338, %v2982_v42 }
 0xe48   :  { %v2986_v55 = vsel %vm223_vm3, %v2985_v17, -inf }
 0xe4a   :  { %2845 = vmax.xlane.f32.xlu0 %v2844_v0 }
 0xe4b   :  { %v3190_v13 = vpop.f32.mrf.mxu0 }
 0xe4c   :  { %v8199_v1 = vmul.f32 0.35355338, %v3190_v13 }
 0xe4d   :  { %v3119_v44 = vpop.f32.mrf.mxu2 }
 0xe4e   :  { %v3122_v45 = vmul.f32 0.35355338, %v3119_v44  ;;  %v3194_v46 = vsel %vm223_vm3, %v8199_v1, -inf }
 0xe4f   :  { %3195 = vmax.xlane.f32.xlu1 %v3194_v46 }
 0xe50   :  { %v3123_v47 = vsel %vm223_vm3, %v3122_v45, -inf }
 0xe51   :  { %3124 = vmax.xlane.f32.xlu2 %v3123_v47 }
 0xe55   :  { %v3261_v49 = vpop.f32.mrf.mxu2 }
 0xe56   :  { %v8204_v50 = vmul.f32 0.35355338, %v3261_v49 }
 0xe57   :  { %2987 = vmax.xlane.f32.xlu1 %v2986_v55 }
 0xe58   :  { %v3265_v56 = vsel %vm223_vm3, %v8204_v50, -inf }
 0xe59   :  { %3266 = vmax.xlane.f32.xlu0 %v3265_v56 }
 0xe69   :  { %2855 = vrot.lane.b32.xlu2 %v8145_v53, %s7489_s25 }
 0xe6d   :  { %7319 = vrot.lane.b32.xlu0 %v7318_v57, %s7487_s17 }
 0xeac   :  { %v2779_v58 = vpop.xlane.xlu1 %2778 }
 0xead   :  { %v2917_v59 = vpop.xlane.xlu2 %2916  ;;  %v2780_v43 = vsub.f32 %v2776_v52, %v2779_v58 }
 0xeae   :  { %v2918_v62 = vsub.f32 %v2914_v7, %v2917_v59 }
 0xeaf   :  { %v2781_v48 = vmul.f32 1.442695, %v2780_v43 }
 0xeb0   :  { %v2919_v2 = vmul.f32 1.442695, %v2918_v62 }
 0xeb2   :  { %7385 = vpow2.f32 %v2919_v2 }
 0xeb3   :  { %7387 = vpow2.f32 %v2781_v48 }
 0xeb5   :  { %v3058_v38 = vpop.xlane.xlu0 %3057 }
 0xeb6   :  { %v3059_v16 = vsub.f32 %v3055_v39, %v3058_v38 }
 0xeb8   :  { %v8214_v9 = vpop.eup %7385  ;;  %v3060_v14 = vmul.f32 1.442695, %v3059_v16 }
 0xeb9   :  { %v2921_v15 = vsel %vm223_vm3, %v8214_v9, 0.0  ;;  %v7388_v22 = vpop.eup %7387 }
 0xeba   :  { %7389 = vpow2.f32 %v3060_v14  ;;  %2922 = vadd.xlane.f32.xlu2 %v2921_v15  ;;  %v2783_v10 = vsel %vm223_vm3, %v7388_v22, 0.0 }
 0xebd   :  { %v2846_v21 = vpop.xlane.xlu0 %2845 }
 0xebe   :  { %v2847_v23 = vsub.f32 %v2843_v41, %v2846_v21 }
 0xec0   :  { %v8218_v19 = vpop.eup %7389  ;;  %v2848_v24 = vmul.f32 1.442695, %v2847_v23 }
 0xec1   :  { %v3062_v27 = vsel %vm223_vm3, %v8218_v19, 0.0 }
 0xec2   :  { %7391 = vpow2.f32 %v2848_v24  ;;  %3063 = vadd.xlane.f32.xlu1 %v3062_v27  ;;  %2784 = vadd.xlane.f32.xlu2 %v2783_v10  ;;  %v3196_v11 = vpop.xlane.xlu1 %3195 }
 0xec3   :  { %v3197_v52 = vsub.f32 %v8199_v1, %v3196_v11 }
 0xec4   :  { %v3125_v54 = vpop.xlane.xlu2 %3124 }
 0xec5   :  { %v3126_v36 = vsub.f32 %v3122_v45, %v3125_v54  ;;  %v3198_v35 = vmul.f32 1.442695, %v3197_v52 }
 0xec7   :  { %v3127_v3 = vmul.f32 1.442695, %v3126_v36 }
 0xec8   :  { %v7392_v29 = vpop.eup %7391 }
 0xec9   :  { %7393 = vpow2.f32 %v3127_v3  ;;  %v2850_v30 = vsel %vm223_vm3, %v7392_v29, 0.0 }
 0xeca   :  { %2851 = vadd.xlane.f32.xlu1 %v2850_v30  ;;  %v2988_v37 = vpop.xlane.xlu1 %2987 }
 0xecb   :  { %v2989_v4 = vsub.f32 %v2985_v17, %v2988_v37  ;;  %v7106_v37 = vld [vmem:[%s8623_s19 + $0x8] sm:$0xff] }
 0xecc   :  { %v3267_v34 = vpop.xlane.xlu0 %3266  ;;  %v2856_v20 = vpop.permute.xlu2 %2855  ;;  %3339 = vmatpush.bf16.msrb.mxu0 %v7106_v37 }
 0xecd   :  { %v2990_v5 = vmul.f32 1.442695, %v2989_v4  ;;  %v3268_v63 = vsub.f32 %v8204_v50, %v3267_v34  ;;  %v7335_v34 = vld [vmem:[%s8624_s24] ss:$0 sm:$0xff] }
 0xecf   :  { %v7394_v18 = vpop.eup %7393  ;;  %7395 = vpow2.f32 %v2990_v5  ;;  %v3269_v60 = vmul.f32 1.442695, %v3268_v63  ;;  %v7105_v5 = vld [vmem:[%s8623_s19] sm:$0xff] }
 0xed0   :  { %v3129_v31 = vsel %vm223_vm3, %v7394_v18, 0.0  ;;  %7397 = vpow2.f32 %v3198_v35  ;;  %3340 = vmatpush.bf16.msrb.mxu0 %v7105_v5  ;;  %v6337_v5 = vld [vmem:[%s8625_s30 + $0xd8] sm:$0xf0] }
 0xed1   :  { %3130 = vadd.xlane.f32.xlu0 %v3129_v31  ;;  %7399 = vpow2.f32 %v3269_v60 }
 0xed5   :  { %v7396_v32 = vpop.eup %7395 }
 0xed6   :  { %v2992_v33 = vsel %vm223_vm3, %v7396_v32, 0.0  ;;  %v7398_v7 = vpop.eup %7397 }
 0xed7   :  { %2993 = vadd.xlane.f32.xlu1 %v2992_v33  ;;  %v3200_v8 = vsel %vm223_vm3, %v7398_v7, 0.0  ;;  %v7400_v61 = vpop.eup %7399 }
 0xed8   :  { %v3271_v39 = vsel %vm223_vm3, %v7400_v61, 0.0 }
 0xeda   :  { %2997 = vrot.lane.b32.xlu2 %v8145_v53, %s7492_s2 }
 0xedf   :  { %v7320_v6 = vpop.permute.xlu0 %7319 }
 0xee0   :  { %v7321_v51 = vunpack.i.l.bf16 %v7320_v6  ;;  %v7322_v62 = vunpack.i.h.bf16 %v7320_v6 }
 0xee2   :  { %2809 = vmatpush.msrb.mxu1 %v7321_v51 }
 0xee4   :  { %2876 = vmatpush.msra.mxu1 %v2856_v20 }
 0xee5   :  { %3134 = vrot.lane.b32.xlu0 %v8159_v28, %s7489_s25 }
 0xeed   :  { %3276 = vrot.lane.b32.xlu0 %v8159_v28, %s7492_s2 }
 0xef0   :  { %2926 = vrot.lane.b32.xlu1 %v8145_v53, %s7494_s10 }
 0xf03   :  { %3201 = vadd.xlane.f32.xlu2 %v3200_v8 }
 0xf1a   :  { %3272 = vadd.xlane.f32.xlu1 %v3271_v39 }
 0xf1b   :  { %3205 = vrot.lane.b32.xlu2 %v8159_v28, %s7494_s10 }
 0xf2d   :  { %v2923_v53 = vpop.xlane.xlu2 %2922 }
 0xf35   :  { %v2785_v40 = vpop.xlane.xlu2 %2784  ;;  %v3064_v41 = vpop.xlane.xlu1 %3063 }
 0xf36   :  { %7401 = vrcp.f32 %v2785_v40 }
 0xf3c   :  { %v7402_v42 = vpop.eup %7401 }
 0xf3d   :  { %v2787_v0 = vmul.f32 %v7402_v42, %v7388_v22  ;;  %v2998_v13 = vpop.permute.xlu2 %2997  ;;  %v2852_v1 = vpop.xlane.xlu1 %2851 }
 0xf3e   :  { %7403 = vrcp.f32 %v2852_v1  ;;  %v7113_v1 = vld [vmem:[%s8625_s30 + $0xbc] sm:$0xf0] }
 0xf3f   :  { %6242 = vmatmul.msk.f32.vlgmr.msrb.gmra.mxu1 %vm223_vm3, %v2787_v0 }
 0xf40   :  { %3018 = vmatpush.msrb.mxu1 %v2998_v13  ;;  %v6291_v13 = vld [vmem:[%s8625_s30 + $0x80] sm:$0xf] }
 0xf44   :  { %v7404_v44 = vpop.eup %7403  ;;  %v3131_v47 = vpop.xlane.xlu0 %3130 }
 0xf45   :  { %v2854_v45 = vmul.f32 %v7404_v44, %v7392_v29  ;;  %v7111_v44 = vld [vmem:[%s8625_s30 + $0x84] sm:$0xf] }
 0xf47   :  { %6245 = vmatmul.msk.f32.vlgmr.msra.gmra.mxu1 %vm223_vm3, %v2854_v45  ;;  %v6292_v45 = vor.u32 %v7113_v1, %v6291_v13 }
 0xf4a   :  { %v2994_v46 = vpop.xlane.xlu1 %2993 }
 0xf4b   :  { %7405 = vrcp.f32 %v2994_v46  ;;  %v6293_v46 = vld [vmem:[%s8625_s30 + $0xc0] sm:$0xf0] }
 0xf4c   :  { %7407 = vrcp.f32 %v3131_v47  ;;  %v6299_v47 = vld [vmem:[%s8625_s30 + $0x88] sm:$0xf] }
 0xf4d   :  { %7409 = vrcp.f32 %v2923_v53 }
 0xf4e   :  { %7411 = vrcp.f32 %v3064_v41 }
 0xf51   :  { %v7406_v28 = vpop.eup %7405 }
 0xf52   :  { %v2996_v17 = vmul.f32 %v7406_v28, %v7396_v32  ;;  %v7408_v49 = vpop.eup %7407  ;;  %v7114_v28 = vld [vmem:[%s8625_s30 + $0xc4] sm:$0xf0] }
 0xf53   :  { %v3133_v55 = vmul.f32 %v7408_v49, %v7394_v18  ;;  %v7410_v56 = vpop.eup %7409  ;;  %v6296_v49 = vor.u32 %v7111_v44, %v6293_v46 }
 0xf54   :  { %6251 = vmatmul.msk.f32.vlgmr.msrb.gmra.mxu1 %vm223_vm3, %v2996_v17  ;;  %v2925_v58 = vmul.f32 %v7410_v56, %v8214_v9  ;;  %v7412_v43 = vpop.eup %7411  ;;  %v6301_v56 = vld [vmem:[%s8625_s30 + $0xc8] sm:$0xf0] }
 0xf55   :  { %v3066_v2 = vmul.f32 %v7412_v43, %v8218_v19  ;;  %3487 = vmatpush.bf16.msrb.mxu2 %v6296_v49  ;;  %v7107_v43 = vld [vmem:[%s8625_s30 + $0x4] sm:$0xf] }
 0xf57   :  { %v3135_v50 = vpop.permute.xlu0 %3134 }
 0xf58   :  { %3155 = vmatpush.msra.mxu1 %v3135_v50  ;;  %v6300_v50 = vor.u32 %v7114_v28, %v6299_v47  ;;  %v7336_v47 = vld [vmem:[%s8626_s6] ss:$0 sm:$0xff] }
 0xf5c   :  { %6257 = vmatmul.msk.f32.vlgmr.msra.gmra.mxu1 %vm223_vm3, %v3133_v55  ;;  %v7112_v55 = vld [vmem:[%s8625_s30 + $0x8c] sm:$0xf] }
 0xf5f   :  { %v3277_v57 = vpop.permute.xlu0 %3276 }
 0xf60   :  { %3297 = vmatpush.msrb.mxu1 %v3277_v57 }
 0xf62   :  { %v2927_v59 = vpop.permute.xlu1 %2926  ;;  %3501 = vmatpush.bf16.msra.mxu1 %v6300_v50  ;;  %v7337_v50 = vld [vmem:[%s8627_s16] ss:$0 sm:$0xff] }
 0xf63   :  { %2947 = vmatpush.msrb.mxu3 %v2927_v59  ;;  %v6275_v59 = vld [vmem:[%s8625_s30] sm:$0xf] }
 0xf64   :  { %6248 = vmatmul.msk.f32.vlgmr.msrb.gmra.mxu3 %vm223_vm3, %v2925_v58  ;;  %v6304_v58 = vor.u32 %v7112_v55, %v6301_v56 }
 0xf65   :  { %3088 = vmatpush.msra.mxu3 %v7322_v62  ;;  %v7109_v62 = vld [vmem:[%s8625_s30 + $0x3c] sm:$0xf0] }
 0xf66   :  { %3515 = vmatpush.bf16.msra.mxu0 %v6304_v58 }
 0xf6c   :  { %6254 = vmatmul.msk.f32.vlgmr.msra.gmra.mxu3 %vm223_vm3, %v3066_v2 }
 0xf76   :  { %v3202_v48 = vpop.xlane.xlu2 %3201 }
 0xf77   :  { %7413 = vrcp.f32 %v3202_v48  ;;  %v6276_v48 = vor.u32 %v7109_v62, %v6275_v59 }
 0xf7d   :  { %v7414_v38 = vpop.eup %7413 }
 0xf7e   :  { %v3204_v16 = vmul.f32 %v7414_v38, %v7398_v7  ;;  %v3206_v14 = vpop.permute.xlu2 %3205  ;;  %v6277_v38 = vld [vmem:[%s8625_s30 + $0x40] sm:$0xf0] }
 0xf7f   :  { %3226 = vmatpush.msrb.mxu3 %v3206_v14  ;;  %v6280_v14 = vor.u32 %v7107_v43, %v6277_v38  ;;  %v7186_v43 = vld [vmem:[%s8628_s18 + $0x1f8] sm:$0xff]  ;;  %v7185_v38 = vld [vmem:[%s8628_s18 + $0x1f0] sm:$0xff] }
 0xf80   :  { %6260 = vmatmul.msk.f32.vlgmr.msrb.gmra.mxu3 %vm223_vm3, %v3204_v16  ;;  %v6283_v16 = vld [vmem:[%s8625_s30 + $0x8] sm:$0xf] }
 0xf81   :  { %3473 = vmatpush.bf16.msra.mxu3 %v6292_v45  ;;  %3488 = vmatpush.bf16.msrb.mxu2 %v6280_v14  ;;  %v7169_v14 = vld [vmem:[%s8628_s18 + $0x170] sm:$0xff] }
 0xf85   :  { %3474 = vmatpush.bf16.msra.mxu3 %v6276_v48  ;;  %v7170_v48 = vld [vmem:[%s8628_s18 + $0x178] sm:$0xff] }
 0xf8d   :  { %v3273_v9 = vpop.xlane.xlu1 %3272 }
 0xf8e   :  { %7415 = vrcp.f32 %v3273_v9  ;;  %v7110_v9 = vld [vmem:[%s8625_s30 + $0x44] sm:$0xf0] }
 0xf94   :  { %v7416_v15 = vpop.eup %7415 }
 0xf95   :  { %v3275_v21 = vmul.f32 %v7416_v15, %v7400_v61  ;;  %v7108_v15 = vld [vmem:[%s8625_s30 + $0xc] sm:$0xf] }
 0xf97   :  { %6263 = vmatmul.msk.f32.vlgmr.msrb.gmra.mxu1 %vm223_vm3, %v3275_v21  ;;  %v6285_v21 = vld [vmem:[%s8625_s30 + $0x48] sm:$0xf0] }
 0xfbc   :  { %v2811_v22 = vpop.f32.mrf.mxu1 }
 0xfbd   :  { %2814 = vst.msk [vmem:[#allocation2] sm:$0xff] %vm223_vm3, %v2811_v22  ;;  %v6284_v22 = vor.u32 %v7110_v9, %v6283_v16  ;;  %v7161_v16 = vld [vmem:[%s8628_s18 + $0x130] sm:$0xff]  ;;  %v7176_v9 = vld [vmem:[%s8628_s18 + $0x1a8] sm:$0xff] }
 0xfbf   :  { %3502 = vmatpush.bf16.msra.mxu1 %v6284_v22  ;;  %v7183_v22 = vld [vmem:[%s8628_s18 + $0x1e0] sm:$0xff] }
 0xfc4   :  { %v2878_v23 = vpop.f32.mrf.mxu1 }
 0xfc5   :  { %2882 = vrot.lane.b32.xlu1 %v2878_v23, %s7493_s7  ;;  %v6288_v23 = vor.u32 %v7108_v15, %v6285_v21  ;;  %v7184_v15 = vld [vmem:[%s8628_s18 + $0x1e8] sm:$0xff]  ;;  %v7175_v21 = vld [vmem:[%s8628_s18 + $0x1a0] sm:$0xff] }
 0xfc7   :  { %3516 = vmatpush.bf16.msra.mxu0 %v6288_v23  ;;  %v7160_v23 = vld [vmem:[%s8628_s18 + $0x128] sm:$0xff] }
 0xfd1   :  { %v3020_v19 = vpop.f32.mrf.mxu1 }
 0xfd9   :  { %v3157_v27 = vpop.f32.mrf.mxu1 }
 0xfe7   :  { %v2949_v24 = vpop.f32.mrf.mxu3 }
 0xfe8   :  { %2953 = vrot.lane.b32.xlu0 %v2949_v24, %s7495_s11  ;;  %v6327_v24 = vld [vmem:[%s8625_s30 + $0x90] sm:$0xf] }
 0xfef   :  { %v3090_v10 = vpop.f32.mrf.mxu3 }
 0xff0   :  { %3093 = vst.msk [vmem:[#allocation2 + $0x8] sm:$0xff] %vm223_vm3, %v3090_v10  ;;  %3161 = vrot.lane.b32.xlu0 %v3157_v27, %s7493_s7  ;;  %v7153_v27 = vld [vmem:[%s8625_s30 + $0xcc] sm:$0xf0]  ;;  %v7151_v10 = vld [vmem:[%s8625_s30 + $0x94] sm:$0xf] }
 0xff8   :  { %3024 = vrot.lane.b32.xlu0 %v3020_v19, %s7496_s15 }
0x1003   :  { %v3228_v11 = vpop.f32.mrf.mxu3 }
0x1004   :  { %3232 = vrot.lane.b32.xlu2 %v3228_v11, %s7495_s11 }
0x1014   :  { %v3299_v54 = vpop.f32.mrf.mxu1 }
0x1015   :  { %3303 = vrot.lane.b32.xlu1 %v3299_v54, %s7496_s15  ;;  %v6328_v54 = vor.u32 %v7153_v27, %v6327_v24  ;;  %v7174_v24 = vld [vmem:[%s8628_s18 + $0x198] sm:$0xff] }
0x1016   :  { %v7182_v27 = vld [vmem:[%s8628_s18 + $0x1d8] sm:$0xff] }
0x1017   :  { %3663 = vmatpush.bf16.msrb.mxu3 %v6328_v54  ;;  %v7173_v54 = vld [vmem:[%s8628_s18 + $0x190] sm:$0xff] }
0x1037   :  { %v2883_v36 = vpop.permute.xlu1 %2882 }
0x1038   :  { %2885 = vst.msk [vmem:[#allocation2] sm:$0xff] %vm357_vm4, %v2883_v36  ;;  %v6329_v36 = vld [vmem:[%s8625_s30 + $0xd0] sm:$0xf0] }
0x105a   :  { %v2954_v3 = vpop.permute.xlu0 %2953 }
0x105b   :  { %2956 = vst.msk [vmem:[#allocation2] sm:$0xff] %vm429_vm5, %v2954_v3  ;;  %v6335_v3 = vld [vmem:[%s8625_s30 + $0x98] sm:$0xf] }
0x105e   :  { %v3233_v30 = vpop.permute.xlu2 %3232 }
0x1062   :  { %v3162_v29 = vpop.permute.xlu0 %3161 }
0x1063   :  { %3164 = vst.msk [vmem:[#allocation2 + $0x8] sm:$0xff] %vm357_vm4, %v3162_v29  ;;  %v7154_v29 = vld [vmem:[%s8625_s30 + $0xd4] sm:$0xf0] }
0x1064   :  { %3235 = vst.msk [vmem:[#allocation2 + $0x8] sm:$0xff] %vm429_vm5, %v3233_v30  ;;  %v6332_v30 = vor.u32 %v7151_v10, %v6329_v36  ;;  %v6336_v37 = vor.u32 %v7154_v29, %v6335_v3  ;;  %v7159_v10 = vld [vmem:[%s8628_s18 + $0x120] sm:$0xff]  ;;  %v7181_v36 = vld [vmem:[%s8628_s18 + $0x1d0] sm:$0xff]  ;;  %v7158_v3 = vld [vmem:[%s8628_s18 + $0x118] sm:$0xff] }
0x1065   :  { %v7166_v29 = vld [vmem:[%s8628_s18 + $0x158] sm:$0xff] }
0x1066   :  { %3677 = vmatpush.bf16.msra.mxu2 %v6332_v30  ;;  %3691 = vmatpush.bf16.msrb.mxu1 %v6336_v37  ;;  %v7172_v30 = vld [vmem:[%s8628_s18 + $0x188] sm:$0xff] }
0x1067   :  { %v7180_v37 = vld [vmem:[%s8628_s18 + $0x1c8] sm:$0xff] }
0x106a   :  { %v3025_v4 = vpop.permute.xlu0 %3024 }
0x106b   :  { %3027 = vst.msk [vmem:[#allocation2] sm:$0xff] %vm501_vm6, %v3025_v4  ;;  %v7152_v4 = vld [vmem:[%s8625_s30 + $0x9c] sm:$0xf] }
0x1072   :  { %v3307_v31 = vld [vmem:[#allocation2] sm:$0xff] }
0x1087   :  { %v3304_v18 = vpop.permute.xlu1 %3303 }
0x1088   :  { %3306 = vst.msk [vmem:[#allocation2 + $0x8] sm:$0xff] %vm501_vm6, %v3304_v18  ;;  %v6311_v18 = vld [vmem:[%s8625_s30 + $0x10] sm:$0xf] }
0x108f   :  { %v3308_v32 = vld [vmem:[#allocation2 + $0x8] sm:$0xff] }
0x1090   :  { %v3309_v33 = vpack.c.bf16 %v3308_v32, %v3307_v31 }
0x1092   :  { %6272 = vmatmul.msk.bf16.vlgmr.msrb.gmra.mxu0 %vm202_vm2, %v3309_v33  ;;  %v6340_v33 = vor.u32 %v7152_v4, %v6337_v5  ;;  %v7157_v4 = vld [vmem:[%s8628_s18 + $0x110] sm:$0xff] }
0x1093   :  { %v7165_v5 = vld [vmem:[%s8628_s18 + $0x150] sm:$0xff] }
0x1094   :  { %3705 = vmatpush.bf16.msrb.mxu0 %v6340_v33  ;;  %v7146_v33 = vld [vmem:[%s8628_s18 + $0xf8] sm:$0xff] }
0x110f   :  { %v3342_v6 = vpop.f32.mrf.mxu0 }
0x1110   :  { %v3343_v51 = vadd.f32 %v7335_v34, %v3342_v6  ;;  %v7147_v6 = vld [vmem:[%s8625_s30 + $0x14] sm:$0xf] }
0x1112   :  { %v3347_v20 = vadd.f32 %v3343_v51, %v8137_v25 }
0x1114   :  { %v3351_v52 = vsel %vm202_vm2, %v3347_v20, 0.0 }
0x1115   :  { %3352 = vadd.xlane.f32.xlu2 %v3351_v52  ;;  %v6313_v52 = vld [vmem:[%s8625_s30 + $0x50] sm:$0xf0] }
0x1117   :  { %v3344_v35 = vpop.f32.mrf.mxu0 }
0x1118   :  { %v3345_v7 = vadd.f32 %v7335_v34, %v3344_v35  ;;  %v7149_v34 = vld [vmem:[%s8625_s30 + $0x4c] sm:$0xf0]  ;;  %v6319_v35 = vld [vmem:[%s8625_s30 + $0x18] sm:$0xf] }
0x111a   :  { %v3348_v8 = vadd.f32 %v3345_v7, %v8139_v26  ;;  %v7150_v7 = vld [vmem:[%s8625_s30 + $0x54] sm:$0xf0] }
0x111c   :  { %v3354_v63 = vsel %vm202_vm2, %v3348_v8, 0.0 }
0x111d   :  { %3355 = vadd.xlane.f32.xlu0 %v3354_v63  ;;  %v6320_v63 = vor.u32 %v7150_v7, %v6319_v35  ;;  %v7163_v35 = vld [vmem:[%s8628_s18 + $0x140] sm:$0xff]  ;;  %v7122_v7 = vld [vmem:[%s8628_s18 + $0x38] sm:$0xff] }
0x111f   :  { %3692 = vmatpush.bf16.msrb.mxu1 %v6320_v63  ;;  %v7136_v63 = vld [vmem:[%s8628_s18 + $0xa8] sm:$0xff] }
0x1188   :  { %v3353_v60 = vpop.xlane.xlu2 %3352 }
0x1189   :  { %v3357_v61 = vmul.f32 %v3353_v60, %v7809_v12  ;;  %v7148_v60 = vld [vmem:[%s8625_s30 + $0x1c] sm:$0xf] }
0x118b   :  { %v8273_v39 = vsub.f32 %v3347_v20, %v3357_v61  ;;  %v6312_v20 = vor.u32 %v7149_v34, %v6311_v18  ;;  %v6321_v61 = vld [vmem:[%s8625_s30 + $0x58] sm:$0xf0]  ;;  %v7171_v18 = vld [vmem:[%s8628_s18 + $0x180] sm:$0xff]  ;;  %v7156_v34 = vld [vmem:[%s8628_s18 + $0x108] sm:$0xff] }
0x118d   :  { %v3361_v25 = vmul.f32 %v8273_v39, %v8273_v39  ;;  %3664 = vmatpush.bf16.msrb.mxu3 %v6312_v20  ;;  %v7145_v20 = vld [vmem:[%s8628_s18 + $0xf0] sm:$0xff] }
0x118f   :  { %v3363_v53 = vsel %vm202_vm2, %v3361_v25, 0.0 }
0x1190   :  { %v3356_v40 = vpop.xlane.xlu0 %3355  ;;  %3364 = vadd.xlane.f32.xlu1 %v3363_v53  ;;  %v6324_v53 = vor.u32 %v7148_v60, %v6321_v61  ;;  %v7144_v60 = vld [vmem:[%s8628_s18 + $0xe8] sm:$0xff]  ;;  %v7121_v61 = vld [vmem:[%s8628_s18 + $0x30] sm:$0xff] }
0x1191   :  { %v3358_v26 = vmul.f32 %v3356_v40, %v7809_v12 }
0x1192   :  { %3706 = vmatpush.bf16.msrb.mxu0 %v6324_v53  ;;  %v7135_v53 = vld [vmem:[%s8628_s18 + $0xa0] sm:$0xff] }
0x1193   :  { %v8279_v41 = vsub.f32 %v3348_v8, %v3358_v26  ;;  %v6316_v8 = vor.u32 %v7147_v6, %v6313_v52  ;;  %v7164_v6 = vld [vmem:[%s8628_s18 + $0x148] sm:$0xff]  ;;  %v7155_v52 = vld [vmem:[%s8628_s18 + $0x100] sm:$0xff] }
0x1195   :  { %v3362_v42 = vmul.f32 %v8279_v41, %v8279_v41  ;;  %3678 = vmatpush.bf16.msra.mxu2 %v6316_v8  ;;  %v7130_v8 = vld [vmem:[%s8628_s18 + $0x78] sm:$0xff] }
0x1197   :  { %v3366_v0 = vsel %vm202_vm2, %v3362_v42, 0.0 }
0x1198   :  { %3367 = vadd.xlane.f32.xlu2 %v3366_v0 }
0x1203   :  { %v3365_v17 = vpop.xlane.xlu1 %3364 }
0x1204   :  { %v3369_v57 = vmul.f32 %v3365_v17, %v7809_v12 }
0x1206   :  { %v8296_v2 = vadd.f32 1e-05, %v3369_v57 }
0x1208   :  { %7417 = vrsqrt.f32 %v8296_v2  ;;  %vm3379_vm5 = vweird.f32 %v8296_v2 }
0x120b   :  { %v3368_v19 = vpop.xlane.xlu2 %3367 }
0x120c   :  { %v3370_v11 = vmul.f32 %v3368_v19, %v7809_v12  ;;  %v7168_v19 = vld [vmem:[%s8628_s18 + $0x168] sm:$0xff] }
0x120e   :  { %v7418_v31 = vpop.eup %7417  ;;  %v3372_v32 = vadd.f32 1e-05, %v3370_v11  ;;  %v7167_v11 = vld [vmem:[%s8628_s18 + $0x160] sm:$0xff] }
0x120f   :  { %v3374_v51 = vmul.f32 %v7418_v31, %v8296_v2  ;;  %vm3380_vm4 = vweird.f32 %v7418_v31  ;;  %v7162_v2 = vld [vmem:[%s8628_s18 + $0x138] sm:$0xff] }
0x1210   :  { %7419 = vrsqrt.f32 %v3372_v32  ;;  %vm3381_vm6 = vmor %vm3379_vm5, %vm3380_vm4  ;;  %vm3389_vm10 = vweird.f32 %v3372_v32 }
0x1211   :  { %v3375_v25 = vmul.f32 %v7418_v31, %v3374_v51  ;;  %v7137_v51 = vld [vmem:[%s8628_s18 + $0xb0] sm:$0xff] }
0x1213   :  { %v3376_v40 = vmul.f32 0.5, %v3375_v25  ;;  %v7129_v25 = vld [vmem:[%s8628_s18 + $0x70] sm:$0xff] }
0x1215   :  { %v3377_v26 = vsub.f32 1.5, %v3376_v40  ;;  %v7143_v40 = vld [vmem:[%s8628_s18 + $0xe0] sm:$0xff] }
0x1216   :  { %v7420_v42 = vpop.eup %7419 }
0x1217   :  { %v3378_v0 = vmul.f32 %v7418_v31, %v3377_v26  ;;  %v3384_v13 = vmul.f32 %v7420_v42, %v3372_v32  ;;  %vm3390_vm9 = vweird.f32 %v7420_v42  ;;  %v7138_v32 = vld [vmem:[%s8628_s18 + $0xb8] sm:$0xff]  ;;  %v7120_v26 = vld [vmem:[%s8628_s18 + $0x28] sm:$0xff] }
0x1218   :  { %vm3391_vm11 = vmor %vm3389_vm10, %vm3390_vm9 }
0x1219   :  { %v3385_v1 = vmul.f32 %v7420_v42, %v3384_v13  ;;  %v3382_v44 = vsel %vm3381_vm6, %v7418_v31, %v3378_v0  ;;  %v7179_v31 = vld [vmem:[%s8628_s18 + $0x1c0] sm:$0xff]  ;;  %v7134_v0 = vld [vmem:[%s8628_s18 + $0x98] sm:$0xff] }
0x121a   :  { %v3393_v28 = vmul.f32 %v3382_v44, %v8273_v39  ;;  %v7178_v39 = vld [vmem:[%s8628_s18 + $0x1b8] sm:$0xff] }
0x121b   :  { %v3386_v45 = vmul.f32 0.5, %v3385_v1  ;;  %v7142_v13 = vld [vmem:[%s8628_s18 + $0xd8] sm:$0xff] }
0x121c   :  { %v3398_v55 = vmul.f32 %v7336_v47, %v3393_v28  ;;  %v7141_v28 = vld [vmem:[%s8628_s18 + $0xd0] sm:$0xff] }
0x121d   :  { %v3387_v46 = vsub.f32 1.5, %v3386_v45  ;;  %v7119_v45 = vld [vmem:[%s8628_s18 + $0x20] sm:$0xff] }
0x121e   :  { %v8327_v58 = vadd.f32 %v7337_v50, %v3398_v55 }
0x121f   :  { %v3388_v17 = vmul.f32 %v7420_v42, %v3387_v46  ;;  %v7127_v46 = vld [vmem:[%s8628_s18 + $0x60] sm:$0xff] }
0x1221   :  { %v3392_v49 = vsel %vm3391_vm11, %v7420_v42, %v3388_v17  ;;  %v7128_v42 = vld [vmem:[%s8628_s18 + $0x68] sm:$0xff]  ;;  %v7118_v17 = vld [vmem:[%s8628_s18 + $0x18] sm:$0xff] }
0x1222   :  { %v3394_v56 = vmul.f32 %v3392_v49, %v8279_v41  ;;  %v7177_v41 = vld [vmem:[%s8628_s18 + $0x1b0] sm:$0xff]  ;;  %v7126_v49 = vld [vmem:[%s8628_s18 + $0x58] sm:$0xff] }
0x1224   :  { %v3399_v57 = vmul.f32 %v7336_v47, %v3394_v56  ;;  %v7133_v47 = vld [vmem:[%s8628_s18 + $0x90] sm:$0xff] }
0x1226   :  { %v8329_v59 = vadd.f32 %v7337_v50, %v3399_v57  ;;  %v7132_v50 = vld [vmem:[%s8628_s18 + $0x88] sm:$0xff] }
0x1227   :  { %v7140_v57 = vld [vmem:[%s8628_s18 + $0xc8] sm:$0xff] }
0x1228   :  { %v8333_v62 = vpack.c.bf16 %v8329_v59, %v8327_v58 }
0x122a   :  { %6305 = vmatmul.msk.bf16.vlgmr.msra.gmra.mxu3 %vm202_vm2, %v8333_v62  ;;  %6306 = vmatmul.msk.bf16.vlgmr.msrb.gmra.mxu2 %vm202_vm2, %v8333_v62 }
0x122b   :  { %6307 = vmatmul.msk.bf16.vlgmr.msra.gmra.mxu1 %vm202_vm2, %v8333_v62  ;;  %6308 = vmatmul.msk.bf16.vlgmr.msra.gmra.mxu0 %vm202_vm2, %v8333_v62 }
0x122c   :  { %4009 = vmatpush.bf16.msra.mxu1 %v7178_v39  ;;  %4023 = vmatpush.bf16.msra.mxu0 %v7186_v43  ;;  %v7117_v39 = vld [vmem:[%s8628_s18 + $0x10] sm:$0xff] }
0x122d   :  { %3981 = vmatpush.bf16.msra.mxu3 %v7162_v2  ;;  %3995 = vmatpush.bf16.msrb.mxu2 %v7170_v48  ;;  %v7125_v43 = vld [vmem:[%s8628_s18 + $0x50] sm:$0xff] }
0x1230   :  { %4010 = vmatpush.bf16.msra.mxu1 %v7177_v41  ;;  %4024 = vmatpush.bf16.msra.mxu0 %v7185_v38  ;;  %v7131_v41 = vld [vmem:[%s8628_s18 + $0x80] sm:$0xff] }
0x1231   :  { %3982 = vmatpush.bf16.msra.mxu3 %v7161_v16  ;;  %3996 = vmatpush.bf16.msrb.mxu2 %v7169_v14  ;;  %v7139_v38 = vld [vmem:[%s8628_s18 + $0xc0] sm:$0xff]  ;;  %v7116_v16 = vld [vmem:[%s8628_s18 + $0x8] sm:$0xff] }
0x1232   :  { %v7124_v14 = vld [vmem:[%s8628_s18 + $0x48] sm:$0xff] }
0x1234   :  { %4011 = vmatpush.bf16.msra.mxu1 %v7176_v9  ;;  %4025 = vmatpush.bf16.msra.mxu0 %v7184_v15 }
0x1235   :  { %3983 = vmatpush.bf16.msra.mxu3 %v7160_v23  ;;  %3997 = vmatpush.bf16.msrb.mxu2 %v7168_v19  ;;  %v3607_v23 = vld [vmem:[%s8629_s22 + $0x4] sm:$0xf] }
0x1238   :  { %4012 = vmatpush.bf16.msra.mxu1 %v7175_v21  ;;  %4026 = vmatpush.bf16.msra.mxu0 %v7183_v22  ;;  %v7115_v21 = vld [vmem:[%s8628_s18] sm:$0xff] }
0x1239   :  { %3984 = vmatpush.bf16.msra.mxu3 %v7159_v10  ;;  %3998 = vmatpush.bf16.msrb.mxu2 %v7167_v11  ;;  %v7123_v22 = vld [vmem:[%s8628_s18 + $0x40] sm:$0xff]  ;;  %v3612_v10 = vperm.slane %v3607_v23, 3 }
0x123a   :  { %6341 = vmatmul.msk.bf16.vlgmr.msrb.gmra.mxu3 %vm202_vm2, %v8333_v62  ;;  %6342 = vmatmul.msk.bf16.vlgmr.msra.gmra.mxu2 %vm202_vm2, %v8333_v62 }
0x123b   :  { %6343 = vmatmul.msk.bf16.vlgmr.msrb.gmra.mxu1 %vm202_vm2, %v8333_v62  ;;  %6344 = vmatmul.msk.bf16.vlgmr.msrb.gmra.mxu0 %vm202_vm2, %v8333_v62 }
0x123c   :  { %4013 = vmatpush.bf16.msra.mxu1 %v7174_v24  ;;  %4027 = vmatpush.bf16.msra.mxu0 %v7182_v27  ;;  %v3611_v27 = vperm.slane %v3607_v23, 2 }
0x123d   :  { %3985 = vmatpush.bf16.msra.mxu3 %v7158_v3  ;;  %3999 = vmatpush.bf16.msrb.mxu2 %v7166_v29  ;;  %v3609_v29 = vperm.slane %v3607_v23, 0 }
0x1240   :  { %4014 = vmatpush.bf16.msra.mxu1 %v7173_v54  ;;  %4028 = vmatpush.bf16.msra.mxu0 %v7181_v36 }
0x1241   :  { %3986 = vmatpush.bf16.msra.mxu3 %v7157_v4  ;;  %4000 = vmatpush.bf16.msrb.mxu2 %v7165_v5  ;;  %v6627_v5 = vld [vmem:[%s8625_s30 + $0xa8] sm:$0xf] }
0x1244   :  { %4015 = vmatpush.bf16.msra.mxu1 %v7172_v30  ;;  %4029 = vmatpush.bf16.msra.mxu0 %v7180_v37  ;;  %v3610_v30 = vperm.slane %v3607_v23, 1 }
0x1245   :  { %3987 = vmatpush.bf16.msra.mxu3 %v7156_v34  ;;  %4001 = vmatpush.bf16.msrb.mxu2 %v7164_v6  ;;  %v6629_v34 = vld [vmem:[%s8625_s30 + $0xe8] sm:$0xf0] }
0x1248   :  { %4016 = vmatpush.bf16.msra.mxu1 %v7171_v18  ;;  %4030 = vmatpush.bf16.msra.mxu0 %v7179_v31 }
0x1249   :  { %3988 = vmatpush.bf16.msra.mxu3 %v7155_v52  ;;  %4002 = vmatpush.bf16.msrb.mxu2 %v7163_v35 }
0x124c   :  { %4257 = vmatpush.bf16.msrb.mxu1 %v7138_v32  ;;  %4271 = vmatpush.bf16.msrb.mxu0 %v7146_v33  ;;  %v7194_v32 = vld [vmem:[%s8625_s30 + $0xe4] sm:$0xf0]  ;;  %v7192_v33 = vld [vmem:[%s8625_s30 + $0xac] sm:$0xf] }
0x124d   :  { %4229 = vmatpush.bf16.msrb.mxu3 %v7122_v7  ;;  %4243 = vmatpush.bf16.msra.mxu2 %v7130_v8  ;;  %v6628_v8 = vor.u32 %v7194_v32, %v6627_v5 }
0x1250   :  { %4258 = vmatpush.bf16.msrb.mxu1 %v7137_v51  ;;  %4272 = vmatpush.bf16.msrb.mxu0 %v7145_v20 }
0x1251   :  { %4230 = vmatpush.bf16.msrb.mxu3 %v7121_v61  ;;  %4244 = vmatpush.bf16.msra.mxu2 %v7129_v25 }
0x1254   :  { %4259 = vmatpush.bf16.msrb.mxu1 %v7136_v63  ;;  %4273 = vmatpush.bf16.msrb.mxu0 %v7144_v60  ;;  %v6632_v63 = vor.u32 %v7192_v33, %v6629_v34  ;;  %v3414_v60 = vld [vmem:[%s8629_s22] sm:$0xf] }
0x1255   :  { %4231 = vmatpush.bf16.msrb.mxu3 %v7120_v26  ;;  %4245 = vmatpush.bf16.msra.mxu2 %v7128_v42  ;;  %v6611_v26 = vld [vmem:[%s8625_s30 + $0x28] sm:$0xf]  ;;  %v3417_v5 = vperm.slane %v3414_v60, 1 }
0x1256   :  { %v7190_v42 = vld [vmem:[%s8625_s30 + $0x64] sm:$0xf0] }
0x1258   :  { %4260 = vmatpush.bf16.msrb.mxu1 %v7135_v53  ;;  %4274 = vmatpush.bf16.msrb.mxu0 %v7143_v40 }
0x1259   :  { %4232 = vmatpush.bf16.msrb.mxu3 %v7119_v45  ;;  %4246 = vmatpush.bf16.msra.mxu2 %v7127_v46  ;;  %v7188_v45 = vld [vmem:[%s8625_s30 + $0x2c] sm:$0xf] }
0x125a   :  { %v6613_v46 = vld [vmem:[%s8625_s30 + $0x68] sm:$0xf0] }
0x125c   :  { %4261 = vmatpush.bf16.msrb.mxu1 %v7134_v0  ;;  %4275 = vmatpush.bf16.msrb.mxu0 %v7142_v13 }
0x125d   :  { %4233 = vmatpush.bf16.msrb.mxu3 %v7118_v17  ;;  %4247 = vmatpush.bf16.msra.mxu2 %v7126_v49  ;;  %v7191_v17 = vld [vmem:[%s8625_s30 + $0xa4] sm:$0xf] }
0x125e   :  { %v6621_v49 = vld [vmem:[%s8625_s30 + $0xe0] sm:$0xf0] }
0x1260   :  { %4262 = vmatpush.bf16.msrb.mxu1 %v7133_v47  ;;  %4276 = vmatpush.bf16.msrb.mxu0 %v7141_v28  ;;  %v6619_v47 = vld [vmem:[%s8625_s30 + $0xa0] sm:$0xf] }
0x1261   :  { %4234 = vmatpush.bf16.msrb.mxu3 %v7117_v39  ;;  %4248 = vmatpush.bf16.msra.mxu2 %v7125_v43  ;;  %v7193_v28 = vld [vmem:[%s8625_s30 + $0xdc] sm:$0xf0] }
0x1262   :  { %v6620_v23 = vor.u32 %v7193_v28, %v6619_v47  ;;  %v7200_v47 = vld [vmem:[%s8628_s18 + $0x228] sm:$0xff] }
0x1263   :  { %v7208_v28 = vld [vmem:[%s8628_s18 + $0x268] sm:$0xff] }
0x1264   :  { %4263 = vmatpush.bf16.msrb.mxu1 %v7132_v50  ;;  %4277 = vmatpush.bf16.msrb.mxu0 %v7140_v57 }
0x1265   :  { %4235 = vmatpush.bf16.msrb.mxu3 %v7116_v16  ;;  %4249 = vmatpush.bf16.msra.mxu2 %v7124_v14  ;;  %v6612_v16 = vor.u32 %v7190_v42, %v6611_v26  ;;  %v6616_v14 = vor.u32 %v7188_v45, %v6613_v46  ;;  %v7201_v26 = vld [vmem:[%s8628_s18 + $0x230] sm:$0xff] }
0x1266   :  { %v7209_v42 = vld [vmem:[%s8628_s18 + $0x270] sm:$0xff] }
0x1268   :  { %4264 = vmatpush.bf16.msrb.mxu1 %v7131_v41  ;;  %4278 = vmatpush.bf16.msrb.mxu0 %v7139_v38  ;;  %v3418_v41 = vperm.slane %v3414_v60, 2  ;;  %v3419_v38 = vperm.slane %v3414_v60, 3 }
0x1269   :  { %4236 = vmatpush.bf16.msrb.mxu3 %v7115_v21  ;;  %4250 = vmatpush.bf16.msra.mxu2 %v7123_v22 }
0x12a8   :  { %v8399_v1 = vpop.f32.mrf.mxu1  ;;  %v8401_v44 = vpop.f32.mrf.mxu0 }
0x12ad   :  { %v8410_v55 = vpop.f32.mrf.mxu3  ;;  %v8412_v56 = vpop.f32.mrf.mxu2 }
0x12b0   :  { %v8417_v2 = vpop.f32.mrf.mxu1  ;;  %v8419_v48 = vpop.f32.mrf.mxu0 }
0x12b5   :  { %v8425_v9 = vpop.f32.mrf.mxu3  ;;  %v8427_v15 = vpop.f32.mrf.mxu2 }
0x12b8   :  { %v3694_v19 = vpop.f32.mrf.mxu1  ;;  %v3708_v24 = vpop.f32.mrf.mxu0 }
0x12b9   :  { %v3695_v36 = vadd.f32 %v3694_v19, %v3611_v27  ;;  %v3709_v3 = vadd.f32 %v3708_v24, %v3612_v10  ;;  %v6624_v19 = vor.u32 %v7191_v17, %v6621_v49  ;;  %v6603_v24 = vld [vmem:[%s8625_s30 + $0x20] sm:$0xf]  ;;  %v7213_v17 = vld [vmem:[%s8628_s18 + $0x290] sm:$0xff] }
0x12ba   :  { %v7221_v49 = vld [vmem:[%s8628_s18 + $0x2d0] sm:$0xff] }
0x12bb   :  { %v3715_v6 = vmax.f32 %v3695_v36, 0.0  ;;  %v3716_v51 = vmax.f32 %v3709_v3, 0.0  ;;  %v3521_v36 = vadd.f32 %v8419_v48, %v3419_v38 }
0x12bd   :  { %v3666_v11 = vpop.f32.mrf.mxu3  ;;  %v3680_v54 = vpop.f32.mrf.mxu2 }
0x12be   :  { %v3667_v35 = vadd.f32 %v3666_v11, %v3609_v29  ;;  %v3681_v7 = vadd.f32 %v3680_v54, %v3610_v30  ;;  %v6605_v11 = vld [vmem:[%s8625_s30 + $0x60] sm:$0xf0]  ;;  %v3507_v54 = vadd.f32 %v8417_v2, %v3418_v41  ;;  %v3493_v2 = vadd.f32 %v8427_v15, %v3417_v5 }
0x12c0   :  { %v3696_v37 = vpop.f32.mrf.mxu1  ;;  %v3710_v4 = vpop.f32.mrf.mxu0  ;;  %v3713_v50 = vmax.f32 %v3667_v35, 0.0  ;;  %v3714_v57 = vmax.f32 %v3681_v7, 0.0  ;;  %v7217_v7 = vld [vmem:[%s8628_s18 + $0x2b0] sm:$0xff] }
0x12c1   :  { %v3697_v18 = vadd.f32 %v3696_v37, %v3611_v27  ;;  %v3711_v31 = vadd.f32 %v3710_v4, %v3612_v10  ;;  %v7189_v27 = vld [vmem:[%s8625_s30 + $0x5c] sm:$0xf0]  ;;  %v7187_v10 = vld [vmem:[%s8625_s30 + $0x24] sm:$0xf]  ;;  %v3519_v37 = vadd.f32 %v8401_v44, %v3419_v38  ;;  %v3416_v4 = vperm.slane %v3414_v60, 0  ;;  %v7224_v60 = vld [vmem:[%s8628_s18 + $0x2e8] sm:$0xff] }
0x12c2   :  { %v6604_v3 = vor.u32 %v7189_v27, %v6603_v24 }
0x12c3   :  { %v3719_v20 = vmax.f32 %v3697_v18, 0.0  ;;  %v3720_v52 = vmax.f32 %v3711_v31, 0.0  ;;  %v3529_v18 = vmax.f32 %v3507_v54, 0.0  ;;  %v3530_v31 = vmax.f32 %v3521_v36, 0.0 }
0x12c4   :  { %v3479_v32 = vadd.f32 %v8425_v9, %v3416_v4  ;;  %v3526_v33 = vmax.f32 %v3519_v37, 0.0  ;;  %v3477_v34 = vadd.f32 %v8410_v55, %v3416_v4  ;;  %v7218_v55 = vld [vmem:[%s8628_s18 + $0x2b8] sm:$0xff] }
0x12c5   :  { %v3723_v61 = vpack.c.bf16 %v3719_v20, %v3715_v6  ;;  %v3724_v25 = vpack.c.bf16 %v3720_v52, %v3716_v51  ;;  %v3668_v53 = vpop.f32.mrf.mxu3  ;;  %v3682_v40 = vpop.f32.mrf.mxu2  ;;  %v3491_v6 = vadd.f32 %v8412_v56, %v3417_v5  ;;  %v3528_v20 = vmax.f32 %v3493_v2, 0.0  ;;  %v7226_v56 = vld [vmem:[%s8628_s18 + $0x2f8] sm:$0xff] }
0x12c6   :  { %v3669_v0 = vadd.f32 %v3668_v53, %v3609_v29  ;;  %v3683_v13 = vadd.f32 %v3682_v40, %v3610_v30  ;;  %v6608_v29 = vor.u32 %v7187_v10, %v6605_v11  ;;  %v3505_v30 = vadd.f32 %v8399_v1, %v3418_v41  ;;  %v7215_v53 = vld [vmem:[%s8628_s18 + $0x2a0] sm:$0xff]  ;;  %v7197_v10 = vld [vmem:[%s8628_s18 + $0x210] sm:$0xff] }
0x12c7   :  { %4017 = vmatmul.bf16.vlgmr.msra.gmra.mxu1 %v3723_v61  ;;  %4031 = vmatmul.bf16.vlgmr.msra.gmra.mxu0 %v3724_v25  ;;  %v3534_v1 = vpack.c.bf16 %v3530_v31, %v3526_v33  ;;  %v3527_v44 = vmax.f32 %v3479_v32, 0.0  ;;  %v3523_v9 = vmax.f32 %v3477_v34, 0.0  ;;  %v3524_v15 = vmax.f32 %v3491_v6, 0.0  ;;  %v7202_v61 = vld [vmem:[%s8628_s18 + $0x238] sm:$0xff]  ;;  %v7223_v40 = vld [vmem:[%s8628_s18 + $0x2e0] sm:$0xff]  ;;  %v7205_v11 = vld [vmem:[%s8628_s18 + $0x250] sm:$0xff] }
0x12c8   :  { %v3717_v39 = vmax.f32 %v3669_v0, 0.0  ;;  %v3718_v43 = vmax.f32 %v3683_v13, 0.0  ;;  %4377 = vmatpush.bf16.msra.mxu1 %v6628_v8  ;;  %4391 = vmatpush.bf16.msra.mxu0 %v6632_v63  ;;  %v3525_v48 = vmax.f32 %v3505_v30, 0.0  ;;  %v7225_v8 = vld [vmem:[%s8628_s18 + $0x2f0] sm:$0xff]  ;;  %v7216_v63 = vld [vmem:[%s8628_s18 + $0x2a8] sm:$0xff]  ;;  %v7210_v25 = vld [vmem:[%s8628_s18 + $0x278] sm:$0xff] }
0x12c9   :  { %v3531_v52 = vpack.c.bf16 %v3527_v44, %v3523_v9  ;;  %v3532_v35 = vpack.c.bf16 %v3528_v20, %v3524_v15  ;;  %v7214_v0 = vld [vmem:[%s8628_s18 + $0x298] sm:$0xff]  ;;  %v7204_v30 = vld [vmem:[%s8628_s18 + $0x248] sm:$0xff]  ;;  %v7203_v33 = vld [vmem:[%s8628_s18 + $0x240] sm:$0xff] }
0x12ca   :  { %v3721_v21 = vpack.c.bf16 %v3717_v39, %v3713_v50  ;;  %v3722_v22 = vpack.c.bf16 %v3718_v43, %v3714_v57  ;;  %v3533_v51 = vpack.c.bf16 %v3529_v18, %v3525_v48  ;;  %v7222_v13 = vld [vmem:[%s8628_s18 + $0x2d8] sm:$0xff]  ;;  %v7199_v50 = vld [vmem:[%s8628_s18 + $0x220] sm:$0xff]  ;;  %v7212_v39 = vld [vmem:[%s8628_s18 + $0x288] sm:$0xff] }
0x12cb   :  { %v7207_v57 = vld [vmem:[%s8628_s18 + $0x260] sm:$0xff]  ;;  %v7220_v43 = vld [vmem:[%s8628_s18 + $0x2c8] sm:$0xff]  ;;  %v6791_v18 = vld [vmem:[%s8625_s30 + $0xb8] sm:$0xf] }
0x12cc   :  { %3989 = vmatmul.bf16.vlgmr.msra.gmra.mxu3 %v3721_v21  ;;  %4003 = vmatmul.bf16.vlgmr.msrb.gmra.mxu2 %v3722_v22  ;;  %v7211_v21 = vld [vmem:[%s8628_s18 + $0x280] sm:$0xff]  ;;  %v7234_v31 = vld [vmem:[%s8625_s30 + $0xf4] sm:$0xf0]  ;;  %v7232_v32 = vld [vmem:[%s8625_s30 + $0xbc] sm:$0xf] }
0x12cd   :  { %4378 = vmatpush.bf16.msra.mxu1 %v6612_v16  ;;  %4392 = vmatpush.bf16.msra.mxu0 %v6616_v14  ;;  %v7198_v16 = vld [vmem:[%s8628_s18 + $0x218] sm:$0xff]  ;;  %v7195_v48 = vld [vmem:[%s8628_s18 + $0x200] sm:$0xff]  ;;  %v6792_v34 = vor.u32 %v7234_v31, %v6791_v18 }
0x12ce   :  { %4349 = vmatpush.bf16.msra.mxu3 %v6620_v23  ;;  %4363 = vmatpush.bf16.msrb.mxu2 %v6624_v19  ;;  %v7206_v14 = vld [vmem:[%s8628_s18 + $0x258] sm:$0xff]  ;;  %v7219_v19 = vld [vmem:[%s8628_s18 + $0x2c0] sm:$0xff] }
0x12cf   :  { %v6793_v6 = vld [vmem:[%s8625_s30 + $0xf8] sm:$0xf0]  ;;  %v6775_v9 = vld [vmem:[%s8625_s30 + $0x38] sm:$0xf] }
0x12d0   :  { %v7230_v15 = vld [vmem:[%s8625_s30 + $0x74] sm:$0xf0] }
0x12d2   :  { %4350 = vmatpush.bf16.msra.mxu3 %v6604_v3  ;;  %4364 = vmatpush.bf16.msrb.mxu2 %v6608_v29  ;;  %v7196_v29 = vld [vmem:[%s8628_s18 + $0x208] sm:$0xff] }
0x12d7   :  { %4265 = vmatmul.bf16.vlgmr.msrb.gmra.mxu1 %v3533_v51  ;;  %4279 = vmatmul.bf16.vlgmr.msrb.gmra.mxu0 %v3534_v1  ;;  %v6796_v51 = vor.u32 %v7232_v32, %v6793_v6 }
0x12d8   :  { %4695 = vmatpush.bf16.msrb.mxu1 %v7218_v55  ;;  %4709 = vmatpush.bf16.msrb.mxu0 %v7226_v56  ;;  %v6777_v55 = vld [vmem:[%s8625_s30 + $0x78] sm:$0xf0] }
0x12dc   :  { %4237 = vmatmul.bf16.vlgmr.msrb.gmra.mxu3 %v3531_v52  ;;  %4251 = vmatmul.bf16.vlgmr.msra.gmra.mxu2 %v3532_v35  ;;  %v7228_v52 = vld [vmem:[%s8625_s30 + $0x3c] sm:$0xf]  ;;  %v6776_v35 = vor.u32 %v7230_v15, %v6775_v9 }
0x12dd   :  { %4696 = vmatpush.bf16.msrb.mxu1 %v7217_v7  ;;  %4710 = vmatpush.bf16.msrb.mxu0 %v7225_v8  ;;  %v6780_v8 = vor.u32 %v7228_v52, %v6777_v55  ;;  %v7266_v55 = vld [vmem:[%s8628_s18 + $0x3f8] sm:$0xff] }
0x12de   :  { %4667 = vmatpush.bf16.msrb.mxu3 %v7202_v61  ;;  %4681 = vmatpush.bf16.msra.mxu2 %v7210_v25  ;;  %v4293_v61 = vld [vmem:[%s8629_s22 + $0x8] sm:$0xf]  ;;  %v6783_v25 = vld [vmem:[%s8625_s30 + $0xb0] sm:$0xf] }
0x12df   :  { %v4295_v31 = vperm.slane %v4293_v61, 0  ;;  %v4296_v32 = vperm.slane %v4293_v61, 1 }
0x12e1   :  { %4697 = vmatpush.bf16.msrb.mxu1 %v7216_v63  ;;  %4711 = vmatpush.bf16.msrb.mxu0 %v7224_v60 }
0x12e2   :  { %4668 = vmatpush.bf16.msrb.mxu3 %v7201_v26  ;;  %4682 = vmatpush.bf16.msra.mxu2 %v7209_v42 }
0x12e5   :  { %4698 = vmatpush.bf16.msrb.mxu1 %v7215_v53  ;;  %4712 = vmatpush.bf16.msrb.mxu0 %v7223_v40  ;;  %v7233_v53 = vld [vmem:[%s8625_s30 + $0xec] sm:$0xf0]  ;;  %v7231_v40 = vld [vmem:[%s8625_s30 + $0xb4] sm:$0xf] }
0x12e6   :  { %4669 = vmatpush.bf16.msrb.mxu3 %v7200_v47  ;;  %4683 = vmatpush.bf16.msra.mxu2 %v7208_v28  ;;  %v7229_v47 = vld [vmem:[%s8625_s30 + $0x6c] sm:$0xf0] }
0x12e7   :  { %6635 = vmatmul.msk.bf16.vlgmr.msra.gmra.mxu1 %vm202_vm2, %v8333_v62  ;;  %6636 = vmatmul.msk.bf16.vlgmr.msra.gmra.mxu0 %vm202_vm2, %v8333_v62 }
0x12e9   :  { %4699 = vmatpush.bf16.msrb.mxu1 %v7214_v0  ;;  %4713 = vmatpush.bf16.msrb.mxu0 %v7222_v13  ;;  %v6784_v13 = vor.u32 %v7233_v53, %v6783_v25  ;;  %v7262_v25 = vld [vmem:[%s8628_s18 + $0x3d8] sm:$0xff] }
0x12ea   :  { %4670 = vmatpush.bf16.msrb.mxu3 %v7199_v50  ;;  %4684 = vmatpush.bf16.msra.mxu2 %v7207_v57  ;;  %v7242_v53 = vld [vmem:[%s8628_s18 + $0x338] sm:$0xff] }
0x12ec   :  { %6633 = vmatmul.msk.bf16.vlgmr.msra.gmra.mxu3 %vm202_vm2, %v8333_v62  ;;  %6634 = vmatmul.msk.bf16.vlgmr.msrb.gmra.mxu2 %vm202_vm2, %v8333_v62 }
0x12ed   :  { %4700 = vmatpush.bf16.msrb.mxu1 %v7213_v17  ;;  %4714 = vmatpush.bf16.msrb.mxu0 %v7221_v49  ;;  %v7227_v17 = vld [vmem:[%s8625_s30 + $0x34] sm:$0xf] }
0x12ee   :  { %4671 = vmatpush.bf16.msrb.mxu3 %v7198_v16  ;;  %4685 = vmatpush.bf16.msra.mxu2 %v7206_v14  ;;  %v6769_v49 = vld [vmem:[%s8625_s30 + $0x70] sm:$0xf0] }
0x12ef   :  { %v6772_v16 = vor.u32 %v7227_v17, %v6769_v49  ;;  %v7251_v17 = vld [vmem:[%s8628_s18 + $0x380] sm:$0xff] }
0x12f0   :  { %v7259_v49 = vld [vmem:[%s8628_s18 + $0x3c0] sm:$0xff] }
0x12f1   :  { %4701 = vmatpush.bf16.msrb.mxu1 %v7212_v39  ;;  %4715 = vmatpush.bf16.msrb.mxu0 %v7220_v43  ;;  %v4297_v39 = vperm.slane %v4293_v61, 2  ;;  %v4298_v43 = vperm.slane %v4293_v61, 3  ;;  %v7254_v61 = vld [vmem:[%s8628_s18 + $0x398] sm:$0xff] }
0x12f2   :  { %4672 = vmatpush.bf16.msrb.mxu3 %v7197_v10  ;;  %4686 = vmatpush.bf16.msra.mxu2 %v7205_v11 }
0x12f5   :  { %4702 = vmatpush.bf16.msrb.mxu1 %v7211_v21  ;;  %4716 = vmatpush.bf16.msrb.mxu0 %v7219_v19 }
0x12f6   :  { %4673 = vmatpush.bf16.msrb.mxu3 %v7196_v29  ;;  %4687 = vmatpush.bf16.msra.mxu2 %v7204_v30 }
0x12f9   :  { %4817 = vmatpush.bf16.msra.mxu1 %v6792_v34  ;;  %4831 = vmatpush.bf16.msra.mxu0 %v6796_v51 }
0x12fa   :  { %4674 = vmatpush.bf16.msrb.mxu3 %v7195_v48  ;;  %4688 = vmatpush.bf16.msra.mxu2 %v7203_v33 }
0x12fd   :  { %4818 = vmatpush.bf16.msra.mxu1 %v6776_v35  ;;  %4832 = vmatpush.bf16.msra.mxu0 %v6780_v8  ;;  %v7258_v35 = vld [vmem:[%s8628_s18 + $0x3b8] sm:$0xff]  ;;  %v7256_v8 = vld [vmem:[%s8628_s18 + $0x3a8] sm:$0xff] }
0x12fe   :  { %4789 = vmatpush.bf16.msra.mxu3 %v6784_v13  ;;  %v7249_v13 = vld [vmem:[%s8628_s18 + $0x370] sm:$0xff] }
0x1344   :  { %v4018_v45 = vpop.f32.mrf.mxu1  ;;  %v4032_v46 = vpop.f32.mrf.mxu0 }
0x134c   :  { %v4020_v41 = vpop.f32.mrf.mxu1  ;;  %v4034_v38 = vpop.f32.mrf.mxu0 }
0x134f   :  { %v3990_v22 = vpop.f32.mrf.mxu3  ;;  %v4004_v23 = vpop.f32.mrf.mxu2 }
0x1350   :  { %v4005_v24 = vadd.f32 %v4004_v23, %v3990_v22 }
0x1352   :  { %v4019_v27 = vadd.f32 %v4018_v45, %v4005_v24  ;;  %v6785_v45 = vld [vmem:[%s8625_s30 + $0xf0] sm:$0xf0] }
0x1353   :  { %v6788_v28 = vor.u32 %v7231_v40, %v6785_v45  ;;  %v7250_v40 = vld [vmem:[%s8628_s18 + $0x378] sm:$0xff]  ;;  %v7252_v45 = vld [vmem:[%s8628_s18 + $0x388] sm:$0xff] }
0x1354   :  { %v4266_v54 = vpop.f32.mrf.mxu1  ;;  %v4280_v36 = vpop.f32.mrf.mxu0  ;;  %v4033_v3 = vadd.f32 %v4032_v46, %v4019_v27  ;;  %v6767_v46 = vld [vmem:[%s8625_s30 + $0x30] sm:$0xf] }
0x1355   :  { %v6768_v57 = vor.u32 %v7229_v47, %v6767_v46  ;;  %4803 = vmatpush.bf16.msrb.mxu2 %v6788_v28  ;;  %v7260_v46 = vld [vmem:[%s8628_s18 + $0x3c8] sm:$0xff] }
0x1356   :  { %v7240_v47 = vld [vmem:[%s8628_s18 + $0x328] sm:$0xff] }
0x1357   :  { %v3992_v37 = vpop.f32.mrf.mxu3  ;;  %v4006_v4 = vpop.f32.mrf.mxu2  ;;  %4790 = vmatpush.bf16.msra.mxu3 %v6768_v57  ;;  %v7248_v28 = vld [vmem:[%s8628_s18 + $0x368] sm:$0xff]  ;;  %v7239_v57 = vld [vmem:[%s8628_s18 + $0x320] sm:$0xff] }
0x1358   :  { %v4007_v5 = vadd.f32 %v4006_v4, %v3992_v37 }
0x1359   :  { %4804 = vmatpush.bf16.msrb.mxu2 %v6772_v16  ;;  %v7246_v16 = vld [vmem:[%s8628_s18 + $0x358] sm:$0xff] }
0x135a   :  { %v4021_v2 = vadd.f32 %v4020_v41, %v4007_v5 }
0x135c   :  { %v4268_v1 = vpop.f32.mrf.mxu1  ;;  %v4282_v44 = vpop.f32.mrf.mxu0  ;;  %v4035_v20 = vadd.f32 %v4034_v38, %v4021_v2 }
0x135f   :  { %v4238_v56 = vpop.f32.mrf.mxu3  ;;  %v4252_v7 = vpop.f32.mrf.mxu2 }
0x1360   :  { %v4239_v63 = vadd.f32 %v4238_v56, %v4033_v3  ;;  %v7257_v56 = vld [vmem:[%s8628_s18 + $0x3b0] sm:$0xff] }
0x1362   :  { %v4253_v60 = vadd.f32 %v4252_v7, %v4239_v63  ;;  %v7265_v7 = vld [vmem:[%s8628_s18 + $0x3f0] sm:$0xff]  ;;  %v7264_v63 = vld [vmem:[%s8628_s18 + $0x3e8] sm:$0xff] }
0x1364   :  { %v4267_v26 = vadd.f32 %v4266_v54, %v4253_v60  ;;  %v4380_v42 = vpop.f32.mrf.mxu1  ;;  %v4394_v0 = vpop.f32.mrf.mxu0  ;;  %v7255_v60 = vld [vmem:[%s8628_s18 + $0x3a0] sm:$0xff] }
0x1365   :  { %v4381_v22 = vadd.f32 %v4380_v42, %v4297_v39  ;;  %v4395_v23 = vadd.f32 %v4394_v0, %v4298_v43  ;;  %v7261_v42 = vld [vmem:[%s8628_s18 + $0x3d0] sm:$0xff] }
0x1366   :  { %v8514_v50 = vadd.f32 %v4280_v36, %v4267_v26  ;;  %v7253_v26 = vld [vmem:[%s8628_s18 + $0x390] sm:$0xff] }
0x1367   :  { %v4240_v41 = vpop.f32.mrf.mxu3  ;;  %v4254_v38 = vpop.f32.mrf.mxu2  ;;  %v4401_v36 = vmax.f32 %v4381_v22, 0.0  ;;  %v4402_v3 = vmax.f32 %v4395_v23, 0.0  ;;  %v7241_v0 = vld [vmem:[%s8628_s18 + $0x330] sm:$0xff] }
0x1368   :  { %v4241_v14 = vadd.f32 %v4240_v41, %v4035_v20 }
0x136a   :  { %v4255_v21 = vadd.f32 %v4254_v38, %v4241_v14  ;;  %v7238_v38 = vld [vmem:[%s8628_s18 + $0x318] sm:$0xff]  ;;  %v7237_v14 = vld [vmem:[%s8628_s18 + $0x310] sm:$0xff] }
0x136c   :  { %v4269_v19 = vadd.f32 %v4268_v1, %v4255_v21  ;;  %v4382_v24 = vpop.f32.mrf.mxu1  ;;  %v4396_v27 = vpop.f32.mrf.mxu0  ;;  %v7245_v21 = vld [vmem:[%s8628_s18 + $0x350] sm:$0xff] }
0x136d   :  { %v4383_v10 = vadd.f32 %v4382_v24, %v4297_v39  ;;  %v4397_v11 = vadd.f32 %v4396_v27, %v4298_v43  ;;  %v7247_v39 = vld [vmem:[%s8628_s18 + $0x360] sm:$0xff]  ;;  %v7244_v24 = vld [vmem:[%s8628_s18 + $0x348] sm:$0xff] }
0x136e   :  { %v8516_v54 = vadd.f32 %v4282_v44, %v4269_v19  ;;  %v7236_v19 = vld [vmem:[%s8628_s18 + $0x308] sm:$0xff]  ;;  %v7235_v27 = vld [vmem:[%s8628_s18 + $0x300] sm:$0xff] }
0x136f   :  { %v4405_v29 = vmax.f32 %v4383_v10, 0.0  ;;  %v4406_v30 = vmax.f32 %v4397_v11, 0.0  ;;  %v4352_v37 = vpop.f32.mrf.mxu3  ;;  %v4366_v4 = vpop.f32.mrf.mxu2  ;;  %v7243_v10 = vld [vmem:[%s8628_s18 + $0x340] sm:$0xff]  ;;  %v4733_v11 = vld [vmem:[%s8629_s22 + $0xc] sm:$0xf] }
0x1370   :  { %v4353_v2 = vadd.f32 %v4352_v37, %v4295_v31  ;;  %v4367_v48 = vadd.f32 %v4366_v4, %v4296_v32  ;;  %v4737_v4 = vperm.slane %v4733_v11, 2 }
0x1371   :  { %v4409_v5 = vpack.c.bf16 %v4405_v29, %v4401_v36  ;;  %v4410_v18 = vpack.c.bf16 %v4406_v30, %v4402_v3 }
0x1372   :  { %v4399_v1 = vmax.f32 %v4353_v2, 0.0  ;;  %v4400_v44 = vmax.f32 %v4367_v48, 0.0 }
0x1373   :  { %4703 = vmatmul.bf16.vlgmr.msrb.gmra.mxu1 %v4409_v5  ;;  %4717 = vmatmul.bf16.vlgmr.msrb.gmra.mxu0 %v4410_v18  ;;  %v4738_v5 = vperm.slane %v4733_v11, 3 }
0x1374   :  { %5135 = vmatpush.bf16.msrb.mxu1 %v7258_v35  ;;  %5149 = vmatpush.bf16.msrb.mxu0 %v7266_v55 }
0x1377   :  { %v4354_v33 = vpop.f32.mrf.mxu3  ;;  %v4368_v34 = vpop.f32.mrf.mxu2 }
0x1378   :  { %v4355_v6 = vadd.f32 %v4354_v33, %v4295_v31  ;;  %v4369_v51 = vadd.f32 %v4368_v34, %v4296_v32  ;;  %5136 = vmatpush.bf16.msrb.mxu1 %v7257_v56  ;;  %5150 = vmatpush.bf16.msrb.mxu0 %v7265_v7 }
0x137a   :  { %v4403_v20 = vmax.f32 %v4355_v6, 0.0  ;;  %v4404_v9 = vmax.f32 %v4369_v51, 0.0 }
0x137c   :  { %v4407_v15 = vpack.c.bf16 %v4403_v20, %v4399_v1  ;;  %v4408_v52 = vpack.c.bf16 %v4404_v9, %v4400_v44  ;;  %5137 = vmatpush.bf16.msrb.mxu1 %v7256_v8  ;;  %5151 = vmatpush.bf16.msrb.mxu0 %v7264_v63 }
0x137e   :  { %4675 = vmatmul.bf16.vlgmr.msrb.gmra.mxu3 %v4407_v15  ;;  %4689 = vmatmul.bf16.vlgmr.msra.gmra.mxu2 %v4408_v52 }
0x137f   :  { %5107 = vmatpush.bf16.msrb.mxu3 %v7242_v53  ;;  %5121 = vmatpush.bf16.msra.mxu2 %v7250_v40 }
0x1380   :  { %5138 = vmatpush.bf16.msrb.mxu1 %v7255_v60 }
0x1383   :  { %6799 = vmatmul.msk.bf16.vlgmr.msra.gmra.mxu1 %vm202_vm2, %v8333_v62  ;;  %6800 = vmatmul.msk.bf16.vlgmr.msra.gmra.mxu0 %vm202_vm2, %v8333_v62 }
0x1384   :  { %5139 = vmatpush.bf16.msrb.mxu1 %v7254_v61  ;;  %5108 = vmatpush.bf16.msrb.mxu3 %v7241_v0  ;;  %v4736_v61 = vperm.slane %v4733_v11, 1 }
0x1385   :  { %5122 = vmatpush.bf16.msra.mxu2 %v7249_v13 }
0x1388   :  { %5140 = vmatpush.bf16.msrb.mxu1 %v7253_v26  ;;  %5109 = vmatpush.bf16.msrb.mxu3 %v7240_v47 }
0x1389   :  { %5123 = vmatpush.bf16.msra.mxu2 %v7248_v28 }
0x138c   :  { %5141 = vmatpush.bf16.msrb.mxu1 %v7252_v45  ;;  %5110 = vmatpush.bf16.msrb.mxu3 %v7239_v57 }
0x138d   :  { %5124 = vmatpush.bf16.msra.mxu2 %v7247_v39 }
0x138e   :  { %6797 = vmatmul.msk.bf16.vlgmr.msra.gmra.mxu3 %vm202_vm2, %v8333_v62  ;;  %6798 = vmatmul.msk.bf16.vlgmr.msrb.gmra.mxu2 %vm202_vm2, %v8333_v62  ;;  %v7263_v62 = vld [vmem:[%s8628_s18 + $0x3e0] sm:$0xff] }
0x138f   :  { %5152 = vmatpush.bf16.msrb.mxu0 %v7263_v62  ;;  %v4735_v62 = vperm.slane %v4733_v11, 0 }
0x1390   :  { %5142 = vmatpush.bf16.msrb.mxu1 %v7251_v17  ;;  %5111 = vmatpush.bf16.msrb.mxu3 %v7238_v38 }
0x1391   :  { %5125 = vmatpush.bf16.msra.mxu2 %v7246_v16 }
0x1393   :  { %5153 = vmatpush.bf16.msrb.mxu0 %v7262_v25 }
0x1394   :  { %5112 = vmatpush.bf16.msrb.mxu3 %v7237_v14  ;;  %v7338_v14 = vld [vmem:[%s8630_s23] ss:$0 sm:$0xff] }
0x1395   :  { %5126 = vmatpush.bf16.msra.mxu2 %v7245_v21 }
0x1397   :  { %5154 = vmatpush.bf16.msrb.mxu0 %v7261_v42 }
0x1398   :  { %5113 = vmatpush.bf16.msrb.mxu3 %v7236_v19 }
0x1399   :  { %5127 = vmatpush.bf16.msra.mxu2 %v7244_v24 }
0x139b   :  { %5155 = vmatpush.bf16.msrb.mxu0 %v7260_v46 }
0x139c   :  { %5114 = vmatpush.bf16.msrb.mxu3 %v7235_v27 }
0x139d   :  { %5128 = vmatpush.bf16.msra.mxu2 %v7243_v10 }
0x139f   :  { %5156 = vmatpush.bf16.msrb.mxu0 %v7259_v49 }
0x13f0   :  { %v4704_v43 = vpop.f32.mrf.mxu1  ;;  %v4718_v41 = vpop.f32.mrf.mxu0 }
0x13f8   :  { %v4706_v22 = vpop.f32.mrf.mxu1  ;;  %v4720_v23 = vpop.f32.mrf.mxu0 }
0x1400   :  { %v4820_v36 = vpop.f32.mrf.mxu1  ;;  %v4834_v3 = vpop.f32.mrf.mxu0 }
0x1401   :  { %v4676_v29 = vpop.f32.mrf.mxu3  ;;  %v4690_v30 = vpop.f32.mrf.mxu2  ;;  %v4821_v32 = vadd.f32 %v4820_v36, %v4737_v4  ;;  %v4835_v2 = vadd.f32 %v4834_v3, %v4738_v5 }
0x1402   :  { %v4691_v37 = vadd.f32 %v4690_v30, %v4676_v29 }
0x1403   :  { %v4841_v9 = vmax.f32 %v4821_v32, 0.0  ;;  %v4842_v15 = vmax.f32 %v4835_v2, 0.0 }
0x1404   :  { %v4705_v18 = vadd.f32 %v4704_v43, %v4691_v37 }
0x1406   :  { %v4719_v31 = vadd.f32 %v4718_v41, %v4705_v18 }
0x1408   :  { %v4723_v48 = vadd.f32 %v4719_v31, %v8514_v50  ;;  %v4822_v33 = vpop.f32.mrf.mxu1  ;;  %v4836_v34 = vpop.f32.mrf.mxu0 }
0x1409   :  { %v4823_v6 = vadd.f32 %v4822_v33, %v4737_v4  ;;  %v4837_v51 = vadd.f32 %v4836_v34, %v4738_v5  ;;  %v4678_v1 = vpop.f32.mrf.mxu3  ;;  %v4692_v44 = vpop.f32.mrf.mxu2 }
0x140a   :  { %v4693_v20 = vadd.f32 %v4692_v44, %v4678_v1  ;;  %v5297_v44 = vld [vmem:[%s8631_s26] sm:$0xff] }
0x140b   :  { %v4845_v52 = vmax.f32 %v4823_v6, 0.0  ;;  %v4846_v35 = vmax.f32 %v4837_v51, 0.0  ;;  %5329 = vmatpush.msra.mxu3 %v5297_v44  ;;  %5438 = vmatpush.msra.mxu1 %v5297_v44 }
0x140c   :  { %v4707_v55 = vadd.f32 %v4706_v22, %v4693_v20 }
0x140d   :  { %v4849_v56 = vpack.c.bf16 %v4845_v52, %v4841_v9  ;;  %v4850_v7 = vpack.c.bf16 %v4846_v35, %v4842_v15 }
0x140e   :  { %v4721_v8 = vadd.f32 %v4720_v23, %v4707_v55 }
0x140f   :  { %5143 = vmatmul.bf16.vlgmr.msrb.gmra.mxu1 %v4849_v56  ;;  %5157 = vmatmul.bf16.vlgmr.msrb.gmra.mxu0 %v4850_v7 }
0x1410   :  { %v4724_v63 = vadd.f32 %v4721_v8, %v8516_v54 }
0x1411   :  { %v4792_v50 = vpop.f32.mrf.mxu3  ;;  %v4806_v60 = vpop.f32.mrf.mxu2 }
0x1412   :  { %v4793_v25 = vadd.f32 %v4792_v50, %v4735_v62  ;;  %v4807_v53 = vadd.f32 %v4806_v60, %v4736_v61  ;;  %v7339_v60 = vld [vmem:[%s8632_s0] ss:$0 sm:$0xff] }
0x1414   :  { %v4839_v13 = vmax.f32 %v4793_v25, 0.0  ;;  %v4840_v45 = vmax.f32 %v4807_v53, 0.0 }
0x1419   :  { %v4794_v40 = vpop.f32.mrf.mxu3  ;;  %v4808_v26 = vpop.f32.mrf.mxu2 }
0x141a   :  { %v4795_v42 = vadd.f32 %v4794_v40, %v4735_v62  ;;  %v4809_v0 = vadd.f32 %v4808_v26, %v4736_v61 }
0x141c   :  { %v4843_v46 = vmax.f32 %v4795_v42, 0.0  ;;  %v4844_v47 = vmax.f32 %v4809_v0, 0.0 }
0x141e   :  { %v4847_v28 = vpack.c.bf16 %v4843_v46, %v4839_v13  ;;  %v4848_v17 = vpack.c.bf16 %v4844_v47, %v4840_v45 }
0x1420   :  { %5115 = vmatmul.bf16.vlgmr.msrb.gmra.mxu3 %v4847_v28  ;;  %5129 = vmatmul.bf16.vlgmr.msra.gmra.mxu2 %v4848_v17  ;;  %v5229_v28 = vld [vmem:[%s7659_s12] sm:$0xff]  ;;  %v5230_v17 = vld [vmem:[%s7659_s12 + $0x8] sm:$0xff] }
0x148c   :  { %v5144_v54 = vpop.f32.mrf.mxu1  ;;  %v5158_v43 = vpop.f32.mrf.mxu0 }
0x1494   :  { %v5146_v24 = vpop.f32.mrf.mxu1  ;;  %v5160_v11 = vpop.f32.mrf.mxu0 }
0x14a3   :  { %v5116_v49 = vpop.f32.mrf.mxu3  ;;  %v5130_v57 = vpop.f32.mrf.mxu2 }
0x14a4   :  { %v5131_v39 = vadd.f32 %v5130_v57, %v5116_v49  ;;  %v5232_v49 = vld [vmem:[%s7659_s12 + $0x18] sm:$0xff] }
0x14a6   :  { %v5145_v41 = vadd.f32 %v5144_v54, %v5131_v39  ;;  %v5231_v54 = vld [vmem:[%s7659_s12 + $0x10] sm:$0xff]  ;;  %s7499_s12 = smov [#allocation3]  }
0x14a8   :  { %v5159_v38 = vadd.f32 %v5158_v43, %v5145_v41 }
0x14aa   :  { %v5163_v16 = vadd.f32 %v5159_v38, %v4723_v48 }
0x14ab   :  { %v5118_v21 = vpop.f32.mrf.mxu3  ;;  %v5132_v22 = vpop.f32.mrf.mxu2 }
0x14ac   :  { %v5133_v23 = vadd.f32 %v5132_v22, %v5118_v21  ;;  %v5165_v19 = vadd.f32 %v5163_v16, %v8327_v58 }
0x14ae   :  { %v5147_v27 = vadd.f32 %v5146_v24, %v5133_v23  ;;  %v5171_v10 = vadd.f32 %v7338_v14, %v5165_v19 }
0x14b0   :  { %v5161_v36 = vadd.f32 %v5160_v11, %v5147_v27  ;;  %v5175_v3 = vsel %vm202_vm2, %v5171_v10, 0.0  ;;  %v5452_v27 = vld [vmem:[%s7664_s20] sm:$0xf]  ;;  %v7498_v11 = vmov 0  }
0x14b1   :  { %5176 = vadd.xlane.f32.xlu0 %v5175_v3 }
0x14b2   :  { %v5164_v29 = vadd.f32 %v5161_v36, %v4724_v63 }
0x14b4   :  { %v5166_v30 = vadd.f32 %v5164_v29, %v8329_v59  ;;  %v7341_v29 = vld [vmem:[%s7654_s4] ss:$0 sm:$0xff] }
0x14b6   :  { %v5172_v37 = vadd.f32 %v7338_v14, %v5166_v30 }
0x14b8   :  { %v5178_v4 = vsel %vm202_vm2, %v5172_v37, 0.0 }
0x14b9   :  { %5179 = vadd.xlane.f32.xlu1 %v5178_v4 }
0x1524   :  { %v5177_v5 = vpop.xlane.xlu0 %5176 }
0x1525   :  { %v5181_v18 = vmul.f32 %v5177_v5, %v7809_v12 }
0x1527   :  { %v5183_v58 = vsub.f32 %v5171_v10, %v5181_v18  ;;  %v5343_v10 = vld [vmem:[%s7664_s20] sm:$0xf]  ;;  %s5484_s20 = sshll.u32 %s7499_s12, 4  ;;  %s5485_s20 = int_to_ptr.vmem [resolvable:$true] %s5484_s20 }
0x1528   :  { %v7342_v18 = vld [vmem:[%s7654_s4] ss:$0 sm:$0xff]  ;;  %s5486_s4 = sshll.u32 %s7669_s27, 4  ;;  %s5487_s4 = int_to_ptr.hbm [resolvable:$true] %s5486_s4 }
0x1529   :  { %v5185_v31 = vmul.f32 %v5183_v58, %v5183_v58  ;;  %s7437_s9 = sshra.s32 %s5487_s4, 4  ;;  %s7438_s9 = int_to_ptr.hbm [resolvable:$true] %s7437_s9 }
0x152a   :  { %s7439_s13 = scalar_lea.hbm %s7438_s9, 8  ;;  %p7442_p1 = scmp.lt.s32.totalorder %s7438_s9, %s7669_s27 }
0x152b   :  { %v5187_v32 = vsel %vm202_vm2, %v5185_v31, 0.0  ;;  %p7440_p0 = scmp.ne.s32.totalorder %s7438_s9, %s7439_s13  ;;  %p7443_p2 = scmp.lt.s32.totalorder %s7441_s21, %s7439_s13 }
0x152c   :  { %v5180_v2 = vpop.xlane.xlu1 %5179  ;;  %5188 = vadd.xlane.f32.xlu2 %v5187_v32 }
0x152d   :  { %v5182_v48 = vmul.f32 %v5180_v2, %v7809_v12  ;;  %p7444_p3 = por %p7443_p2, %p7442_p1 }
0x152f   :  { %v5184_v33 = vsub.f32 %v5172_v37, %v5182_v48  ;;  %p7445_p4 = pnand %p7444_p3, %p7440_p0 }
0x1531   :  { %v5186_v34 = vmul.f32 %v5184_v33, %v5184_v33 }
0x1533   :  { %v5190_v59 = vsel %vm202_vm2, %v5186_v34, 0.0 }
0x1534   :  { %5191 = vadd.xlane.f32.xlu0 %v5190_v59 }
0x155d   :  { %5233 = vxpose.xlu0.b32.start [1/4] (short) (narrow) %v5229_v28, 8 }
0x1565   :  { %5234 = vxpose.xlu0.b32.cont [2/4] (short) (narrow) %v5230_v17, 8 }
0x156d   :  { %5235 = vxpose.xlu0.b32.cont [3/4] (short) (narrow) %v5231_v54, 8 }
0x1575   :  { %5236 = vxpose.xlu0.b32.end [4/4] (short) (narrow) %v5232_v49, 8 }
0x159f   :  { %v5189_v6 = vpop.xlane.xlu2 %5188 }
0x15a0   :  { %v5193_v51 = vmul.f32 %v5189_v6, %v7809_v12 }
0x15a2   :  { %v5195_v1 = vadd.f32 1e-05, %v5193_v51 }
0x15a4   :  { %7421 = vrsqrt.f32 %v5195_v1  ;;  %vm5203_vm13 = vweird.f32 %v5195_v1 }
0x15a7   :  { %v5192_v20 = vpop.xlane.xlu0 %5191 }
0x15a8   :  { %v5194_v9 = vmul.f32 %v5192_v20, %v7809_v12  ;;  %v7340_v12 = vld [vmem:[%s8633_s5] ss:$0 sm:$0xff] }
0x15aa   :  { %v7422_v15 = vpop.eup %7421  ;;  %v5196_v52 = vadd.f32 1e-05, %v5194_v9 }
0x15ab   :  { %v5198_v35 = vmul.f32 %v7422_v15, %v5195_v1  ;;  %vm5204_vm12 = vweird.f32 %v7422_v15 }
0x15ac   :  { %7423 = vrsqrt.f32 %v5196_v52  ;;  %vm5205_vm14 = vmor %vm5203_vm13, %vm5204_vm12  ;;  %vm5213_vm0 = vweird.f32 %v5196_v52 }
0x15ad   :  { %v5199_v55 = vmul.f32 %v7422_v15, %v5198_v35 }
0x15af   :  { %v5200_v56 = vmul.f32 0.5, %v5199_v55 }
0x15b1   :  { %v5201_v7 = vsub.f32 1.5, %v5200_v56 }
0x15b2   :  { %v7424_v8 = vpop.eup %7423 }
0x15b3   :  { %v5202_v63 = vmul.f32 %v7422_v15, %v5201_v7  ;;  %v5208_v50 = vmul.f32 %v7424_v8, %v5196_v52  ;;  %vm5214_vm15 = vweird.f32 %v7424_v8 }
0x15b4   :  { %vm5215_vm1 = vmor %vm5213_vm0, %vm5214_vm15 }
0x15b5   :  { %v5209_v62 = vmul.f32 %v7424_v8, %v5208_v50  ;;  %v5206_v61 = vsel %vm5205_vm14, %v7422_v15, %v5202_v63 }
0x15b6   :  { %v5217_v25 = vmul.f32 %v5206_v61, %v5183_v58 }
0x15b7   :  { %v5210_v53 = vmul.f32 0.5, %v5209_v62 }
0x15b8   :  { %v5222_v40 = vmul.f32 %v7339_v60, %v5217_v25 }
0x15b9   :  { %v5211_v26 = vsub.f32 1.5, %v5210_v53 }
0x15ba   :  { %v5227_v42 = vadd.f32 %v7340_v12, %v5222_v40 }
0x15bb   :  { %v5212_v0 = vmul.f32 %v7424_v8, %v5211_v26 }
0x15bc   :  { %5265 = vxpose.xlu1.b32.start.end [1/1] (short) (narrow) %v5227_v42, 32 }
0x15bd   :  { %v5216_v13 = vsel %vm5215_vm1, %v7424_v8, %v5212_v0 }
0x15be   :  { %v5218_v45 = vmul.f32 %v5216_v13, %v5184_v33 }
0x15c0   :  { %v5223_v46 = vmul.f32 %v7339_v60, %v5218_v45 }
0x15c2   :  { %v5228_v47 = vadd.f32 %v7340_v12, %v5223_v46 }
0x15c4   :  { %5374 = vxpose.xlu2.b32.start.end [1/1] (short) (narrow) %v5228_v47, 32 }
0x15dc   :  { %7325 = vset.pattern.permute.xlu0 %v7498_v11 }
0x1601   :  { %v5249_v2 = vpop.trf.xlu0 }
0x160f   :  { %7324 = vset.pattern.permute.xlu1 %v7498_v11 }
0x1626   :  { %7323 = vset.pattern.permute.xlu2 %v7498_v11 }
0x162e   :  { %5455 = vperm.xlu1 %7324, %v5452_v27  }
0x1645   :  { %5346 = vperm.xlu2 %7323, %v5343_v10  }
0x165d   :  { %v5390_v57 = vpop.trf.xlu2 }
0x165e   :  { %6934 = vmatmul.msk.f32.vlgmr.msra.gmra.mxu1 %vm223_vm3, %v5390_v57 }
0x1660   :  { %v5281_v39 = vpop.trf.xlu1 }
0x1661   :  { %6929 = vmatmul.msk.f32.vlgmr.msra.gmra.mxu3 %vm223_vm3, %v5281_v39 }
0x1665   :  { %v5391_v43 = vpop.trf.xlu2 }
0x1666   :  { %6935 = vmatmul.msk.f32.gmra.mxu1 %vm223_vm3, %v5391_v43 }
0x1668   :  { %v5282_v41 = vpop.trf.xlu1 }
0x1669   :  { %6930 = vmatmul.msk.f32.gmra.mxu3 %vm223_vm3, %v5282_v41 }
0x166d   :  { %v5392_v38 = vpop.trf.xlu2 }
0x166e   :  { %6936 = vmatmul.msk.f32.gmra.mxu1 %vm223_vm3, %v5392_v38 }
0x1670   :  { %v5283_v16 = vpop.trf.xlu1 }
0x1671   :  { %6931 = vmatmul.msk.f32.gmra.mxu3 %vm223_vm3, %v5283_v16 }
0x1675   :  { %v5393_v14 = vpop.trf.xlu2 }
0x1676   :  { %6937 = vmatmul.msk.f32.gmra.mxu1 %vm223_vm3, %v5393_v14 }
0x1678   :  { %v5284_v21 = vpop.trf.xlu1 }
0x1679   :  { %6932 = vmatmul.msk.f32.gmra.mxu3 %vm223_vm3, %v5284_v21  ;;  %vm5372_vm3 = vcmask 27648  }
0x169f   :  { %v5347_v59 = vpop.permute.xlu2 %5346 }
0x16a0   :  { %v5456_v1 = vpop.permute.xlu1 %5455 }
0x16db   :  { %v5440_v22 = vpop.f32.mrf.mxu1 }
0x16dc   :  { %v5441_v34 = vadd.f32 %v7342_v18, %v5440_v22 }
0x16e3   :  { %v5443_v19 = vpop.f32.mrf.mxu1 }
0x16e4   :  { %v5331_v23 = vpop.f32.mrf.mxu3  ;;  %v5444_v33 = vadd.f32 %v7342_v18, %v5443_v19 }
0x16e5   :  { %v5332_v32 = vadd.f32 %v7341_v29, %v5331_v23 }
0x16eb   :  { %v5446_v3 = vpop.f32.mrf.mxu1 }
0x16ec   :  { %v5334_v24 = vpop.f32.mrf.mxu3  ;;  %v5447_v48 = vadd.f32 %v7342_v18, %v5446_v3 }
0x16ed   :  { %v5335_v58 = vadd.f32 %v7341_v29, %v5334_v24 }
0x16f3   :  { %v5449_v5 = vpop.f32.mrf.mxu1 }
0x16f4   :  { %v5337_v36 = vpop.f32.mrf.mxu3  ;;  %v5450_v31 = vadd.f32 %v7342_v18, %v5449_v5 }
0x16f5   :  { %v5338_v4 = vadd.f32 %v7341_v29, %v5337_v36 }
0x16fc   :  { %v5340_v30 = vpop.f32.mrf.mxu3 }
0x16fd   :  { %v5341_v37 = vadd.f32 %v7341_v29, %v5340_v30 }
0x16ff   :  { %5364 = vmatpush.msrb.mxu2 %v5341_v37 }
0x1701   :  { %5365 = vmatpush.msrb.mxu2 %v5338_v4 }
0x1703   :  { %5366 = vmatpush.msrb.mxu2 %v5335_v58 }
0x1705   :  { %5367 = vmatpush.msrb.mxu2 %v5332_v32 }
0x1706   :  { %6933 = vmatmul.msk.f32.vlgmr.msrb.gmra.mxu2 %vm202_vm2, %v5249_v2 }
0x1707   :  { %5470 = vmatpush.msra.mxu2 %v5450_v31 }
0x1709   :  { %5471 = vmatpush.msra.mxu2 %v5447_v48 }
0x170b   :  { %5472 = vmatpush.msra.mxu2 %v5444_v33 }
0x170d   :  { %5473 = vmatpush.msra.mxu2 %v5441_v34 }
0x170e   :  { %6938 = vmatmul.msk.f32.vlgmr.msra.gmra.mxu2 %vm202_vm2, %v5249_v2 }
0x1789   :  { %v5369_v6 = vpop.f32.mrf.mxu2 }
0x178a   :  { %v5370_v51 = vadd.f32 %v5369_v6, %v5347_v59 }
0x178c   :  { %5373 = vst.msk [vmem:[#allocation3] sm:$0xf] %vm5372_vm3, %v5370_v51 }
0x1791   :  { %v5475_v44 = vpop.f32.mrf.mxu2 }
0x1792   :  { %v5476_v20 = vadd.f32 %v5475_v44, %v5456_v1 }
0x1794   :  { %5479 = vst.msk [vmem:[#allocation3 + $0x4] sm:$0xf] %vm5372_vm3, %v5476_v20 }
0x1795   :  { %7448 = shalt.err (!%p7445_p4)
}
0x1796   :  { %s7500_s25 = smov 4  }
0x1797   :  { %5492 = dma.vmem_to_hbm [thread:$0]  %s5485_s20, 128, %s5487_s4, [#allocation4], %s7487_s17, %s7487_s17, %s7500_s25  }
0x1798   :  { %7449 = dma.done.wait [#allocation4], 128  }
0x1799   :  { %7450 = vsyncadd [#allocation4], 4294967168 }
0x179a   :  { %5497 = vsyncpa [#allocation4], 1 }

</bundles_post_ra>
